<compile_context>
chip_gen: v7x
topology: tpu7x:2x2x1
jax: 0.10.0
libtpu: 0.0.40
codegen_flags: <defaults>
</compile_context>

<pallas_src>
import jax
import jax.numpy as jnp
from jax.experimental import pallas as pl
from jax.experimental.pallas import tpu as pltpu


def _round_up(x, m):
    return ((x + m - 1) // m) * m


def _relu(x):
    return jnp.maximum(x, 0.0)


# ----------------------------------------------------------------------------
# Fused kernel: point MLP (5 conv layers) + global max pool + FC head.
# grid = (B_pad // b_tile, N_pad // n_tile), semantics ("parallel","arbitrary").
#   x block:   (b_tile, 8, n_tile) f32   channel-major, lane-dense in points
#   weights:   full-array blocks, constant index maps (fetched once, reused)
#   out block: (b_tile, c_pad) f32       written only on the last N tile
#   scratch:   max_ref (b_tile, 1024) f32  running point-max accumulator
#              h4_buf  (b_tile, n_tile, 128) f32  layer-4 activations (chunked
#                                                 through layer 5 + max)
# ----------------------------------------------------------------------------
def pointnet_kernel(x_ref,
                    w1, b1, w2, b2, w3, b3, w4, b4, w5, b5,
                    fw1, fb1, fw2, fb2, fw3, fb3,
                    out_ref,
                    max_ref, h4_buf):
    ni = pl.program_id(1)

    @pl.when(ni == 0)
    def _init():
        # -inf (not 0) keeps the running max correct independent of the ReLU.
        max_ref[...] = jnp.full(max_ref.shape, -jnp.inf, dtype=max_ref.dtype)

    xb = x_ref[...]                               # (Bb, 8, Nt) f32, chans 3..7 zero
    bb = xb.shape[0]
    cin = xb.shape[1]
    nt = xb.shape[2]

    # Small relayout: channel-major DMA tile -> row-major (M, 8) for the MXU.
    # Only 8 x Nt elements per batch row; far cheaper than transposing any
    # 64/128-wide activation.
    x2 = jnp.transpose(xb, (0, 2, 1)).reshape(bb * nt, cin)

    def dense_relu(h, w_ref, b_ref):
        y = jnp.dot(h.astype(jnp.bfloat16), w_ref[...],
                    preferred_element_type=jnp.float32) + b_ref[...]
        return _relu(y)

    h = dense_relu(x2, w1, b1)                    # (M, 64)   conv1 (K padded to 8)
    h = dense_relu(h, w2, b2)                     # (M, 64)   conv2
    h = dense_relu(h, w3, b3)                     # (M, 64)   conv3
    h = dense_relu(h, w4, b4)                     # (M, 128)  conv4

    # conv5 (128 -> 1024) + ReLU + torch.max(x, 2)[0], chunked over points so
    # the (M, 1024) f32 intermediate is bounded at (bb * n_chunk, 1024).
    h4_buf[...] = h.reshape(bb, nt, h.shape[-1])
    n_chunk = nt if nt <= 128 else 128            # wrapper guarantees nt % 128 == 0
    num_chunks = nt // n_chunk
    feat_dim = max_ref.shape[-1]
    w5f = w5[...]
    b5f = b5[...]

    def chunk_body(ci, carry):
        start = pl.multiple_of(ci * n_chunk, n_chunk)
        hc = h4_buf[:, pl.ds(start, n_chunk), :]              # (Bb, n_chunk, 128)
        y = jnp.dot(hc.reshape(bb * n_chunk, hc.shape[-1]).astype(jnp.bfloat16),
                    w5f, preferred_element_type=jnp.float32) + b5f
        y = _relu(y)
        cmax = jnp.max(y.reshape(bb, n_chunk, feat_dim), axis=1)   # (Bb, 1024)
        max_ref[...] = jnp.maximum(max_ref[...], cmax)
        return carry

    jax.lax.fori_loop(0, num_chunks, chunk_body, 0)

    # FC head fused as the epilogue of the last point tile for this batch block.
    @pl.when(ni == pl.num_programs(1) - 1)
    def _fc_head():
        def dense(h, w_ref, b_ref):
            return jnp.dot(h.astype(jnp.bfloat16), w_ref[...],
                           preferred_element_type=jnp.float32) + b_ref[...]

        f = max_ref[...]                          # (Bb, 1024) global feature
        f = _relu(dense(f, fw1, fb1))             # (Bb, 512)
        f = _relu(dense(f, fw2, fb2))             # (Bb, 256)
        out_ref[...] = dense(f, fw3, fb3)         # (Bb, c_pad) lane-dense store


def pointnet_forward(x, params, *, b_tile=8, n_tile_max=512):
    """x: (B, N, 3) float32 -> logits (B, num_classes)."""
    B, N, _ = x.shape
    mlp_ws, mlp_bs = params["mlp_w"], params["mlp_b"]
    fc_ws, fc_bs = params["fc_w"], params["fc_b"]
    num_classes = fc_ws[-1].shape[1]
    feat_dim = mlp_ws[-1].shape[1]                # 1024
    cin_pad = 8                                   # pad xyz channels 3 -> 8

    # ---- tiling: points to a multiple of 128 (or a single full tile for
    # small N), batch to a multiple of b_tile.  Point padding replicates the
    # last real point (cannot change the max); padded batch rows are sliced
    # away at the end.
    if N <= 128:
        n_tile = _round_up(N, 8)
    else:
        n_tile = min(n_tile_max, _round_up(N, 128))
    n_pad = _round_up(N, n_tile)
    b_pad = _round_up(B, b_tile)

    # ---- x: (B, N, 3) -> channel-major (B_pad, 8, N_pad) f32.
    x_t = jnp.transpose(x.astype(jnp.float32), (0, 2, 1))          # (B, 3, N)
    x_t = jnp.pad(x_t, ((0, b_pad - B), (0, 0), (0, n_pad - N)), mode="edge")
    x_p = jnp.pad(x_t, ((0, 0), (0, cin_pad - 3), (0, 0)))         # zero channels

    # ---- fold-then-cast: BN already folded in f32 (init_params); cast MXU
    # weights to bf16 once here.  Layer-1 weights get zero rows for the padded
    # input channels (numerically exact).
    w1p = jnp.pad(mlp_ws[0], ((0, cin_pad - 3), (0, 0)))
    mlp_w_prep = [w1p.astype(jnp.bfloat16)] + [w.astype(jnp.bfloat16)
                                               for w in mlp_ws[1:]]

    # FC head: pad class dim to a full 128-lane block (dense final store);
    # padded lanes carry zero weights/bias and are sliced off below.
    c_pad = _round_up(num_classes, 128)
    w3p = jnp.zeros((fc_ws[2].shape[0], c_pad), jnp.float32)
    w3p = w3p.at[:, :num_classes].set(fc_ws[2])
    b3p = jnp.zeros((1, c_pad), jnp.float32).at[:, :num_classes].set(fc_bs[2])
    fc_w_prep = [fc_ws[0].astype(jnp.bfloat16),
                 fc_ws[1].astype(jnp.bfloat16),
                 w3p.astype(jnp.bfloat16)]
    fc_b_prep = [fc_bs[0], fc_bs[1], b3p]

    args = [x_p]
    for w, b in zip(mlp_w_prep, mlp_bs):
        args += [w, b]
    for w, b in zip(fc_w_prep, fc_b_prep):
        args += [w, b]

    # Weights/biases use constant index maps, so their tiles are fetched once
    # and reused across all grid steps.  (pl.Buffered(1) on them would drop the
    # second pipeline buffer, ~1.7 MiB; left at the default for portability.)
    in_specs = [pl.BlockSpec((b_tile, cin_pad, n_tile),
                             lambda bi, ni: (bi, 0, ni))]
    for a in args[1:]:
        in_specs.append(pl.BlockSpec(a.shape, lambda bi, ni: (0, 0)))

    logits_pad = pl.pallas_call(
        pointnet_kernel,
        out_shape=jax.ShapeDtypeStruct((b_pad, c_pad), jnp.float32),
        grid_spec=pltpu.PrefetchScalarGridSpec(
            num_scalar_prefetch=0,
            grid=(b_pad // b_tile, n_pad // n_tile),     # (parallel, arbitrary)
            in_specs=in_specs,
            out_specs=pl.BlockSpec((b_tile, c_pad), lambda bi, ni: (bi, 0)),
            scratch_shapes=[
                pltpu.VMEM((b_tile, feat_dim), jnp.float32),            # max acc
                pltpu.VMEM((b_tile, n_tile, mlp_ws[-1].shape[0]),       # layer-4
                           jnp.float32),
            ]),
        compiler_params=pltpu.CompilerParams(
            dimension_semantics=("parallel", "arbitrary"),
            vmem_limit_bytes=32 * 1024 * 1024),
    )(*args)

    return logits_pad[:B, :num_classes]


# ----------------------------------------------------------------------------
# Deterministic parameter initialization (shapes match the PyTorch module),
# with eval-mode BatchNorm folded (in f32) into the preceding conv / linear.
# ----------------------------------------------------------------------------
def _fold_bn(w, b, gamma, beta, mean, var, eps=1e-5):
    # y = gamma * (x@w + b - mean) / sqrt(var + eps) + beta
    scale = gamma / jnp.sqrt(var + eps)           # (Cout,)
    w_f = w * scale[None, :]                      # (Cin, Cout)
    b_f = (b - mean) * scale + beta               # (Cout,)
    return w_f, b_f.reshape(1, -1)


def init_params(key, num_classes=6):
    conv_dims = [(3, 64), (64, 64), (64, 64), (64, 128), (128, 1024)]
    fc_dims = [(1024, 512), (512, 256), (256, num_classes)]

    def layer(key, cin, cout, with_bn):
        ks = jax.random.split(key, 6)
        w = jax.random.normal(ks[0], (cin, cout), jnp.float32) / jnp.sqrt(cin)
        b = 0.1 * jax.random.normal(ks[1], (cout,), jnp.float32)
        if not with_bn:
            return w, b.reshape(1, -1)
        gamma = 1.0 + 0.1 * jax.random.normal(ks[2], (cout,), jnp.float32)
        beta = 0.1 * jax.random.normal(ks[3], (cout,), jnp.float32)
        mean = 0.1 * jax.random.normal(ks[4], (cout,), jnp.float32)
        var = 0.5 + jnp.abs(jax.random.normal(ks[5], (cout,), jnp.float32))
        return _fold_bn(w, b, gamma, beta, mean, var)

    keys = jax.random.split(key, len(conv_dims) + len(fc_dims))
    mlp_w, mlp_b = [], []
    for k, (cin, cout) in zip(keys[:len(conv_dims)], conv_dims):
        w, b = layer(k, cin, cout, with_bn=True)
        mlp_w.append(w)
        mlp_b.append(b)

    fc_w, fc_b = [], []
    for i, (k, (cin, cout)) in enumerate(zip(keys[len(conv_dims):], fc_dims)):
        w, b = layer(k, cin, cout, with_bn=(i < 2))   # last Linear has no BN
        fc_w.append(w)
        fc_b.append(b)

    return {"mlp_w": mlp_w, "mlp_b": mlp_b, "fc_w": fc_w, "fc_b": fc_b}


# ----------------------------------------------------------------------------
# Pure-JAX reference using the same bf16-matmul / f32-accumulate precision.
# ----------------------------------------------------------------------------
def pointnet_reference(x, params):
    B, N, _ = x.shape
    h = x.reshape(B * N, 3).astype(jnp.float32)
    for w, b in zip(params["mlp_w"], params["mlp_b"]):
        y = jnp.dot(h.astype(jnp.bfloat16), w.astype(jnp.bfloat16),
                    preferred_element_type=jnp.float32) + b
        h = jnp.maximum(y, 0.0)
    h = jnp.max(h.reshape(B, N, -1), axis=1)          # torch.max(x, 2)[0]
    for i, (w, b) in enumerate(zip(params["fc_w"], params["fc_b"])):
        h = jnp.dot(h.astype(jnp.bfloat16), w.astype(jnp.bfloat16),
                    preferred_element_type=jnp.float32) + b
        if i < 2:
            h = jnp.maximum(h, 0.0)
    return h


if __name__ == "__main__":
    key = jax.random.PRNGKey(0)
    k_param, k_x = jax.random.split(key)

    B, N, num_classes = 2, 16, 6
    x = jax.random.normal(k_x, (B, N, 3), jnp.float32)
    params = init_params(k_param, num_classes=num_classes)

    logits = pointnet_forward(x, params)
    logits = jax.block_until_ready(logits)

    ref = pointnet_reference(x, params)
    assert logits.shape == (B, num_classes)
    assert bool(jnp.all(jnp.isfinite(logits)))
    # bf16 matmuls with f32 accumulation: tolerance loosened accordingly and
    # compared against a bf16-matched reference.
    assert jnp.allclose(logits, ref, atol=2e-2, rtol=2e-2), (logits, ref)

    print("KERNEL_OK")
</pallas_src>

<mosaic_0001>
module attributes {stable_mosaic.version = 11 : i64} {
  func.func @pointnet_kernel(%arg0: i32, %arg1: i32, %arg2: memref<8x8x16xf32, #tpu.memory_space<vmem>>, %arg3: memref<8x64xbf16, #tpu.memory_space<vmem>>, %arg4: memref<1x64xf32, #tpu.memory_space<vmem>>, %arg5: memref<64x64xbf16, #tpu.memory_space<vmem>>, %arg6: memref<1x64xf32, #tpu.memory_space<vmem>>, %arg7: memref<64x64xbf16, #tpu.memory_space<vmem>>, %arg8: memref<1x64xf32, #tpu.memory_space<vmem>>, %arg9: memref<64x128xbf16, #tpu.memory_space<vmem>>, %arg10: memref<1x128xf32, #tpu.memory_space<vmem>>, %arg11: memref<128x1024xbf16, #tpu.memory_space<vmem>>, %arg12: memref<1x1024xf32, #tpu.memory_space<vmem>>, %arg13: memref<1024x512xbf16, #tpu.memory_space<vmem>>, %arg14: memref<1x512xf32, #tpu.memory_space<vmem>>, %arg15: memref<512x256xbf16, #tpu.memory_space<vmem>>, %arg16: memref<1x256xf32, #tpu.memory_space<vmem>>, %arg17: memref<256x128xbf16, #tpu.memory_space<vmem>>, %arg18: memref<1x128xf32, #tpu.memory_space<vmem>>, %arg19: memref<8x128xf32, #tpu.memory_space<vmem>>, %arg20: memref<8x1024xf32, #tpu.memory_space<vmem>>, %arg21: memref<8x16x128xf32, #tpu.memory_space<vmem>>) attributes {dimension_semantics = [#tpu.dimension_semantics<parallel>, #tpu.dimension_semantics<arbitrary>], iteration_bounds = array<i64: 1, 1>, scalar_prefetch = 0 : i64, scratch_operands = 2 : i64, tpu.core_type = #tpu.core_type<tc>, window_params = [{transform_indices = @transform_0, window_bounds = array<i64: 8, 8, 16>}, {pipeline_mode = #tpu.pipeline_mode<synchronous>, transform_indices = @transform_1, window_bounds = array<i64: 8, 64>}, {pipeline_mode = #tpu.pipeline_mode<synchronous>, transform_indices = @transform_2, window_bounds = array<i64: 1, 64>}, {pipeline_mode = #tpu.pipeline_mode<synchronous>, transform_indices = @transform_3, window_bounds = array<i64: 64, 64>}, {pipeline_mode = #tpu.pipeline_mode<synchronous>, transform_indices = @transform_4, window_bounds = array<i64: 1, 64>}, {pipeline_mode = #tpu.pipeline_mode<synchronous>, transform_indices = @transform_5, window_bounds = array<i64: 64, 64>}, {pipeline_mode = #tpu.pipeline_mode<synchronous>, transform_indices = @transform_6, window_bounds = array<i64: 1, 64>}, {pipeline_mode = #tpu.pipeline_mode<synchronous>, transform_indices = @transform_7, window_bounds = array<i64: 64, 128>}, {pipeline_mode = #tpu.pipeline_mode<synchronous>, transform_indices = @transform_8, window_bounds = array<i64: 1, 128>}, {pipeline_mode = #tpu.pipeline_mode<synchronous>, transform_indices = @transform_9, window_bounds = array<i64: 128, 1024>}, {pipeline_mode = #tpu.pipeline_mode<synchronous>, transform_indices = @transform_10, window_bounds = array<i64: 1, 1024>}, {pipeline_mode = #tpu.pipeline_mode<synchronous>, transform_indices = @transform_11, window_bounds = array<i64: 1024, 512>}, {pipeline_mode = #tpu.pipeline_mode<synchronous>, transform_indices = @transform_12, window_bounds = array<i64: 1, 512>}, {pipeline_mode = #tpu.pipeline_mode<synchronous>, transform_indices = @transform_13, window_bounds = array<i64: 512, 256>}, {pipeline_mode = #tpu.pipeline_mode<synchronous>, transform_indices = @transform_14, window_bounds = array<i64: 1, 256>}, {pipeline_mode = #tpu.pipeline_mode<synchronous>, transform_indices = @transform_15, window_bounds = array<i64: 256, 128>}, {pipeline_mode = #tpu.pipeline_mode<synchronous>, transform_indices = @transform_16, window_bounds = array<i64: 1, 128>}, {transform_indices = @transform_17, window_bounds = array<i64: 8, 128>}]} {
    %c0_i32 = arith.constant 0 : i32
    %0 = arith.cmpi eq, %arg1, %c0_i32 : i32
    %1 = arith.extui %0 : i1 to i32
    %c0_i32_0 = arith.constant 0 : i32
    %2 = arith.cmpi ne, %1, %c0_i32_0 : i32
    scf.if %2 {
      %cst_45 = arith.constant 0xFF800000 : f32
      %61 = vector.broadcast %cst_45 : f32 to vector<8x1024xf32>
      %c0_46 = arith.constant 0 : index
      %c0_47 = arith.constant 0 : index
      %62 = vector.load %arg20[%c0_46, %c0_47] : memref<8x1024xf32, #tpu.memory_space<vmem>>, vector<8x1024xf32>
      tpu.vector_store %arg20[%c0_46, %c0_47], %61 {strides = array<i32>} : memref<8x1024xf32, #tpu.memory_space<vmem>>, vector<8x1024xf32>,
    } else {
    }
    %c0 = arith.constant 0 : index
    %c0_1 = arith.constant 0 : index
    %c0_2 = arith.constant 0 : index
    %3 = vector.load %arg2[%c0, %c0_1, %c0_2] : memref<8x8x16xf32, #tpu.memory_space<vmem>>, vector<8x8x16xf32>
    %4 = tpu.transpose %3, [0, 2, 1] : vector<8x8x16xf32> -> vector<8x16x8xf32>
    %5 = vector.shape_cast %4 : vector<8x16x8xf32> to vector<128x8xf32>
    %6 = arith.truncf %5 : vector<128x8xf32> to vector<128x8xbf16>
    %c0_3 = arith.constant 0 : index
    %c0_4 = arith.constant 0 : index
    %7 = vector.load %arg3[%c0_3, %c0_4] : memref<8x64xbf16, #tpu.memory_space<vmem>>, vector<8x64xbf16>
    %cst = arith.constant dense<0.000000e+00> : vector<128x64xf32>
    %8 = tpu.matmul %6, %7, %cst {dimension_numbers = #tpu.dot_dimension_numbers<[1], [0], [0], [1], [0, 0, 1, 1], [], []>} : vector<128x8xbf16>, vector<8x64xbf16>, vector<128x64xf32> -> vector<128x64xf32>
    %c0_5 = arith.constant 0 : index
    %c0_6 = arith.constant 0 : index
    %9 = vector.load %arg4[%c0_5, %c0_6] : memref<1x64xf32, #tpu.memory_space<vmem>>, vector<1x64xf32>
    %10 = vector.broadcast %9 : vector<1x64xf32> to vector<128x64xf32>
    %11 = arith.addf %8, %10 : vector<128x64xf32>
    %cst_7 = arith.constant 0.000000e+00 : f32
    %12 = vector.broadcast %cst_7 : f32 to vector<128x64xf32>
    %13 = arith.maximumf %11, %12 : vector<128x64xf32>
    %14 = arith.truncf %13 : vector<128x64xf32> to vector<128x64xbf16>
    %c0_8 = arith.constant 0 : index
    %c0_9 = arith.constant 0 : index
    %15 = vector.load %arg5[%c0_8, %c0_9] : memref<64x64xbf16, #tpu.memory_space<vmem>>, vector<64x64xbf16>
    %cst_10 = arith.constant dense<0.000000e+00> : vector<128x64xf32>
    %16 = tpu.matmul %14, %15, %cst_10 {dimension_numbers = #tpu.dot_dimension_numbers<[1], [0], [0], [1], [0, 0, 1, 1], [], []>} : vector<128x64xbf16>, vector<64x64xbf16>, vector<128x64xf32> -> vector<128x64xf32>
    %c0_11 = arith.constant 0 : index
    %c0_12 = arith.constant 0 : index
    %17 = vector.load %arg6[%c0_11, %c0_12] : memref<1x64xf32, #tpu.memory_space<vmem>>, vector<1x64xf32>
    %18 = vector.broadcast %17 : vector<1x64xf32> to vector<128x64xf32>
    %19 = arith.addf %16, %18 : vector<128x64xf32>
    %cst_13 = arith.constant 0.000000e+00 : f32
    %20 = vector.broadcast %cst_13 : f32 to vector<128x64xf32>
    %21 = arith.maximumf %19, %20 : vector<128x64xf32>
    %22 = arith.truncf %21 : vector<128x64xf32> to vector<128x64xbf16>
    %c0_14 = arith.constant 0 : index
    %c0_15 = arith.constant 0 : index
    %23 = vector.load %arg7[%c0_14, %c0_15] : memref<64x64xbf16, #tpu.memory_space<vmem>>, vector<64x64xbf16>
    %cst_16 = arith.constant dense<0.000000e+00> : vector<128x64xf32>
    %24 = tpu.matmul %22, %23, %cst_16 {dimension_numbers = #tpu.dot_dimension_numbers<[1], [0], [0], [1], [0, 0, 1, 1], [], []>} : vector<128x64xbf16>, vector<64x64xbf16>, vector<128x64xf32> -> vector<128x64xf32>
    %c0_17 = arith.constant 0 : index
    %c0_18 = arith.constant 0 : index
    %25 = vector.load %arg8[%c0_17, %c0_18] : memref<1x64xf32, #tpu.memory_space<vmem>>, vector<1x64xf32>
    %26 = vector.broadcast %25 : vector<1x64xf32> to vector<128x64xf32>
    %27 = arith.addf %24, %26 : vector<128x64xf32>
    %cst_19 = arith.constant 0.000000e+00 : f32
    %28 = vector.broadcast %cst_19 : f32 to vector<128x64xf32>
    %29 = arith.maximumf %27, %28 : vector<128x64xf32>
    %30 = arith.truncf %29 : vector<128x64xf32> to vector<128x64xbf16>
    %c0_20 = arith.constant 0 : index
    %c0_21 = arith.constant 0 : index
    %31 = vector.load %arg9[%c0_20, %c0_21] : memref<64x128xbf16, #tpu.memory_space<vmem>>, vector<64x128xbf16>
    %cst_22 = arith.constant dense<0.000000e+00> : vector<128x128xf32>
    %32 = tpu.matmul %30, %31, %cst_22 {dimension_numbers = #tpu.dot_dimension_numbers<[1], [0], [0], [1], [0, 0, 1, 1], [], []>} : vector<128x64xbf16>, vector<64x128xbf16>, vector<128x128xf32> -> vector<128x128xf32>
    %c0_23 = arith.constant 0 : index
    %c0_24 = arith.constant 0 : index
    %33 = vector.load %arg10[%c0_23, %c0_24] : memref<1x128xf32, #tpu.memory_space<vmem>>, vector<1x128xf32>
    %34 = vector.broadcast %33 : vector<1x128xf32> to vector<128x128xf32>
    %35 = arith.addf %32, %34 : vector<128x128xf32>
    %cst_25 = arith.constant 0.000000e+00 : f32
    %36 = vector.broadcast %cst_25 : f32 to vector<128x128xf32>
    %37 = arith.maximumf %35, %36 : vector<128x128xf32>
    %38 = vector.shape_cast %37 : vector<128x128xf32> to vector<8x16x128xf32>
    %c0_26 = arith.constant 0 : index
    %c0_27 = arith.constant 0 : index
    %c0_28 = arith.constant 0 : index
    %39 = vector.load %arg21[%c0_26, %c0_27, %c0_28] : memref<8x16x128xf32, #tpu.memory_space<vmem>>, vector<8x16x128xf32>
    tpu.vector_store %arg21[%c0_26, %c0_27, %c0_28], %38 {strides = array<i32>} : memref<8x16x128xf32, #tpu.memory_space<vmem>>, vector<8x16x128xf32>,
    %c0_29 = arith.constant 0 : index
    %c0_30 = arith.constant 0 : index
    %40 = vector.load %arg11[%c0_29, %c0_30] : memref<128x1024xbf16, #tpu.memory_space<vmem>>, vector<128x1024xbf16>
    %c0_31 = arith.constant 0 : index
    %c0_32 = arith.constant 0 : index
    %41 = vector.load %arg12[%c0_31, %c0_32] : memref<1x1024xf32, #tpu.memory_space<vmem>>, vector<1x1024xf32>
    %c0_i32_33 = arith.constant 0 : i32
    %c16_i32 = arith.constant 16 : i32
    %42 = arith.muli %c0_i32_33, %c16_i32 : i32
    %43 = tpu.assume_multiple %42, 16 : i32
    %c0_34 = arith.constant 0 : index
    %44 = arith.index_cast %43 : i32 to index
    %c0_35 = arith.constant 0 : index
    %45 = vector.load %arg21[%c0_34, %44, %c0_35] : memref<8x16x128xf32, #tpu.memory_space<vmem>>, vector<8x16x128xf32>
    %46 = vector.shape_cast %45 : vector<8x16x128xf32> to vector<128x128xf32>
    %47 = arith.truncf %46 : vector<128x128xf32> to vector<128x128xbf16>
    %cst_36 = arith.constant dense<0.000000e+00> : vector<128x1024xf32>
    %48 = tpu.matmul %47, %40, %cst_36 {dimension_numbers = #tpu.dot_dimension_numbers<[1], [0], [0], [1], [0, 0, 1, 1], [], []>} : vector<128x128xbf16>, vector<128x1024xbf16>, vector<128x1024xf32> -> vector<128x1024xf32>
    %49 = vector.broadcast %41 : vector<1x1024xf32> to vector<128x1024xf32>
    %50 = arith.addf %48, %49 : vector<128x1024xf32>
    %cst_37 = arith.constant 0.000000e+00 : f32
    %51 = vector.broadcast %cst_37 : f32 to vector<128x1024xf32>
    %52 = arith.maximumf %50, %51 : vector<128x1024xf32>
    %53 = vector.shape_cast %52 : vector<128x1024xf32> to vector<8x16x1024xf32>
    %cst_38 = arith.constant dense<0xFF800000> : vector<8x1024xf32>
    %54 = vector.multi_reduction <maximumf>, %53, %cst_38 [1] : vector<8x16x1024xf32> to vector<8x1024xf32>
    %c0_39 = arith.constant 0 : index
    %c0_40 = arith.constant 0 : index
    %55 = vector.load %arg20[%c0_39, %c0_40] : memref<8x1024xf32, #tpu.memory_space<vmem>>, vector<8x1024xf32>
    %56 = arith.maximumf %55, %54 : vector<8x1024xf32>
    %c0_41 = arith.constant 0 : index
    %c0_42 = arith.constant 0 : index
    %57 = vector.load %arg20[%c0_41, %c0_42] : memref<8x1024xf32, #tpu.memory_space<vmem>>, vector<8x1024xf32>
    tpu.vector_store %arg20[%c0_41, %c0_42], %56 {strides = array<i32>} : memref<8x1024xf32, #tpu.memory_space<vmem>>, vector<8x1024xf32>,
    %c1_i32 = arith.constant 1 : i32
    %c0_i32_43 = arith.constant 0 : i32
    %58 = arith.cmpi eq, %arg1, %c0_i32_43 : i32
    %59 = arith.extui %58 : i1 to i32
    %c0_i32_44 = arith.constant 0 : i32
    %60 = arith.cmpi ne, %59, %c0_i32_44 : i32
    scf.if %60 {
      %c0_45 = arith.constant 0 : index
      %c0_46 = arith.constant 0 : index
      %61 = vector.load %arg20[%c0_45, %c0_46] : memref<8x1024xf32, #tpu.memory_space<vmem>>, vector<8x1024xf32>
      %62 = arith.truncf %61 : vector<8x1024xf32> to vector<8x1024xbf16>
      %c0_47 = arith.constant 0 : index
      %c0_48 = arith.constant 0 : index
      %63 = vector.load %arg13[%c0_47, %c0_48] : memref<1024x512xbf16, #tpu.memory_space<vmem>>, vector<1024x512xbf16>
      %cst_49 = arith.constant dense<0.000000e+00> : vector<8x512xf32>
      %64 = tpu.matmul %62, %63, %cst_49 {dimension_numbers = #tpu.dot_dimension_numbers<[1], [0], [0], [1], [0, 0, 1, 1], [], []>} : vector<8x1024xbf16>, vector<1024x512xbf16>, vector<8x512xf32> -> vector<8x512xf32>
      %c0_50 = arith.constant 0 : index
      %c0_51 = arith.constant 0 : index
      %65 = vector.load %arg14[%c0_50, %c0_51] : memref<1x512xf32, #tpu.memory_space<vmem>>, vector<1x512xf32>
      %66 = vector.broadcast %65 : vector<1x512xf32> to vector<8x512xf32>
      %67 = arith.addf %64, %66 : vector<8x512xf32>
      %cst_52 = arith.constant 0.000000e+00 : f32
      %68 = vector.broadcast %cst_52 : f32 to vector<8x512xf32>
      %69 = arith.maximumf %67, %68 : vector<8x512xf32>
      %70 = arith.truncf %69 : vector<8x512xf32> to vector<8x512xbf16>
      %c0_53 = arith.constant 0 : index
      %c0_54 = arith.constant 0 : index
      %71 = vector.load %arg15[%c0_53, %c0_54] : memref<512x256xbf16, #tpu.memory_space<vmem>>, vector<512x256xbf16>
      %cst_55 = arith.constant dense<0.000000e+00> : vector<8x256xf32>
      %72 = tpu.matmul %70, %71, %cst_55 {dimension_numbers = #tpu.dot_dimension_numbers<[1], [0], [0], [1], [0, 0, 1, 1], [], []>} : vector<8x512xbf16>, vector<512x256xbf16>, vector<8x256xf32> -> vector<8x256xf32>
      %c0_56 = arith.constant 0 : index
      %c0_57 = arith.constant 0 : index
      %73 = vector.load %arg16[%c0_56, %c0_57] : memref<1x256xf32, #tpu.memory_space<vmem>>, vector<1x256xf32>
      %74 = vector.broadcast %73 : vector<1x256xf32> to vector<8x256xf32>
      %75 = arith.addf %72, %74 : vector<8x256xf32>
      %cst_58 = arith.constant 0.000000e+00 : f32
      %76 = vector.broadcast %cst_58 : f32 to vector<8x256xf32>
      %77 = arith.maximumf %75, %76 : vector<8x256xf32>
      %78 = arith.truncf %77 : vector<8x256xf32> to vector<8x256xbf16>
      %c0_59 = arith.constant 0 : index
      %c0_60 = arith.constant 0 : index
      %79 = vector.load %arg17[%c0_59, %c0_60] : memref<256x128xbf16, #tpu.memory_space<vmem>>, vector<256x128xbf16>
      %cst_61 = arith.constant dense<0.000000e+00> : vector<8x128xf32>
      %80 = tpu.matmul %78, %79, %cst_61 {dimension_numbers = #tpu.dot_dimension_numbers<[1], [0], [0], [1], [0, 0, 1, 1], [], []>} : vector<8x256xbf16>, vector<256x128xbf16>, vector<8x128xf32> -> vector<8x128xf32>
      %c0_62 = arith.constant 0 : index
      %c0_63 = arith.constant 0 : index
      %81 = vector.load %arg18[%c0_62, %c0_63] : memref<1x128xf32, #tpu.memory_space<vmem>>, vector<1x128xf32>
      %82 = vector.broadcast %81 : vector<1x128xf32> to vector<8x128xf32>
      %83 = arith.addf %80, %82 : vector<8x128xf32>
      %c0_64 = arith.constant 0 : index
      %c0_65 = arith.constant 0 : index
      %84 = vector.load %arg19[%c0_64, %c0_65] : memref<8x128xf32, #tpu.memory_space<vmem>>, vector<8x128xf32>
      tpu.vector_store %arg19[%c0_64, %c0_65], %83 {strides = array<i32>} : memref<8x128xf32, #tpu.memory_space<vmem>>, vector<8x128xf32>,
    } else {
    }
    return
  }
  func.func @transform_0(%arg0: i32, %arg1: i32) -> (i32, i32, i32) {
    %c0_i32 = arith.constant 0 : i32
    %c0_i32_0 = arith.constant 0 : i32
    return %arg0, %c0_i32, %arg1 : i32, i32, i32
  }
  func.func @transform_1(%arg0: i32, %arg1: i32) -> (i32, i32) {
    %c0_i32 = arith.constant 0 : i32
    %c0_i32_0 = arith.constant 0 : i32
    %c0_i32_1 = arith.constant 0 : i32
    return %c0_i32, %c0_i32_0 : i32, i32
  }
  func.func @transform_2(%arg0: i32, %arg1: i32) -> (i32, i32) {
    %c0_i32 = arith.constant 0 : i32
    %c0_i32_0 = arith.constant 0 : i32
    %c0_i32_1 = arith.constant 0 : i32
    return %c0_i32, %c0_i32_0 : i32, i32
  }
  func.func @transform_3(%arg0: i32, %arg1: i32) -> (i32, i32) {
    %c0_i32 = arith.constant 0 : i32
    %c0_i32_0 = arith.constant 0 : i32
    %c0_i32_1 = arith.constant 0 : i32
    return %c0_i32, %c0_i32_0 : i32, i32
  }
  func.func @transform_4(%arg0: i32, %arg1: i32) -> (i32, i32) {
    %c0_i32 = arith.constant 0 : i32
    %c0_i32_0 = arith.constant 0 : i32
    %c0_i32_1 = arith.constant 0 : i32
    return %c0_i32, %c0_i32_0 : i32, i32
  }
  func.func @transform_5(%arg0: i32, %arg1: i32) -> (i32, i32) {
    %c0_i32 = arith.constant 0 : i32
    %c0_i32_0 = arith.constant 0 : i32
    %c0_i32_1 = arith.constant 0 : i32
    return %c0_i32, %c0_i32_0 : i32, i32
  }
  func.func @transform_6(%arg0: i32, %arg1: i32) -> (i32, i32) {
    %c0_i32 = arith.constant 0 : i32
    %c0_i32_0 = arith.constant 0 : i32
    %c0_i32_1 = arith.constant 0 : i32
    return %c0_i32, %c0_i32_0 : i32, i32
  }
  func.func @transform_7(%arg0: i32, %arg1: i32) -> (i32, i32) {
    %c0_i32 = arith.constant 0 : i32
    %c0_i32_0 = arith.constant 0 : i32
    %c0_i32_1 = arith.constant 0 : i32
    return %c0_i32, %c0_i32_0 : i32, i32
  }
  func.func @transform_8(%arg0: i32, %arg1: i32) -> (i32, i32) {
    %c0_i32 = arith.constant 0 : i32
    %c0_i32_0 = arith.constant 0 : i32
    %c0_i32_1 = arith.constant 0 : i32
    return %c0_i32, %c0_i32_0 : i32, i32
  }
  func.func @transform_9(%arg0: i32, %arg1: i32) -> (i32, i32) {
    %c0_i32 = arith.constant 0 : i32
    %c0_i32_0 = arith.constant 0 : i32
    %c0_i32_1 = arith.constant 0 : i32
    return %c0_i32, %c0_i32_0 : i32, i32
  }
  func.func @transform_10(%arg0: i32, %arg1: i32) -> (i32, i32) {
    %c0_i32 = arith.constant 0 : i32
    %c0_i32_0 = arith.constant 0 : i32
    %c0_i32_1 = arith.constant 0 : i32
    return %c0_i32, %c0_i32_0 : i32, i32
  }
  func.func @transform_11(%arg0: i32, %arg1: i32) -> (i32, i32) {
    %c0_i32 = arith.constant 0 : i32
    %c0_i32_0 = arith.constant 0 : i32
    %c0_i32_1 = arith.constant 0 : i32
    return %c0_i32, %c0_i32_0 : i32, i32
  }
  func.func @transform_12(%arg0: i32, %arg1: i32) -> (i32, i32) {
    %c0_i32 = arith.constant 0 : i32
    %c0_i32_0 = arith.constant 0 : i32
    %c0_i32_1 = arith.constant 0 : i32
    return %c0_i32, %c0_i32_0 : i32, i32
  }
  func.func @transform_13(%arg0: i32, %arg1: i32) -> (i32, i32) {
    %c0_i32 = arith.constant 0 : i32
    %c0_i32_0 = arith.constant 0 : i32
    %c0_i32_1 = arith.constant 0 : i32
    return %c0_i32, %c0_i32_0 : i32, i32
  }
  func.func @transform_14(%arg0: i32, %arg1: i32) -> (i32, i32) {
    %c0_i32 = arith.constant 0 : i32
    %c0_i32_0 = arith.constant 0 : i32
    %c0_i32_1 = arith.constant 0 : i32
    return %c0_i32, %c0_i32_0 : i32, i32
  }
  func.func @transform_15(%arg0: i32, %arg1: i32) -> (i32, i32) {
    %c0_i32 = arith.constant 0 : i32
    %c0_i32_0 = arith.constant 0 : i32
    %c0_i32_1 = arith.constant 0 : i32
    return %c0_i32, %c0_i32_0 : i32, i32
  }
  func.func @transform_16(%arg0: i32, %arg1: i32) -> (i32, i32) {
    %c0_i32 = arith.constant 0 : i32
    %c0_i32_0 = arith.constant 0 : i32
    %c0_i32_1 = arith.constant 0 : i32
    return %c0_i32, %c0_i32_0 : i32, i32
  }
  func.func @transform_17(%arg0: i32, %arg1: i32) -> (i32, i32) {
    %c0_i32 = arith.constant 0 : i32
    %c0_i32_0 = arith.constant 0 : i32
    return %arg0, %c0_i32 : i32, i32
  }
}

</mosaic_0001>

<bundles_post_ra>
// kernel: tpu_custom_call.1
= control target key start
LH: loop header
LB: loop body
LE: loop exit
PB: predicated region body
PF: predicated region fallthrough
CT: control target
= control target key end

     0   :  { %s8073_s0 = inlined_call_operand.hbm [shape: f32[8,8,16], index: 0, kind: input, shape index: {}]   ;;  %s8074_s1 = inlined_call_operand.hbm [shape: bf16[8,64], index: 1, kind: input, shape index: {}]   ;;  %s8075_s2 = inlined_call_operand.vmem [shape: f32[1,64], index: 2, kind: input, shape index: {}]   ;;  %s8076_s3 = inlined_call_operand.hbm [shape: bf16[64,64], index: 3, kind: input, shape index: {}]   ;;  %s8077_s4 = inlined_call_operand.hbm [shape: f32[1,64], index: 4, kind: input, shape index: {}]   ;;  %s8078_s5 = inlined_call_operand.hbm [shape: bf16[64,64], index: 5, kind: input, shape index: {}]   ;;  %s8079_s6 = inlined_call_operand.vmem [shape: f32[1,64], index: 6, kind: input, shape index: {}]   ;;  %s8080_s7 = inlined_call_operand.hbm [shape: bf16[64,128], index: 7, kind: input, shape index: {}]   ;;  %s8081_s8 = inlined_call_operand.vmem [shape: f32[1,128], index: 8, kind: input, shape index: {}]   ;;  %s8082_s9 = inlined_call_operand.hbm [shape: bf16[128,1024], index: 9, kind: input, shape index: {}]   ;;  %s8083_s10 = inlined_call_operand.vmem [shape: f32[1,1024], index: 10, kind: input, shape index: {}]   ;;  %s8084_s11 = inlined_call_operand.hbm [shape: bf16[1024,512], index: 11, kind: input, shape index: {}]   ;;  %s8085_s12 = inlined_call_operand.vmem [shape: f32[1,512], index: 12, kind: input, shape index: {}]   ;;  %s8086_s13 = inlined_call_operand.hbm [shape: bf16[512,256], index: 13, kind: input, shape index: {}]   ;;  %s8087_s14 = inlined_call_operand.vmem [shape: f32[1,256], index: 14, kind: input, shape index: {}]   ;;  %s8088_s15 = inlined_call_operand.hbm [shape: bf16[256,128], index: 15, kind: input, shape index: {}]   ;;  %s8089_s16 = inlined_call_operand.vmem [shape: f32[1,128], index: 16, kind: input, shape index: {}]   ;;  %s8090_s17 = inlined_call_operand.hbm [shape: f32[8,128], index: 17, kind: output, shape index: {}]  }
   0x1   :  { %8103 = sst [smem:[#allocation54_spill]] %s8073_s0 }
   0x2   :  { %8104 = sst [smem:[#allocation55_spill]] %s8074_s1 }
   0x3   :  { %22 = vsyncpa [#allocation5], 0 }
   0x4   :  { %23 = vsyncpa [#allocation8], 0 }
   0x5   :  { %24 = vsyncpa [#allocation11], 0 }
   0x6   :  { %25 = vsyncpa [#allocation14], 0 }
   0x7   :  { %26 = vsyncpa [#allocation17], 0 }
   0x8   :  { %27 = vsyncpa [#allocation20], 0 }
   0x9   :  { %28 = vsyncpa [#allocation6], 0  ;;  %s6895_s24 = smov [#allocation7]   ;;  %s6896_s26 = smov [#allocation10]  }
   0xa   :  { %s47_s25 = sshll.u32 %s6895_s24, 4  ;;  %s71_s27 = sshll.u32 %s6896_s26, 4  ;;  %s48_s25 = int_to_ptr.vmem [resolvable:$true] %s47_s25  ;;  %s72_s27 = int_to_ptr.vmem [resolvable:$true] %s71_s27 }
   0xb   :  { %s8105_s0 = sld [smem:[#allocation55_spill]] }
  0x11   :  { %s6639_s30 = scalar_lea.hbm %s8105_s0, 64 }
  0x12   :  { %p6640_p0 = scmp.ne.s32.totalorder %s8105_s0, %s6639_s30  ;;  %p6643_p1 = scmp.lt.u32.totalorder %s6639_s30, %s8105_s0 }
  0x14   :  { %p6645_p2 = pnand %p6643_p1, %p6640_p0 }
  0x16   :  { %6648 = shalt.err (!%p6645_p2)
}
  0x17   :  { %s6649_s21 = scalar_lea.vmem %s48_s25, 64  ;;  %p6654_p4 = scmp.lt.s32.totalorder %s48_s25, %s48_s25 }
  0x18   :  { %p6650_p3 = scmp.ne.s32.totalorder %s48_s25, %s6649_s21  ;;  %p6655_p5 = scmp.lt.s32.totalorder %s6649_s21, %s6649_s21 }
  0x1a   :  { %p6656_p6 = por %p6655_p5, %p6654_p4 }
  0x1c   :  { %p6657_p7 = pnand %p6656_p6, %p6650_p3 }
  0x1e   :  { %6660 = shalt.err (!%p6657_p7)
}
  0x1f   :  { %50 = dma.hbm_to_vmem [thread:$0]  %s8105_s0, 64, %s48_s25, [#allocation8]  }
  0x20   :  { %s6661_s28 = scalar_lea.hbm %s8077_s4, 16 }
  0x21   :  { %p6662_p8 = scmp.ne.s32.totalorder %s8077_s4, %s6661_s28  ;;  %p6665_p9 = scmp.lt.u32.totalorder %s6661_s28, %s8077_s4 }
  0x23   :  { %p6667_p10 = pnand %p6665_p9, %p6662_p8 }
  0x25   :  { %6670 = shalt.err (!%p6667_p10)
}
  0x26   :  { %s6671_s1 = scalar_lea.vmem %s72_s27, 16  ;;  %s6675_s20 = scalar_lea.vmem %s72_s27, 32 }
  0x27   :  { %p6672_p11 = scmp.ne.s32.totalorder %s72_s27, %s6671_s1  ;;  %p6676_p12 = scmp.lt.s32.totalorder %s72_s27, %s72_s27 }
  0x28   :  { %p6677_p13 = scmp.lt.s32.totalorder %s6675_s20, %s6671_s1 }
  0x2a   :  { %p6678_p0 = por %p6677_p13, %p6676_p12 }
  0x2c   :  { %p6679_p1 = pnand %p6678_p0, %p6672_p11 }
  0x2e   :  { %6682 = shalt.err (!%p6679_p1)
}
  0x2f   :  { %74 = dma.hbm_to_vmem [thread:$0]  %s8077_s4, 16, %s72_s27, [#allocation11]  }
  0x30   :  { %s6897_s21 = smov [#allocation13]   ;;  %s6898_s23 = smov [#allocation16]  }
  0x31   :  { %s94_s22 = sshll.u32 %s6897_s21, 4  ;;  %s122_s24 = sshll.u32 %s6898_s23, 4  ;;  %s95_s22 = int_to_ptr.vmem [resolvable:$true] %s94_s22  ;;  %s7029_s24 = int_to_ptr.vmem [resolvable:$true] %s122_s24 }
  0x32   :  { %s6683_s29 = scalar_lea.hbm %s8080_s7, 512 }
  0x33   :  { %p6684_p2 = scmp.ne.s32.totalorder %s8080_s7, %s6683_s29  ;;  %p6687_p3 = scmp.lt.u32.totalorder %s6683_s29, %s8080_s7 }
  0x35   :  { %p6689_p4 = pnand %p6687_p3, %p6684_p2 }
  0x37   :  { %6692 = shalt.err (!%p6689_p4)
}
  0x38   :  { %s6693_s4 = scalar_lea.vmem %s95_s22, 512  ;;  %p6698_p6 = scmp.lt.s32.totalorder %s95_s22, %s95_s22 }
  0x39   :  { %p6694_p5 = scmp.ne.s32.totalorder %s95_s22, %s6693_s4  ;;  %p6699_p7 = scmp.lt.s32.totalorder %s6693_s4, %s6693_s4 }
  0x3b   :  { %p6700_p8 = por %p6699_p7, %p6698_p6 }
  0x3d   :  { %p6701_p9 = pnand %p6700_p8, %p6694_p5 }
  0x3f   :  { %6704 = shalt.err (!%p6701_p9)
}
  0x40   :  { %s8093_s27 = smov 64   ;;  %s6900_s20 = smov 4  }
  0x41   :  { %100 = dma.hbm_to_vmem [thread:$0]  %s8080_s7, 512, %s95_s22, [#allocation14], %s8093_s27, %s8093_s27, %s6900_s20  }
  0x42   :  { %s6705_s26 = scalar_lea.hbm %s8084_s11, 32768 }
  0x43   :  { %p6706_p10 = scmp.ne.s32.totalorder %s8084_s11, %s6705_s26  ;;  %p6709_p11 = scmp.lt.u32.totalorder %s6705_s26, %s8084_s11 }
  0x45   :  { %p6711_p12 = pnand %p6709_p11, %p6706_p10 }
  0x47   :  { %6714 = shalt.err (!%p6711_p12)
}
  0x48   :  { %s6715_s19 = scalar_lea.vmem %s7029_s24, 32768  ;;  %p6720_p0 = scmp.lt.s32.totalorder %s7029_s24, %s7029_s24 }
  0x49   :  { %p6716_p13 = scmp.ne.s32.totalorder %s7029_s24, %s6715_s19  ;;  %p6721_p1 = scmp.lt.s32.totalorder %s6715_s19, %s6715_s19 }
  0x4b   :  { %p6722_p2 = por %p6721_p1, %p6720_p0 }
  0x4d   :  { %p6723_p3 = pnand %p6722_p2, %p6716_p13 }
  0x4f   :  { %6726 = shalt.err (!%p6723_p3)
}
  0x50   :  { %s6901_s7 = smov 256   ;;  %s6902_s22 = smov 16  }
  0x51   :  { %128 = dma.hbm_to_vmem [thread:$0]  %s8084_s11, 32768, %s7029_s24, [#allocation17], %s6901_s7, %s6901_s7, %s6902_s22  }
  0x52   :  { %s6903_s25 = smov [#allocation4]   ;;  %s8106_s26 = sld [smem:[#allocation54_spill]] }
  0x53   :  { %s34_s0 = sshll.u32 %s6903_s25, 4  ;;  %s35_s0 = int_to_ptr.vmem [resolvable:$true] %s34_s0 }
  0x58   :  { %s6727_s28 = scalar_lea.hbm %s8106_s26, 1024 }
  0x59   :  { %p6728_p4 = scmp.ne.s32.totalorder %s8106_s26, %s6727_s28  ;;  %p6731_p5 = scmp.lt.u32.totalorder %s6727_s28, %s8106_s26 }
  0x5b   :  { %p6733_p6 = pnand %p6731_p5, %p6728_p4 }
  0x5d   :  { %6736 = shalt.err (!%p6733_p6)
}
  0x5e   :  { %s6737_s27 = scalar_lea.vmem %s35_s0, 1024  ;;  %p6742_p8 = scmp.lt.s32.totalorder %s35_s0, %s35_s0 }
  0x5f   :  { %p6738_p7 = scmp.ne.s32.totalorder %s35_s0, %s6737_s27  ;;  %p6743_p9 = scmp.lt.s32.totalorder %s6737_s27, %s6737_s27 }
  0x61   :  { %p6744_p10 = por %p6743_p9, %p6742_p8 }
  0x63   :  { %p6745_p11 = pnand %p6744_p10, %p6738_p7 }
  0x65   :  { %6748 = shalt.err (!%p6745_p11)
}
  0x66   :  { %s6904_s11 = smov 128   ;;  %s6905_s24 = smov 8  }
  0x67   :  { %40 = dma.hbm_to_vmem [thread:$0]  %s8106_s26, 1024, %s35_s0, [#allocation5], %s6904_s11, %s6904_s11, %s6905_s24  }
  0x68   :  { %s6906_s1 = smov [#allocation9]   ;;  %s6907_s25 = smov [#allocation12]  }
  0x69   :  { %s58_s4 = sshll.u32 %s6906_s1, 4  ;;  %s80_s21 = sshll.u32 %s6907_s25, 4  ;;  %s59_s4 = int_to_ptr.vmem [resolvable:$true] %s58_s4  ;;  %s81_s21 = int_to_ptr.vmem [resolvable:$true] %s80_s21 }
  0x6a   :  { %s6749_s27 = scalar_lea.hbm %s8076_s3, 512 }
  0x6b   :  { %p6750_p12 = scmp.ne.s32.totalorder %s8076_s3, %s6749_s27  ;;  %p6753_p13 = scmp.lt.u32.totalorder %s6749_s27, %s8076_s3 }
  0x6d   :  { %p6755_p0 = pnand %p6753_p13, %p6750_p12 }
  0x6f   :  { %6758 = shalt.err (!%p6755_p0)
}
  0x70   :  { %s6759_s0 = scalar_lea.vmem %s59_s4, 512  ;;  %p6764_p2 = scmp.lt.s32.totalorder %s59_s4, %s59_s4 }
  0x71   :  { %p6760_p1 = scmp.ne.s32.totalorder %s59_s4, %s6759_s0  ;;  %p6765_p3 = scmp.lt.s32.totalorder %s6759_s0, %s6759_s0 }
  0x73   :  { %p6766_p4 = por %p6765_p3, %p6764_p2 }
  0x75   :  { %p6767_p5 = pnand %p6766_p4, %p6760_p1 }
  0x77   :  { %6770 = shalt.err (!%p6767_p5)
}
  0x78   :  { %s8107_s26 = smov 64   ;;  %s6771_s23 = scalar_lea.hbm %s8078_s5, 512 }
  0x79   :  { %64 = dma.hbm_to_vmem [thread:$0]  %s8076_s3, 512, %s59_s4, [#allocation8], %s8107_s26, %s8107_s26, %s6900_s20  }
  0x7a   :  { %p6772_p6 = scmp.ne.s32.totalorder %s8078_s5, %s6771_s23  ;;  %p6775_p7 = scmp.lt.u32.totalorder %s6771_s23, %s8078_s5 }
  0x7c   :  { %p6777_p8 = pnand %p6775_p7, %p6772_p6 }
  0x7e   :  { %6780 = shalt.err (!%p6777_p8)
}
  0x7f   :  { %s6781_s30 = scalar_lea.vmem %s81_s21, 512  ;;  %p6786_p10 = scmp.lt.s32.totalorder %s81_s21, %s81_s21 }
  0x80   :  { %p6782_p9 = scmp.ne.s32.totalorder %s81_s21, %s6781_s30  ;;  %p6787_p11 = scmp.lt.s32.totalorder %s6781_s30, %s6781_s30 }
  0x82   :  { %p6788_p12 = por %p6787_p11, %p6786_p10 }
  0x84   :  { %p6789_p13 = pnand %p6788_p12, %p6782_p9 }
  0x86   :  { %6792 = shalt.err (!%p6789_p13)
}
  0x87   :  { %86 = dma.hbm_to_vmem [thread:$0]  %s8078_s5, 512, %s81_s21, [#allocation11], %s8107_s26, %s8107_s26, %s6900_s20  }
  0x88   :  { %s6908_s19 = smov [#allocation15]   ;;  %s6793_s1 = scalar_lea.hbm %s8082_s9, 8192 }
  0x89   :  { %s108_s0 = sshll.u32 %s6908_s19, 4  ;;  %p6794_p0 = scmp.ne.s32.totalorder %s8082_s9, %s6793_s1  ;;  %s109_s0 = int_to_ptr.vmem [resolvable:$true] %s108_s0 }
  0x8a   :  { %p6797_p1 = scmp.lt.u32.totalorder %s6793_s1, %s8082_s9 }
  0x8c   :  { %p6799_p2 = pnand %p6797_p1, %p6794_p0 }
  0x8e   :  { %6802 = shalt.err (!%p6799_p2)
}
  0x8f   :  { %s6803_s29 = scalar_lea.vmem %s109_s0, 8192  ;;  %p6808_p4 = scmp.lt.s32.totalorder %s109_s0, %s109_s0 }
  0x90   :  { %p6804_p3 = scmp.ne.s32.totalorder %s109_s0, %s6803_s29  ;;  %p6809_p5 = scmp.lt.s32.totalorder %s6803_s29, %s6803_s29 }
  0x92   :  { %p6810_p6 = por %p6809_p5, %p6808_p4 }
  0x94   :  { %p6811_p7 = pnand %p6810_p6, %p6804_p3 }
  0x96   :  { %6814 = shalt.err (!%p6811_p7)
}
  0x97   :  { %s6909_s5 = smov 512   ;;  %s6910_s21 = smov 32  }
  0x98   :  { %114 = dma.hbm_to_vmem [thread:$0]  %s8082_s9, 8192, %s109_s0, [#allocation14], %s6909_s5, %s6909_s5, %s6910_s21  }
  0x99   :  { %s6911_s3 = smov [#allocation18]   ;;  %s6912_s19 = smov [#allocation19]  }
  0x9a   :  { %s136_s4 = sshll.u32 %s6911_s3, 4  ;;  %s150_s7 = sshll.u32 %s6912_s19, 4  ;;  %s137_s4 = int_to_ptr.vmem [resolvable:$true] %s136_s4  ;;  %s7120_s7 = int_to_ptr.vmem [resolvable:$true] %s150_s7 }
  0x9b   :  { %s6815_s25 = scalar_lea.hbm %s8086_s13, 8192 }
  0x9c   :  { %p6816_p8 = scmp.ne.s32.totalorder %s8086_s13, %s6815_s25  ;;  %p6819_p9 = scmp.lt.u32.totalorder %s6815_s25, %s8086_s13 }
  0x9e   :  { %p6821_p10 = pnand %p6819_p9, %p6816_p8 }
  0xa0   :  { %6824 = shalt.err (!%p6821_p10)
}
  0xa1   :  { %s6825_s9 = scalar_lea.vmem %s137_s4, 8192  ;;  %p6830_p12 = scmp.lt.s32.totalorder %s137_s4, %s137_s4 }
  0xa2   :  { %p6826_p11 = scmp.ne.s32.totalorder %s137_s4, %s6825_s9  ;;  %p6831_p13 = scmp.lt.s32.totalorder %s6825_s9, %s6825_s9 }
  0xa4   :  { %p6832_p0 = por %p6831_p13, %p6830_p12 }
  0xa6   :  { %p6833_p1 = pnand %p6832_p0, %p6826_p11 }
  0xa8   :  { %6836 = shalt.err (!%p6833_p1)
}
  0xa9   :  { %142 = dma.hbm_to_vmem [thread:$0]  %s8086_s13, 8192, %s137_s4, [#allocation17], %s6904_s11, %s6904_s11, %s6905_s24  }
  0xaa   :  { %s6837_s30 = scalar_lea.hbm %s8088_s15, 2048 }
  0xab   :  { %p6838_p2 = scmp.ne.s32.totalorder %s8088_s15, %s6837_s30  ;;  %p6841_p3 = scmp.lt.u32.totalorder %s6837_s30, %s8088_s15 }
  0xad   :  { %p6843_p4 = pnand %p6841_p3, %p6838_p2 }
  0xaf   :  { %6846 = shalt.err (!%p6843_p4)
}
  0xb0   :  { %s6847_s25 = scalar_lea.vmem %s7120_s7, 2048  ;;  %p6852_p6 = scmp.lt.s32.totalorder %s7120_s7, %s7120_s7 }
  0xb1   :  { %p6848_p5 = scmp.ne.s32.totalorder %s7120_s7, %s6847_s25  ;;  %p6853_p7 = scmp.lt.s32.totalorder %s6847_s25, %s6847_s25 }
  0xb3   :  { %p6854_p8 = por %p6853_p7, %p6852_p6 }
  0xb5   :  { %p6855_p9 = pnand %p6854_p8, %p6848_p5 }
  0xb7   :  { %6858 = shalt.err (!%p6855_p9)
}
  0xb8   :  { %156 = dma.hbm_to_vmem [thread:$0]  %s8088_s15, 2048, %s7120_s7, [#allocation20], %s8107_s26, %s8107_s26, %s6900_s20  }
  0xb9   :  { %6881 = dma.done.wait [#allocation5], 1024  }
  0xba   :  { %6882 = vsyncadd [#allocation5], 4294966272 }
  0xbb   :  { %6883 = dma.done.wait [#allocation8], 576  }
  0xbc   :  { %6884 = vsyncadd [#allocation8], 4294966720 }
  0xbd   :  { %6885 = dma.done.wait [#allocation11], 528  }
  0xbe   :  { %6886 = vsyncadd [#allocation11], 4294966768 }
  0xbf   :  { %6887 = dma.done.wait [#allocation14], 8704  }
  0xc0   :  { %6888 = vsyncadd [#allocation14], 4294958592 }
  0xc1   :  { %6889 = dma.done.wait [#allocation17], 40960  }
  0xc2   :  { %6890 = vsyncadd [#allocation17], 4294926336 }
  0xc3   :  { %6891 = dma.done.wait [#allocation20], 2048  }
  0xc4   :  { %6892 = vsyncadd [#allocation20], 4294965248  ;;  %v202_v0 = vld [vmem:[#allocation4] sm:$0xff]  ;;  %v203_v1 = vld [vmem:[#allocation4 + $0x8] sm:$0xff]  ;;  %vm507_vm0 = vcmask 1043456   ;;  %vm482_vm1 = vcmask 64512  }
  0xc5   :  { %v204_v2 = vld [vmem:[#allocation4 + $0x10] sm:$0xff]  ;;  %v6083_v3 = vpack.i.bf16 %v203_v1, %v202_v0  ;;  %v205_v4 = vld [vmem:[#allocation4 + $0x18] sm:$0xff]  ;;  %v206_v5 = vld [vmem:[#allocation4 + $0x20] sm:$0xff]  ;;  %vm671_vm2 = vcmask 523264   ;;  %vm2743_vm3 = vcmask 1041409   ;;  %vm2745_vm4 = vcmask 1042434  }
  0xc6   :  { %v207_v6 = vld [vmem:[#allocation4 + $0x28] sm:$0xff]  ;;  %v208_v8 = vld [vmem:[#allocation4 + $0x30] sm:$0xff]  ;;  %v209_v9 = vld [vmem:[#allocation4 + $0x38] sm:$0xff]  ;;  %v6095_v10 = vpack.i.bf16 %v205_v4, %v204_v2  ;;  %vm2747_vm5 = vcmask 1043459   ;;  %vm2749_vm6 = vcmask 1044484   ;;  %vm2751_vm7 = vcmask 1045509  }
  0xc7   :  { %v6107_v7 = vpack.i.bf16 %v207_v6, %v206_v5  ;;  %6084 = vxpose.xlu0.b32.start.end [1/1] (short) (narrow) %v6083_v3, 16  ;;  %v6119_v11 = vpack.i.bf16 %v209_v9, %v208_v8  ;;  %v474_v12 = vld [vmem:[#allocation7] sm:$0xf]  ;;  %v6131_v14 = vld [vmem:[#allocation9] sm:$0xff]   ;;  %v6132_v15 = vld [vmem:[#allocation9 + $0x8] sm:$0xff]   ;;  %vm2753_vm8 = vcmask 1046534  }
  0xc8   :  { %6061 = vmatprep.subr.msk.bf16.mxu0 %vm507_vm0, %v474_v12  ;;  %v509_v13 = vsel %vm507_vm0, %v474_v12, 0  ;;  %5955 = vmatprep.subr.bf16.mxu1 %v6131_v14  ;;  %v6133_v48 = vld [vmem:[#allocation9 + $0x10] sm:$0xff]   ;;  %v6134_v49 = vld [vmem:[#allocation9 + $0x18] sm:$0xff]   ;;  %v6135_v50 = vld [vmem:[#allocation12] sm:$0xff]   ;;  %vm2755_vm9 = vcmask 1047559  }
  0xc9   :  { %6108 = vxpose.xlu1.b32.start.end [1/1] (short) (narrow) %v6107_v7, 16  ;;  %5938 = vmatpush3.bf16.msra.mxu0 %v509_v13  ;;  %v7168_v51 = vld [vmem:[%s8075_s2] ss:$0 sm:$0xff]  ;;  %v6136_v5 = vld [vmem:[#allocation12 + $0x8] sm:$0xff]  }
  0xca   :  { %5956 = vmatpush3.bf16.msra.mxu1 %v6131_v14  ;;  %v6137_v14 = vld [vmem:[#allocation12 + $0x10] sm:$0xff]  }
  0xcb   :  { %5957 = vmatprep.subr.bf16.mxu1 %v6132_v15 }
  0xcc   :  { %6096 = vxpose.xlu0.b32.start.end [1/1] (short) (narrow) %v6095_v10, 16 }
  0xce   :  { %6120 = vxpose.xlu1.b32.start.end [1/1] (short) (narrow) %v6119_v11, 16  ;;  %5958 = vmatpush3.bf16.msra.mxu1 %v6132_v15 }
  0xcf   :  { %5959 = vmatprep.subr.bf16.mxu1 %v6133_v48 }
  0xd2   :  { %5960 = vmatpush3.bf16.msra.mxu1 %v6133_v48  ;;  %v7194_v48 = vld [vmem:[#allocation10] ss:$0 sm:$0xff] }
  0xd3   :  { %5961 = vmatprep.subr.bf16.mxu1 %v6134_v49 }
  0xd6   :  { %5962 = vmatpush3.bf16.msra.mxu1 %v6134_v49 }
  0xd7   :  { %5979 = vmatprep.subr.bf16.mxu1 %v6135_v50 }
 0x147   :  { %v6085_v16 = vpop.trf.xlu0 }
 0x148   :  { %v6089_v18 = vunpack.i.h.bf16 %v6085_v16  ;;  %v6086_v20 = vunpack.i.l.bf16 %v6085_v16 }
 0x149   :  { %v6109_v17 = vpop.trf.xlu1 }
 0x14a   :  { %v6110_v30 = vunpack.i.l.bf16 %v6109_v17  ;;  %v6113_v39 = vunpack.i.h.bf16 %v6109_v17 }
 0x14b   :  { %v6090_v19 = vpop.trf.xlu0 }
 0x14c   :  { %v6094_v21 = vunpack.i.h.bf16 %v6090_v19  ;;  %v6091_v22 = vunpack.i.l.bf16 %v6090_v19 }
 0x14d   :  { %v6114_v23 = vpop.trf.xlu1 }
 0x14e   :  { %v466_v24 = vpack.c.bf16 %v6091_v22, %v6086_v20  ;;  %v467_v25 = vpack.c.bf16 %v6094_v21, %v6089_v18  ;;  %v6115_v31 = vunpack.i.l.bf16 %v6114_v23  ;;  %v6118_v40 = vunpack.i.h.bf16 %v6114_v23 }
 0x14f   :  { %v6097_v26 = vpop.trf.xlu0 }
 0x150   :  { %5939 = vmatprep.mubr.msk.bf16.mxu0 %vm482_vm1, %v466_v24  ;;  %v6101_v28 = vunpack.i.h.bf16 %v6097_v26  ;;  %v6098_v29 = vunpack.i.l.bf16 %v6097_v26  ;;  %v470_v38 = vpack.c.bf16 %v6115_v31, %v6110_v30  ;;  %v471_v43 = vpack.c.bf16 %v6118_v40, %v6113_v39 }
 0x151   :  { %v6121_v27 = vpop.trf.xlu1  ;;  %5940 = vmatmul.mubr.msk.bf16.vlgmr.msra.gmra.mrb[0].mxu0 %vm482_vm1, %v467_v25 }
 0x152   :  { %v6122_v41 = vunpack.i.l.bf16 %v6121_v27  ;;  %v6125_v45 = vunpack.i.h.bf16 %v6121_v27 }
 0x153   :  { %v6102_v32 = vpop.trf.xlu0 }
 0x154   :  { %v6106_v33 = vunpack.i.h.bf16 %v6102_v32  ;;  %v6103_v34 = vunpack.i.l.bf16 %v6102_v32 }
 0x155   :  { %v6126_v35 = vpop.trf.xlu1 }
 0x156   :  { %v468_v36 = vpack.c.bf16 %v6103_v34, %v6098_v29  ;;  %v469_v37 = vpack.c.bf16 %v6106_v33, %v6101_v28  ;;  %v6127_v42 = vunpack.i.l.bf16 %v6126_v35  ;;  %v6130_v46 = vunpack.i.h.bf16 %v6126_v35 }
 0x158   :  { %5943 = vmatprep.mubr.msk.bf16.mxu0 %vm482_vm1, %v468_v36  ;;  %v472_v44 = vpack.c.bf16 %v6127_v42, %v6122_v41  ;;  %v473_v47 = vpack.c.bf16 %v6130_v46, %v6125_v45  ;;  %v6138_v46 = vld [vmem:[#allocation12 + $0x18] sm:$0xff]  }
 0x159   :  { %5944 = vmatmul.mubr.msk.bf16.gmra.mrb[4].mxu0 %vm482_vm1, %v469_v37 }
 0x15a   :  { %5947 = vmatprep.mubr.msk.bf16.mxu0 %vm482_vm1, %v470_v38 }
 0x161   :  { %5948 = vmatmul.mubr.msk.bf16.gmra.mrb[8].mxu0 %vm482_vm1, %v471_v43 }
 0x162   :  { %5951 = vmatprep.mubr.msk.bf16.mxu0 %vm482_vm1, %v472_v44 }
 0x169   :  { %5952 = vmatmul.mubr.msk.bf16.gmra.mrb[12].mxu0 %vm482_vm1, %v473_v47  ;;  %v6139_v47 = vld [vmem:[#allocation13] sm:$0xff]  }
 0x224   :  { %v5941_v52 = vpop.f32.mrb[0].mxu0 }
 0x225   :  { %v554_v53 = vadd.f32 %v5941_v52, %v7168_v51  ;;  %v545_v54 = vpop.f32.mrb[1].mxu0 }
 0x226   :  { %v546_v55 = vadd.f32 %v7168_v51, %v545_v54  ;;  %v5942_v56 = vpop.f32.mrb[2].mxu0 }
 0x227   :  { %v557_v57 = vadd.f32 %v5942_v56, %v7168_v51  ;;  %v548_v58 = vpop.f32.mrb[3].mxu0  ;;  %v610_v60 = vmax.f32 %v554_v53, 0.0 }
 0x228   :  { %v549_v59 = vadd.f32 %v7168_v51, %v548_v58  ;;  %v608_v62 = vmax.f32 %v546_v55, 0.0 }
 0x229   :  { %v611_v61 = vmax.f32 %v557_v57, 0.0 }
 0x22a   :  { %v609_v63 = vmax.f32 %v549_v59, 0.0 }
 0x22b   :  { %v625_v0 = vpack.c.bf16 %v611_v61, %v610_v60 }
 0x22c   :  { %v5945_v1 = vpop.f32.mrb[4].mxu0  ;;  %v624_v2 = vpack.c.bf16 %v609_v63, %v608_v62 }
 0x22d   :  { %v570_v3 = vadd.f32 %v5945_v1, %v7168_v51  ;;  %v561_v4 = vpop.f32.mrb[5].mxu0 }
 0x22e   :  { %v562_v6 = vadd.f32 %v7168_v51, %v561_v4  ;;  %v5946_v7 = vpop.f32.mrb[6].mxu0  ;;  %5963 = vmatprep.mubr.msk.bf16.mxu1 %vm671_vm2, %v624_v2  ;;  %v6140_v2 = vld [vmem:[#allocation13 + $0x8] sm:$0xff]  }
 0x22f   :  { %v614_v8 = vmax.f32 %v570_v3, 0.0  ;;  %v573_v9 = vadd.f32 %v5946_v7, %v7168_v51  ;;  %v564_v10 = vpop.f32.mrb[7].mxu0  ;;  %5964 = vmatmul.mubr.msk.bf16.vlgmr.msra.gmra.mrb[0].mxu1 %vm671_vm2, %v625_v0 }
 0x230   :  { %v612_v11 = vmax.f32 %v562_v6, 0.0  ;;  %v565_v12 = vadd.f32 %v7168_v51, %v564_v10  ;;  %5980 = vmatpush3.bf16.msra.mxu1 %v6135_v50  ;;  %v6141_v10 = vld [vmem:[#allocation13 + $0x10] sm:$0xff]  }
 0x231   :  { %v615_v13 = vmax.f32 %v573_v9, 0.0  ;;  %5981 = vmatprep.subr.bf16.mxu1 %v6136_v5 }
 0x232   :  { %v613_v15 = vmax.f32 %v565_v12, 0.0 }
 0x233   :  { %v627_v16 = vpack.c.bf16 %v615_v13, %v614_v8 }
 0x234   :  { %v626_v17 = vpack.c.bf16 %v613_v15, %v612_v11  ;;  %v5949_v18 = vpop.f32.mrb[8].mxu0  ;;  %5982 = vmatpush3.bf16.msra.mxu1 %v6136_v5 }
 0x235   :  { %v586_v19 = vadd.f32 %v5949_v18, %v7168_v51  ;;  %v577_v20 = vpop.f32.mrb[9].mxu0  ;;  %5983 = vmatprep.subr.bf16.mxu1 %v6137_v14 }
 0x236   :  { %v578_v21 = vadd.f32 %v7168_v51, %v577_v20  ;;  %v5950_v22 = vpop.f32.mrb[10].mxu0  ;;  %5967 = vmatprep.mubr.msk.bf16.mxu1 %vm671_vm2, %v626_v17 }
 0x237   :  { %v618_v23 = vmax.f32 %v586_v19, 0.0  ;;  %v589_v24 = vadd.f32 %v5950_v22, %v7168_v51  ;;  %v580_v25 = vpop.f32.mrb[11].mxu0  ;;  %5968 = vmatmul.mubr.msk.bf16.gmra.mrb[4].mxu1 %vm671_vm2, %v627_v16 }
 0x238   :  { %v616_v26 = vmax.f32 %v578_v21, 0.0  ;;  %v581_v27 = vadd.f32 %v7168_v51, %v580_v25  ;;  %5984 = vmatpush3.bf16.msra.mxu1 %v6137_v14 }
 0x239   :  { %v619_v28 = vmax.f32 %v589_v24, 0.0  ;;  %5985 = vmatprep.subr.bf16.mxu1 %v6138_v46 }
 0x23a   :  { %v617_v29 = vmax.f32 %v581_v27, 0.0 }
 0x23b   :  { %v629_v30 = vpack.c.bf16 %v619_v28, %v618_v23 }
 0x23c   :  { %v628_v31 = vpack.c.bf16 %v617_v29, %v616_v26  ;;  %v5953_v32 = vpop.f32.mrb[12].mxu0  ;;  %5986 = vmatpush3.bf16.msra.mxu1 %v6138_v46  ;;  %v7220_v46 = vld [vmem:[#allocation15 + $0x8] sm:$0xff] }
 0x23d   :  { %v602_v33 = vadd.f32 %v5953_v32, %v7168_v51  ;;  %v593_v34 = vpop.f32.mrb[13].mxu0  ;;  %6003 = vmatprep.subr.bf16.mxu1 %v6139_v47 }
 0x23e   :  { %5971 = vmatprep.mubr.msk.bf16.mxu1 %vm671_vm2, %v628_v31  ;;  %v594_v35 = vadd.f32 %v7168_v51, %v593_v34  ;;  %v5954_v36 = vpop.f32.mrb[14].mxu0 }
 0x23f   :  { %5972 = vmatmul.mubr.msk.bf16.gmra.mrb[8].mxu1 %vm671_vm2, %v629_v30  ;;  %v622_v37 = vmax.f32 %v602_v33, 0.0  ;;  %v605_v38 = vadd.f32 %v5954_v36, %v7168_v51  ;;  %v596_v39 = vpop.f32.mrb[15].mxu0 }
 0x240   :  { %v620_v40 = vmax.f32 %v594_v35, 0.0  ;;  %v597_v41 = vadd.f32 %v7168_v51, %v596_v39 }
 0x241   :  { %v623_v42 = vmax.f32 %v605_v38, 0.0 }
 0x242   :  { %v621_v43 = vmax.f32 %v597_v41, 0.0 }
 0x243   :  { %v631_v44 = vpack.c.bf16 %v623_v42, %v622_v37 }
 0x244   :  { %v630_v45 = vpack.c.bf16 %v621_v43, %v620_v40  ;;  %v6142_v43 = vld [vmem:[#allocation13 + $0x18] sm:$0xff]  }
 0x246   :  { %5975 = vmatprep.mubr.msk.bf16.mxu1 %vm671_vm2, %v630_v45  ;;  %v1197_v45 = vld [vmem:[#allocation15 + $0x20] sm:$0xff] }
 0x247   :  { %5976 = vmatmul.mubr.msk.bf16.gmra.mrb[12].mxu1 %vm671_vm2, %v631_v44  ;;  %v1193_v44 = vld [vmem:[#allocation15] sm:$0xff] }
 0x302   :  { %v5965_v49 = vpop.f32.mrb[0].mxu1 }
 0x303   :  { %v739_v50 = vadd.f32 %v5965_v49, %v7194_v48  ;;  %v730_v52 = vpop.f32.mrb[1].mxu1  ;;  %v5470_v49 = vcombine.high %v1193_v44, %v1197_v45 }
 0x304   :  { %v731_v51 = vadd.f32 %v7194_v48, %v730_v52  ;;  %v5966_v53 = vpop.f32.mrb[2].mxu1  ;;  %v1205_v52 = vld [vmem:[#allocation15 + $0x60] sm:$0xff] }
 0x305   :  { %v742_v54 = vadd.f32 %v5966_v53, %v7194_v48  ;;  %v733_v55 = vpop.f32.mrb[3].mxu1  ;;  %v795_v57 = vmax.f32 %v739_v50, 0.0  ;;  %v7222_v50 = vld [vmem:[#allocation15 + $0x28] sm:$0xff]  ;;  %1643 = vmatprep.subr.bf16.mxu0 %v5470_v49 }
 0x306   :  { %v734_v56 = vadd.f32 %v7194_v48, %v733_v55  ;;  %v793_v59 = vmax.f32 %v731_v51, 0.0  ;;  %v5471_v51 = vcombine.low %v7220_v46, %v7222_v50  ;;  %v5472_v53 = vcombine.high %v7220_v46, %v7222_v50  ;;  %v1209_v55 = vld [vmem:[#allocation15 + $0x80] sm:$0xff] }
 0x307   :  { %v796_v58 = vmax.f32 %v742_v54, 0.0 }
 0x308   :  { %v794_v60 = vmax.f32 %v734_v56, 0.0  ;;  %v1213_v56 = vld [vmem:[#allocation15 + $0xa0] sm:$0xff] }
 0x309   :  { %v810_v61 = vpack.c.bf16 %v796_v58, %v795_v57  ;;  %v5486_v58 = vcombine.high %v1209_v55, %v1213_v56 }
 0x30a   :  { %v809_v62 = vpack.c.bf16 %v794_v60, %v793_v59  ;;  %v5969_v63 = vpop.f32.mrb[4].mxu1  ;;  %v1217_v59 = vld [vmem:[#allocation15 + $0xc0] sm:$0xff] }
 0x30b   :  { %v755_v0 = vadd.f32 %v5969_v63, %v7194_v48  ;;  %v746_v1 = vpop.f32.mrb[5].mxu1  ;;  %v1221_v60 = vld [vmem:[#allocation15 + $0xe0] sm:$0xff] }
 0x30c   :  { %v747_v3 = vadd.f32 %v7194_v48, %v746_v1  ;;  %v5970_v4 = vpop.f32.mrb[6].mxu1  ;;  %5987 = vmatprep.mubr.msk.bf16.mxu1 %vm671_vm2, %v809_v62  ;;  %v5494_v62 = vcombine.high %v1217_v59, %v1221_v60  ;;  %v1225_v63 = vld [vmem:[#allocation15 + $0x100] sm:$0xff]  ;;  %v5493_v1 = vcombine.low %v1217_v59, %v1221_v60 }
 0x30d   :  { %v758_v5 = vadd.f32 %v5970_v4, %v7194_v48  ;;  %v749_v6 = vpop.f32.mrb[7].mxu1  ;;  %5988 = vmatmul.mubr.msk.bf16.vlgmr.msra.gmra.mrb[16].mxu1 %vm671_vm2, %v810_v61  ;;  %v799_v8 = vmax.f32 %v755_v0, 0.0  ;;  %v5485_v61 = vcombine.low %v1209_v55, %v1213_v56  ;;  %v1229_v0 = vld [vmem:[#allocation15 + $0x120] sm:$0xff] }
 0x30e   :  { %v750_v7 = vadd.f32 %v7194_v48, %v749_v6  ;;  %6004 = vmatpush3.bf16.msra.mxu1 %v6139_v47  ;;  %v797_v11 = vmax.f32 %v747_v3, 0.0  ;;  %v5469_v47 = vcombine.low %v1193_v44, %v1197_v45  ;;  %v1233_v3 = vld [vmem:[#allocation15 + $0x140] sm:$0xff] }
 0x30f   :  { %v800_v9 = vmax.f32 %v758_v5, 0.0  ;;  %6005 = vmatprep.subr.bf16.mxu1 %v6140_v2  ;;  %v1237_v4 = vld [vmem:[#allocation15 + $0x160] sm:$0xff]  ;;  %v5501_v5 = vcombine.low %v1225_v63, %v1229_v0 }
 0x310   :  { %v798_v12 = vmax.f32 %v750_v7, 0.0  ;;  %1644 = vmatpush1.bf16.msra.mxu0 %v5469_v47  ;;  %v5510_v6 = vcombine.high %v1233_v3, %v1237_v4  ;;  %v5509_v7 = vcombine.low %v1233_v3, %v1237_v4 }
 0x311   :  { %v812_v13 = vpack.c.bf16 %v800_v9, %v799_v8  ;;  %v7231_v8 = vld [vmem:[%s8079_s6] ss:$0 sm:$0xff] }
 0x312   :  { %v811_v14 = vpack.c.bf16 %v798_v12, %v797_v11  ;;  %v5973_v15 = vpop.f32.mrb[8].mxu1  ;;  %6006 = vmatpush3.bf16.msra.mxu1 %v6140_v2  ;;  %v5502_v2 = vcombine.high %v1225_v63, %v1229_v0  ;;  %v1234_v0 = vld [vmem:[#allocation15 + $0x148] sm:$0xff] }
 0x313   :  { %v771_v16 = vadd.f32 %v5973_v15, %v7194_v48  ;;  %v762_v17 = vpop.f32.mrb[9].mxu1  ;;  %6007 = vmatprep.subr.bf16.mxu1 %v6141_v10 }
 0x314   :  { %v763_v18 = vadd.f32 %v7194_v48, %v762_v17  ;;  %v5974_v19 = vpop.f32.mrb[10].mxu1  ;;  %5991 = vmatprep.mubr.msk.bf16.mxu1 %vm671_vm2, %v811_v14 }
 0x315   :  { %v803_v20 = vmax.f32 %v771_v16, 0.0  ;;  %v774_v21 = vadd.f32 %v5974_v19, %v7194_v48  ;;  %v765_v22 = vpop.f32.mrb[11].mxu1  ;;  %5992 = vmatmul.mubr.msk.bf16.gmra.mrb[20].mxu1 %vm671_vm2, %v812_v13 }
 0x316   :  { %v801_v23 = vmax.f32 %v763_v18, 0.0  ;;  %v766_v24 = vadd.f32 %v7194_v48, %v765_v22  ;;  %6008 = vmatpush3.bf16.msra.mxu1 %v6141_v10  ;;  %v1206_v22 = vld [vmem:[#allocation15 + $0x68] sm:$0xff] }
 0x317   :  { %v804_v25 = vmax.f32 %v774_v21, 0.0  ;;  %6009 = vmatprep.subr.bf16.mxu1 %v6142_v43  ;;  %v1202_v21 = vld [vmem:[#allocation15 + $0x48] sm:$0xff] }
 0x318   :  { %v802_v26 = vmax.f32 %v766_v24, 0.0 }
 0x319   :  { %v814_v27 = vpack.c.bf16 %v804_v25, %v803_v20 }
 0x31a   :  { %v813_v28 = vpack.c.bf16 %v802_v26, %v801_v23  ;;  %v5977_v29 = vpop.f32.mrb[12].mxu1  ;;  %6010 = vmatpush3.bf16.msra.mxu1 %v6142_v43  ;;  %v1222_v43 = vld [vmem:[#allocation15 + $0xe8] sm:$0xff] }
 0x31b   :  { %v787_v30 = vadd.f32 %v5977_v29, %v7194_v48  ;;  %v778_v31 = vpop.f32.mrb[13].mxu1  ;;  %1756 = vmatprep.subr.bf16.mxu1 %v5472_v53  ;;  %v1226_v53 = vld [vmem:[#allocation15 + $0x108] sm:$0xff] }
 0x31c   :  { %5995 = vmatprep.mubr.msk.bf16.mxu1 %vm671_vm2, %v813_v28  ;;  %v779_v32 = vadd.f32 %v7194_v48, %v778_v31  ;;  %v5978_v33 = vpop.f32.mrb[14].mxu1  ;;  %v5480_v28 = vcombine.high %v1202_v21, %v1206_v22  ;;  %v1210_v31 = vld [vmem:[#allocation15 + $0x88] sm:$0xff] }
 0x31d   :  { %5996 = vmatmul.mubr.msk.bf16.gmra.mrb[24].mxu1 %vm671_vm2, %v814_v27  ;;  %v807_v34 = vmax.f32 %v787_v30, 0.0  ;;  %v790_v35 = vadd.f32 %v5978_v33, %v7194_v48  ;;  %v781_v36 = vpop.f32.mrb[15].mxu1 }
 0x31e   :  { %v805_v37 = vmax.f32 %v779_v32, 0.0  ;;  %v782_v38 = vadd.f32 %v7194_v48, %v781_v36  ;;  %v1201_v48 = vld [vmem:[#allocation15 + $0x40] sm:$0xff]  ;;  %v1214_v32 = vld [vmem:[#allocation15 + $0xa8] sm:$0xff]  ;;  %v5479_v36 = vcombine.low %v1202_v21, %v1206_v22 }
 0x31f   :  { %v808_v39 = vmax.f32 %v790_v35, 0.0  ;;  %v5478_v54 = vcombine.high %v1201_v48, %v1205_v52  ;;  %v5477_v57 = vcombine.low %v1201_v48, %v1205_v52  ;;  %v5487_v49 = vcombine.low %v1210_v31, %v1214_v32  ;;  %v1241_v22 = vld [vmem:[#allocation15 + $0x180] sm:$0xff] }
 0x320   :  { %v806_v40 = vmax.f32 %v782_v38, 0.0 }
 0x321   :  { %v816_v41 = vpack.c.bf16 %v808_v39, %v807_v34  ;;  %1645 = vmatprep.subr.bf16.mxu0 %v5478_v54  ;;  %v5488_v39 = vcombine.high %v1210_v31, %v1214_v32  ;;  %v1230_v54 = vld [vmem:[#allocation15 + $0x128] sm:$0xff] }
 0x322   :  { %v815_v42 = vpack.c.bf16 %v806_v40, %v805_v37  ;;  %1646 = vmatpush1.bf16.msra.mxu0 %v5477_v57  ;;  %v1250_v31 = vld [vmem:[#allocation15 + $0x1c8] sm:$0xff] }
 0x323   :  { %1647 = vmatprep.subr.bf16.mxu0 %v5486_v58 }
 0x324   :  { %5999 = vmatprep.mubr.msk.bf16.mxu1 %vm671_vm2, %v815_v42  ;;  %v1218_v42 = vld [vmem:[#allocation15 + $0xc8] sm:$0xff] }
 0x325   :  { %6000 = vmatmul.mubr.msk.bf16.gmra.mrb[28].mxu1 %vm671_vm2, %v816_v41  ;;  %v5496_v46 = vcombine.high %v1218_v42, %v1222_v43  ;;  %v5495_v60 = vcombine.low %v1218_v42, %v1222_v43  ;;  %v1200_v42 = vld [vmem:[#allocation15 + $0x38] sm:$0xff] }
 0x326   :  { %1648 = vmatpush1.bf16.msra.mxu0 %v5485_v61 }
 0x327   :  { %1649 = vmatprep.subr.bf16.mxu0 %v5494_v62  ;;  %v5504_v62 = vcombine.high %v1226_v53, %v1230_v54 }
 0x32a   :  { %1650 = vmatpush1.bf16.msra.mxu0 %v5493_v1  ;;  %v1238_v1 = vld [vmem:[#allocation15 + $0x168] sm:$0xff] }
 0x32b   :  { %1651 = vmatprep.subr.bf16.mxu0 %v5502_v2 }
 0x32e   :  { %1652 = vmatpush1.bf16.msra.mxu0 %v5501_v5  ;;  %v5503_v5 = vcombine.low %v1226_v53, %v1230_v54 }
 0x32f   :  { %1653 = vmatprep.subr.bf16.mxu0 %v5510_v6 }
 0x332   :  { %1654 = vmatpush1.bf16.msra.mxu0 %v5509_v7 }
 0x3e0   :  { %v5989_v9 = vpop.f32.mrb[16].mxu1 }
 0x3e1   :  { %v923_v10 = vadd.f32 %v5989_v9, %v7231_v8  ;;  %v914_v11 = vpop.f32.mrb[17].mxu1  ;;  %v5512_v9 = vcombine.high %v1234_v0, %v1238_v1 }
 0x3e2   :  { %v915_v12 = vadd.f32 %v7231_v8, %v914_v11  ;;  %v5990_v13 = vpop.f32.mrb[18].mxu1 }
 0x3e3   :  { %v926_v14 = vadd.f32 %v5990_v13, %v7231_v8  ;;  %v917_v15 = vpop.f32.mrb[19].mxu1  ;;  %v979_v17 = vmax.f32 %v923_v10, 0.0 }
 0x3e4   :  { %v918_v16 = vadd.f32 %v7231_v8, %v917_v15  ;;  %v977_v19 = vmax.f32 %v915_v12, 0.0 }
 0x3e5   :  { %v980_v18 = vmax.f32 %v926_v14, 0.0 }
 0x3e6   :  { %v978_v20 = vmax.f32 %v918_v16, 0.0 }
 0x3e7   :  { %v994_v23 = vpack.c.bf16 %v980_v18, %v979_v17  ;;  %v5511_v17 = vcombine.low %v1234_v0, %v1238_v1 }
 0x3e8   :  { %v993_v24 = vpack.c.bf16 %v978_v20, %v977_v19  ;;  %v5993_v25 = vpop.f32.mrb[20].mxu1 }
 0x3e9   :  { %v939_v26 = vadd.f32 %v5993_v25, %v7231_v8  ;;  %v930_v27 = vpop.f32.mrb[21].mxu1 }
 0x3ea   :  { %v931_v29 = vadd.f32 %v7231_v8, %v930_v27  ;;  %v5994_v30 = vpop.f32.mrb[22].mxu1  ;;  %6011 = vmatprep.mubr.msk.bf16.mxu1 %vm671_vm2, %v993_v24  ;;  %v1242_v24 = vld [vmem:[#allocation15 + $0x188] sm:$0xff] }
 0x3eb   :  { %v942_v33 = vadd.f32 %v5994_v30, %v7231_v8  ;;  %v933_v34 = vpop.f32.mrb[23].mxu1  ;;  %6012 = vmatmul.mubr.msk.bf16.vlgmr.msra.gmra.mrb[32].mxu1 %vm671_vm2, %v994_v23  ;;  %v983_v37 = vmax.f32 %v939_v26, 0.0  ;;  %v1245_v23 = vld [vmem:[#allocation15 + $0x1a0] sm:$0xff]  ;;  %v1246_v26 = vld [vmem:[#allocation15 + $0x1a8] sm:$0xff] }
 0x3ec   :  { %v934_v35 = vadd.f32 %v7231_v8, %v933_v34  ;;  %1757 = vmatpush1.bf16.msra.mxu1 %v5471_v51  ;;  %v981_v40 = vmax.f32 %v931_v29, 0.0  ;;  %v5518_v25 = vcombine.high %v1241_v22, %v1245_v23  ;;  %v5517_v27 = vcombine.low %v1241_v22, %v1245_v23  ;;  %v1249_v29 = vld [vmem:[#allocation15 + $0x1c0] sm:$0xff]  ;;  %v1219_v22 = vld [vmem:[#allocation15 + $0xd0] sm:$0xff] }
 0x3ed   :  { %v984_v38 = vmax.f32 %v942_v33, 0.0  ;;  %1758 = vmatprep.subr.bf16.mxu1 %v5480_v28  ;;  %v5519_v28 = vcombine.low %v1242_v24, %v1246_v26  ;;  %v1253_v30 = vld [vmem:[#allocation15 + $0x1e0] sm:$0xff]  ;;  %v1254_v33 = vld [vmem:[#allocation15 + $0x1e8] sm:$0xff] }
 0x3ee   :  { %v982_v41 = vmax.f32 %v934_v35, 0.0  ;;  %1655 = vmatprep.subr.bf16.mxu0 %v5518_v25  ;;  %v5526_v32 = vcombine.high %v1249_v29, %v1253_v30  ;;  %v5525_v34 = vcombine.low %v1249_v29, %v1253_v30  ;;  %v5527_v35 = vcombine.low %v1250_v31, %v1254_v33  ;;  %v1223_v25 = vld [vmem:[#allocation15 + $0xf0] sm:$0xff] }
 0x3ef   :  { %v996_v44 = vpack.c.bf16 %v984_v38, %v983_v37  ;;  %1656 = vmatpush1.bf16.msra.mxu0 %v5517_v27  ;;  %v6913_v37 = vmov 0   ;;  %v1195_v38 = vld [vmem:[#allocation15 + $0x10] sm:$0xff]  ;;  %v1224_v27 = vld [vmem:[#allocation15 + $0xf8] sm:$0xff] }
 0x3f0   :  { %v995_v45 = vpack.c.bf16 %v982_v41, %v981_v40  ;;  %v5997_v47 = vpop.f32.mrb[24].mxu1  ;;  %1759 = vmatpush1.bf16.msra.mxu1 %v5479_v36  ;;  %v5528_v36 = vcombine.high %v1250_v31, %v1254_v33  ;;  %1657 = vmatprep.subr.bf16.mxu0 %v5526_v32  ;;  %v1196_v40 = vld [vmem:[#allocation15 + $0x18] sm:$0xff] }
 0x3f1   :  { %v955_v48 = vadd.f32 %v5997_v47, %v7231_v8  ;;  %v946_v52 = vpop.f32.mrb[25].mxu1  ;;  %1760 = vmatprep.subr.bf16.mxu1 %v5488_v39  ;;  %1675 = vmatprep.mubr.bf16.mxu0 %v6913_v37  ;;  %v1199_v39 = vld [vmem:[#allocation15 + $0x30] sm:$0xff]  ;;  %v7265_v47 = vld [vmem:[%s8081_s8] ss:$0 sm:$0xff] }
 0x3f2   :  { %v947_v50 = vadd.f32 %v7231_v8, %v946_v52  ;;  %v5998_v51 = vpop.f32.mrb[26].mxu1  ;;  %6015 = vmatprep.mubr.msk.bf16.mxu1 %vm671_vm2, %v995_v45  ;;  %v5474_v41 = vcombine.high %v1195_v38, %v1199_v39  ;;  %v5473_v43 = vcombine.low %v1195_v38, %v1199_v39  ;;  %v5476_v45 = vcombine.high %v1196_v40, %v1200_v42 }
 0x3f3   :  { %v987_v55 = vmax.f32 %v955_v48, 0.0  ;;  %v958_v56 = vadd.f32 %v5998_v51, %v7231_v8  ;;  %v949_v57 = vpop.f32.mrb[27].mxu1  ;;  %6016 = vmatmul.mubr.msk.bf16.gmra.mrb[36].mxu1 %vm671_vm2, %v996_v44  ;;  %1658 = vmatpush1.bf16.msra.mxu0 %v5525_v34  ;;  %v5475_v44 = vcombine.low %v1196_v40, %v1200_v42  ;;  %v5498_v34 = vcombine.high %v1219_v22, %v1223_v25  ;;  %v1231_v40 = vld [vmem:[#allocation15 + $0x130] sm:$0xff]  ;;  %v1232_v42 = vld [vmem:[#allocation15 + $0x138] sm:$0xff] }
 0x3f4   :  { %v985_v58 = vmax.f32 %v947_v50, 0.0  ;;  %v950_v59 = vadd.f32 %v7231_v8, %v949_v57  ;;  %1761 = vmatpush1.bf16.msra.mxu1 %v5487_v49  ;;  %1869 = vmatprep.subr.bf16.mxu0 %v5474_v41  ;;  %v1203_v57 = vld [vmem:[#allocation15 + $0x50] sm:$0xff]  ;;  %v1228_v41 = vld [vmem:[#allocation15 + $0x118] sm:$0xff] }
 0x3f5   :  { %v988_v61 = vmax.f32 %v958_v56, 0.0  ;;  %1762 = vmatprep.subr.bf16.mxu1 %v5496_v46 }
 0x3f6   :  { %v986_v63 = vmax.f32 %v950_v59, 0.0 }
 0x3f7   :  { %v998_v2 = vpack.c.bf16 %v988_v61, %v987_v55  ;;  %v1204_v61 = vld [vmem:[#allocation15 + $0x58] sm:$0xff] }
 0x3f8   :  { %v997_v3 = vpack.c.bf16 %v986_v63, %v985_v58  ;;  %v6001_v4 = vpop.f32.mrb[28].mxu1  ;;  %1763 = vmatpush1.bf16.msra.mxu1 %v5495_v60  ;;  %v1207_v60 = vld [vmem:[#allocation15 + $0x70] sm:$0xff] }
 0x3f9   :  { %v971_v6 = vadd.f32 %v6001_v4, %v7231_v8  ;;  %v962_v7 = vpop.f32.mrb[29].mxu1  ;;  %1764 = vmatprep.subr.bf16.mxu1 %v5504_v62  ;;  %v1208_v62 = vld [vmem:[#allocation15 + $0x78] sm:$0xff]  ;;  %v5482_v4 = vcombine.high %v1203_v57, %v1207_v60 }
 0x3fa   :  { %6019 = vmatprep.mubr.msk.bf16.mxu1 %vm671_vm2, %v997_v3  ;;  %v963_v10 = vadd.f32 %v7231_v8, %v962_v7  ;;  %v6002_v11 = vpop.f32.mrb[30].mxu1 }
 0x3fb   :  { %6020 = vmatmul.mubr.msk.bf16.gmra.mrb[40].mxu1 %vm671_vm2, %v998_v2  ;;  %v991_v12 = vmax.f32 %v971_v6, 0.0  ;;  %v974_v13 = vadd.f32 %v6002_v11, %v7231_v8  ;;  %v965_v14 = vpop.f32.mrb[31].mxu1  ;;  %v1211_v6 = vld [vmem:[#allocation15 + $0x90] sm:$0xff]  ;;  %v1212_v11 = vld [vmem:[#allocation15 + $0x98] sm:$0xff] }
 0x3fc   :  { %v989_v15 = vmax.f32 %v963_v10, 0.0  ;;  %v966_v16 = vadd.f32 %v7231_v8, %v965_v14  ;;  %1765 = vmatpush1.bf16.msra.mxu1 %v5503_v5  ;;  %v5520_v8 = vcombine.high %v1242_v24, %v1246_v26  ;;  %v5484_v5 = vcombine.high %v1204_v61, %v1208_v62  ;;  %v1215_v10 = vld [vmem:[#allocation15 + $0xb0] sm:$0xff]  ;;  %v1220_v26 = vld [vmem:[#allocation15 + $0xd8] sm:$0xff] }
 0x3fd   :  { %v992_v18 = vmax.f32 %v974_v13, 0.0  ;;  %1766 = vmatprep.subr.bf16.mxu1 %v5512_v9  ;;  %v5489_v30 = vcombine.low %v1211_v6, %v1215_v10 }
 0x3fe   :  { %v990_v19 = vmax.f32 %v966_v16, 0.0  ;;  %v5481_v16 = vcombine.low %v1203_v57, %v1207_v60  ;;  %v1236_v57 = vld [vmem:[#allocation15 + $0x158] sm:$0xff] }
 0x3ff   :  { %v1000_v20 = vpack.c.bf16 %v992_v18, %v991_v12  ;;  %v1216_v12 = vld [vmem:[#allocation15 + $0xb8] sm:$0xff] }
 0x400   :  { %v999_v21 = vpack.c.bf16 %v990_v19, %v989_v15  ;;  %1767 = vmatpush1.bf16.msra.mxu1 %v5511_v17  ;;  %v5483_v17 = vcombine.low %v1204_v61, %v1208_v62  ;;  %v5491_v31 = vcombine.low %v1212_v11, %v1216_v12 }
 0x401   :  { %1768 = vmatprep.subr.bf16.mxu1 %v5520_v8 }
 0x402   :  { %6023 = vmatprep.mubr.msk.bf16.mxu1 %vm671_vm2, %v999_v21  ;;  %v5492_v21 = vcombine.high %v1212_v11, %v1216_v12  ;;  %v1244_v11 = vld [vmem:[#allocation15 + $0x198] sm:$0xff] }
 0x403   :  { %6024 = vmatmul.mubr.msk.bf16.gmra.mrb[44].mxu1 %vm671_vm2, %v1000_v20  ;;  %v5490_v20 = vcombine.high %v1211_v6, %v1215_v10  ;;  %v1243_v6 = vld [vmem:[#allocation15 + $0x190] sm:$0xff]  ;;  %v1248_v12 = vld [vmem:[#allocation15 + $0x1b8] sm:$0xff] }
 0x404   :  { %1769 = vmatpush1.bf16.msra.mxu1 %v5519_v28  ;;  %1788 = vmatprep.mubr.bf16.mxu1 %v6913_v37  ;;  %v1247_v10 = vld [vmem:[#allocation15 + $0x1b0] sm:$0xff] }
 0x405   :  { %1770 = vmatprep.subr.bf16.mxu1 %v5528_v36  ;;  %v1227_v36 = vld [vmem:[#allocation15 + $0x110] sm:$0xff] }
 0x406   :  { %v5505_v62 = vcombine.low %v1227_v36, %v1231_v40 }
 0x408   :  { %1771 = vmatpush1.bf16.msra.mxu1 %v5527_v35  ;;  %v5500_v35 = vcombine.high %v1220_v26, %v1224_v27 }
 0x409   :  { %1982 = vmatprep.subr.bf16.mxu1 %v5476_v45 }
 0x4be   :  { %v6013_v49 = vpop.f32.mrb[32].mxu1 }
 0x4bf   :  { %v1107_v48 = vadd.f32 %v6013_v49, %v7265_v47  ;;  %v1098_v52 = vpop.f32.mrb[33].mxu1  ;;  %v5497_v49 = vcombine.low %v1219_v22, %v1223_v25  ;;  %v5524_v22 = vcombine.high %v1244_v11, %v1248_v12  ;;  %v1255_v25 = vld [vmem:[#allocation15 + $0x1f0] sm:$0xff] }
 0x4c0   :  { %v1099_v46 = vadd.f32 %v7265_v47, %v1098_v52  ;;  %v6014_v50 = vpop.f32.mrb[34].mxu1 }
 0x4c1   :  { %v1110_v51 = vadd.f32 %v6014_v50, %v7265_v47  ;;  %v1101_v53 = vpop.f32.mrb[35].mxu1  ;;  %v1163_v55 = vmax.f32 %v1107_v48, 0.0  ;;  %v5499_v48 = vcombine.low %v1220_v26, %v1224_v27  ;;  %v5506_v50 = vcombine.high %v1227_v36, %v1231_v40  ;;  %v1252_v26 = vld [vmem:[#allocation15 + $0x1d8] sm:$0xff] }
 0x4c2   :  { %v1102_v54 = vadd.f32 %v7265_v47, %v1101_v53  ;;  %v1161_v58 = vmax.f32 %v1099_v46, 0.0  ;;  %v1235_v53 = vld [vmem:[#allocation15 + $0x150] sm:$0xff]  ;;  %v1256_v27 = vld [vmem:[#allocation15 + $0x1f8] sm:$0xff] }
 0x4c3   :  { %v1164_v56 = vmax.f32 %v1110_v51, 0.0  ;;  %v5508_v51 = vcombine.high %v1228_v41, %v1232_v42  ;;  %v6146_v36 = vld [vmem:[#allocation16 + $0x8] ss:$16 sps:$4 sm:$0xff]  }
 0x4c4   :  { %v1162_v59 = vmax.f32 %v1102_v54, 0.0  ;;  %v6152_v40 = vld [vmem:[#allocation16 + $0x28] ss:$16 sps:$4 sm:$0xff]  }
 0x4c5   :  { %v7271_v63 = vpack.c.bf16 %v1164_v56, %v1163_v55  ;;  %v1239_v56 = vld [vmem:[#allocation15 + $0x170] sm:$0xff] }
 0x4c6   :  { %v7273_v0 = vpack.c.bf16 %v1162_v59, %v1161_v58  ;;  %v6017_v1 = vpop.f32.mrb[36].mxu1  ;;  %v1240_v58 = vld [vmem:[#allocation15 + $0x178] sm:$0xff] }
 0x4c7   :  { %v1123_v2 = vadd.f32 %v6017_v1, %v7265_v47  ;;  %v1114_v3 = vpop.f32.mrb[37].mxu1  ;;  %v5507_v1 = vcombine.low %v1228_v41, %v1232_v42  ;;  %v6157_v41 = vld [vmem:[#allocation16 + $0x44] ss:$16 sps:$4 sm:$0xff]   ;;  %v6160_v42 = vld [vmem:[#allocation16 + $0x4c] ss:$16 sps:$4 sm:$0xff]  }
 0x4c8   :  { %v1115_v7 = vadd.f32 %v7265_v47, %v1114_v3  ;;  %v6018_v9 = vpop.f32.mrb[38].mxu1  ;;  %1676 = vmatmul.mubr.bf16.vlgmr.msra.gmra.mrb[16].mxu0 %v7273_v0  ;;  %1789 = vmatmul.mubr.bf16.vlgmr.msra.gmra.mrb[48].mxu1 %v7273_v0 }
 0x4c9   :  { %v1126_v13 = vadd.f32 %v6018_v9, %v7265_v47  ;;  %v1117_v14 = vpop.f32.mrb[39].mxu1  ;;  %1685 = vmatprep.mubr.bf16.mxu0 %v6913_v37  ;;  %1798 = vmatprep.mubr.bf16.mxu1 %v6913_v37  ;;  %v1167_v18 = vmax.f32 %v1123_v2, 0.0 }
 0x4ca   :  { %v1118_v15 = vadd.f32 %v7265_v47, %v1117_v14  ;;  %1870 = vmatpush1.bf16.msra.mxu0 %v5473_v43  ;;  %1983 = vmatpush1.bf16.msra.mxu1 %v5475_v44  ;;  %v1165_v23 = vmax.f32 %v1115_v7, 0.0 }
 0x4cb   :  { %v1168_v19 = vmax.f32 %v1126_v13, 0.0  ;;  %1871 = vmatprep.subr.bf16.mxu0 %v5482_v4  ;;  %1984 = vmatprep.subr.bf16.mxu1 %v5484_v5  ;;  %v5514_v4 = vcombine.high %v1235_v53, %v1239_v56  ;;  %v5516_v5 = vcombine.high %v1236_v57, %v1240_v58 }
 0x4cc   :  { %v1166_v24 = vmax.f32 %v1118_v15, 0.0 }
 0x4cd   :  { %v7283_v28 = vpack.c.bf16 %v1168_v19, %v1167_v18  ;;  %v5513_v18 = vcombine.low %v1235_v53, %v1239_v56  ;;  %v5515_v19 = vcombine.low %v1236_v57, %v1240_v58  ;;  %v6175_v53 = vld [vmem:[#allocation16 + $0xa4] ss:$16 sps:$4 sm:$0xff]   ;;  %v6176_v56 = vld [vmem:[#allocation16 + $0xa8] ss:$16 sps:$4 sm:$0xff]   ;;  %v6184_v58 = vld [vmem:[#allocation16 + $0xcc] ss:$16 sps:$4 sm:$0xff]  }
 0x4ce   :  { %v7285_v8 = vpack.c.bf16 %v1166_v24, %v1165_v23  ;;  %v6021_v29 = vpop.f32.mrb[40].mxu1  ;;  %1872 = vmatpush1.bf16.msra.mxu0 %v5481_v16  ;;  %1985 = vmatpush1.bf16.msra.mxu1 %v5483_v17  ;;  %v1251_v23 = vld [vmem:[#allocation15 + $0x1d0] sm:$0xff] }
 0x4cf   :  { %v1139_v32 = vadd.f32 %v6021_v29, %v7265_v47  ;;  %v1130_v33 = vpop.f32.mrb[41].mxu1  ;;  %1873 = vmatprep.subr.bf16.mxu0 %v5490_v20  ;;  %1986 = vmatprep.subr.bf16.mxu1 %v5492_v21  ;;  %v5522_v21 = vcombine.high %v1243_v6, %v1247_v10  ;;  %v6181_v57 = vld [vmem:[#allocation16 + $0xc4] ss:$16 sps:$4 sm:$0xff]  }
 0x4d0   :  { %v1131_v38 = vadd.f32 %v7265_v47, %v1130_v33  ;;  %v6022_v39 = vpop.f32.mrb[42].mxu1  ;;  %1686 = vmatmul.mubr.bf16.gmra.mrb[20].mxu0 %v7271_v63  ;;  %1799 = vmatmul.mubr.bf16.gmra.mrb[52].mxu1 %v7271_v63  ;;  %v5532_v33 = vcombine.high %v1252_v26, %v1256_v27 }
 0x4d1   :  { %v1142_v43 = vadd.f32 %v6022_v39, %v7265_v47  ;;  %v1133_v44 = vpop.f32.mrb[43].mxu1  ;;  %1695 = vmatprep.mubr.bf16.mxu0 %v6913_v37  ;;  %1808 = vmatprep.mubr.bf16.mxu1 %v6913_v37  ;;  %v1171_v52 = vmax.f32 %v1139_v32, 0.0  ;;  %v5530_v32 = vcombine.high %v1251_v23, %v1255_v25  ;;  %v6149_v39 = vld [vmem:[#allocation16 + $0x20] ss:$16 sps:$4 sm:$0xff]  }
 0x4d2   :  { %v1134_v45 = vadd.f32 %v7265_v47, %v1133_v44  ;;  %1874 = vmatpush1.bf16.msra.mxu0 %v5489_v30  ;;  %1987 = vmatpush1.bf16.msra.mxu1 %v5491_v31  ;;  %v1169_v54 = vmax.f32 %v1131_v38, 0.0  ;;  %v5523_v31 = vcombine.low %v1244_v11, %v1248_v12  ;;  %v6154_v38 = vld [vmem:[#allocation16 + $0x2c] ss:$16 sps:$4 sm:$0xff]   ;;  %v6158_v44 = vld [vmem:[#allocation16 + $0x48] ss:$16 sps:$4 sm:$0xff]  }
 0x4d3   :  { %v1172_v46 = vmax.f32 %v1142_v43, 0.0  ;;  %1875 = vmatprep.subr.bf16.mxu0 %v5498_v34  ;;  %1988 = vmatprep.subr.bf16.mxu1 %v5500_v35  ;;  %v5529_v34 = vcombine.low %v1251_v23, %v1255_v25  ;;  %v5531_v35 = vcombine.low %v1252_v26, %v1256_v27  ;;  %v6155_v43 = vld [vmem:[#allocation16 + $0x40] ss:$16 sps:$4 sm:$0xff]   ;;  %v6200_v11 = vld [vmem:[#allocation16 + $0x128] ss:$16 sps:$4 sm:$0xff]  }
 0x4d4   :  { %v1170_v55 = vmax.f32 %v1134_v45, 0.0  ;;  %v6163_v45 = vld [vmem:[#allocation16 + $0x64] ss:$16 sps:$4 sm:$0xff]   ;;  %v6218_v23 = vld [vmem:[#allocation16 + $0x188] ss:$16 sps:$4 sm:$0xff]  }
 0x4d5   :  { %v7295_v59 = vpack.c.bf16 %v1172_v46, %v1171_v52  ;;  %v6164_v52 = vld [vmem:[#allocation16 + $0x68] ss:$16 sps:$4 sm:$0xff]   ;;  %v6172_v46 = vld [vmem:[#allocation16 + $0x8c] ss:$16 sps:$4 sm:$0xff]   ;;  %v6205_v12 = vld [vmem:[#allocation16 + $0x144] ss:$16 sps:$4 sm:$0xff]  }
 0x4d6   :  { %v7297_v60 = vpack.c.bf16 %v1170_v55, %v1169_v54  ;;  %v6025_v61 = vpop.f32.mrb[44].mxu1  ;;  %1876 = vmatpush1.bf16.msra.mxu0 %v5497_v49  ;;  %1989 = vmatpush1.bf16.msra.mxu1 %v5499_v48  ;;  %v6166_v49 = vld [vmem:[#allocation16 + $0x6c] ss:$16 sps:$4 sm:$0xff]   ;;  %v6161_v48 = vld [vmem:[#allocation16 + $0x60] ss:$16 sps:$4 sm:$0xff]  }
 0x4d7   :  { %v1155_v2 = vadd.f32 %v6025_v61, %v7265_v47  ;;  %v1146_v3 = vpop.f32.mrb[45].mxu1  ;;  %1877 = vmatprep.subr.bf16.mxu0 %v5506_v50  ;;  %1990 = vmatprep.subr.bf16.mxu1 %v5508_v51  ;;  %v6167_v50 = vld [vmem:[#allocation16 + $0x80] ss:$16 sps:$4 sm:$0xff]   ;;  %v6170_v51 = vld [vmem:[#allocation16 + $0x88] ss:$16 sps:$4 sm:$0xff]  }
 0x4d8   :  { %1696 = vmatmul.mubr.bf16.gmra.mrb[24].mxu0 %v7285_v8  ;;  %1809 = vmatmul.mubr.bf16.gmra.mrb[56].mxu1 %v7285_v8  ;;  %v1147_v7 = vadd.f32 %v7265_v47, %v1146_v3  ;;  %v6026_v9 = vpop.f32.mrb[46].mxu1  ;;  %v6178_v54 = vld [vmem:[#allocation16 + $0xac] ss:$16 sps:$4 sm:$0xff]   ;;  %v6173_v55 = vld [vmem:[#allocation16 + $0xa0] ss:$16 sps:$4 sm:$0xff]  }
 0x4d9   :  { %v1175_v13 = vmax.f32 %v1155_v2, 0.0  ;;  %v1158_v14 = vadd.f32 %v6026_v9, %v7265_v47  ;;  %v1149_v15 = vpop.f32.mrb[47].mxu1  ;;  %1705 = vmatprep.mubr.bf16.mxu0 %v6913_v37  ;;  %1818 = vmatprep.mubr.bf16.mxu1 %v6913_v37  ;;  %v6187_v61 = vld [vmem:[#allocation16 + $0xe4] ss:$16 sps:$4 sm:$0xff]   ;;  %v6188_v2 = vld [vmem:[#allocation16 + $0xe8] ss:$16 sps:$4 sm:$0xff]  }
 0x4da   :  { %v1173_v16 = vmax.f32 %v1147_v7, 0.0  ;;  %v1150_v17 = vadd.f32 %v7265_v47, %v1149_v15  ;;  %1878 = vmatpush1.bf16.msra.mxu0 %v5505_v62  ;;  %1991 = vmatpush1.bf16.msra.mxu1 %v5507_v1  ;;  %v5521_v47 = vcombine.low %v1243_v6, %v1247_v10  ;;  %v6190_v62 = vld [vmem:[#allocation16 + $0xec] ss:$16 sps:$4 sm:$0xff]   ;;  %v6185_v1 = vld [vmem:[#allocation16 + $0xe0] ss:$16 sps:$4 sm:$0xff]  }
 0x4db   :  { %v1176_v20 = vmax.f32 %v1158_v14, 0.0  ;;  %1879 = vmatprep.subr.bf16.mxu0 %v5514_v4  ;;  %1992 = vmatprep.subr.bf16.mxu1 %v5516_v5  ;;  %v6193_v3 = vld [vmem:[#allocation16 + $0x104] ss:$16 sps:$4 sm:$0xff]   ;;  %v6196_v4 = vld [vmem:[#allocation16 + $0x10c] ss:$16 sps:$4 sm:$0xff]  }
 0x4dc   :  { %v1174_v24 = vmax.f32 %v1150_v17, 0.0  ;;  %v6191_v5 = vld [vmem:[#allocation16 + $0x100] ss:$16 sps:$4 sm:$0xff]   ;;  %v6194_v6 = vld [vmem:[#allocation16 + $0x108] ss:$16 sps:$4 sm:$0xff]  }
 0x4dd   :  { %v7307_v29 = vpack.c.bf16 %v1176_v20, %v1175_v13  ;;  %v6199_v7 = vld [vmem:[#allocation16 + $0x124] ss:$16 sps:$4 sm:$0xff]   ;;  %v6202_v9 = vld [vmem:[#allocation16 + $0x12c] ss:$16 sps:$4 sm:$0xff]   ;;  %v6197_v10 = vld [vmem:[#allocation16 + $0x120] ss:$16 sps:$4 sm:$0xff]  }
 0x4de   :  { %v7309_v30 = vpack.c.bf16 %v1174_v24, %v1173_v16  ;;  %1880 = vmatpush1.bf16.msra.mxu0 %v5513_v18  ;;  %1993 = vmatpush1.bf16.msra.mxu1 %v5515_v19  ;;  %v6208_v13 = vld [vmem:[#allocation16 + $0x14c] ss:$16 sps:$4 sm:$0xff]   ;;  %v6203_v14 = vld [vmem:[#allocation16 + $0x140] ss:$16 sps:$4 sm:$0xff]   ;;  %v6206_v15 = vld [vmem:[#allocation16 + $0x148] ss:$16 sps:$4 sm:$0xff]  }
 0x4df   :  { %1881 = vmatprep.subr.bf16.mxu0 %v5522_v21  ;;  %1994 = vmatprep.subr.bf16.mxu1 %v5524_v22  ;;  %v6211_v16 = vld [vmem:[#allocation16 + $0x164] ss:$16 sps:$4 sm:$0xff]   ;;  %v6214_v17 = vld [vmem:[#allocation16 + $0x16c] ss:$16 sps:$4 sm:$0xff]   ;;  %v6209_v18 = vld [vmem:[#allocation16 + $0x160] ss:$16 sps:$4 sm:$0xff]  }
 0x4e0   :  { %1706 = vmatmul.mubr.bf16.gmra.mrb[28].mxu0 %v7283_v28  ;;  %1819 = vmatmul.mubr.bf16.gmra.mrb[60].mxu1 %v7283_v28  ;;  %v6212_v19 = vld [vmem:[#allocation16 + $0x168] ss:$16 sps:$4 sm:$0xff]   ;;  %v6217_v20 = vld [vmem:[#allocation16 + $0x184] ss:$16 sps:$4 sm:$0xff]   ;;  %v6220_v21 = vld [vmem:[#allocation16 + $0x18c] ss:$16 sps:$4 sm:$0xff]  }
 0x4e1   :  { %1715 = vmatprep.mubr.bf16.mxu0 %v6913_v37  ;;  %1828 = vmatprep.mubr.bf16.mxu1 %v6913_v37  ;;  %v6215_v22 = vld [vmem:[#allocation16 + $0x180] ss:$16 sps:$4 sm:$0xff]   ;;  %v6223_v24 = vld [vmem:[#allocation16 + $0x1a4] ss:$16 sps:$4 sm:$0xff]   ;;  %v6226_v25 = vld [vmem:[#allocation16 + $0x1ac] ss:$16 sps:$4 sm:$0xff]  }
 0x4e2   :  { %1882 = vmatpush1.bf16.msra.mxu0 %v5521_v47  ;;  %1995 = vmatpush1.bf16.msra.mxu1 %v5523_v31  ;;  %v6221_v26 = vld [vmem:[#allocation16 + $0x1a0] ss:$16 sps:$4 sm:$0xff]   ;;  %v6224_v27 = vld [vmem:[#allocation16 + $0x1a8] ss:$16 sps:$4 sm:$0xff]  }
 0x4e3   :  { %1883 = vmatprep.subr.bf16.mxu0 %v5530_v32  ;;  %1996 = vmatprep.subr.bf16.mxu1 %v5532_v33  ;;  %v6227_v47 = vld [vmem:[#allocation16 + $0x1c0] ss:$16 sps:$4 sm:$0xff]   ;;  %v6230_v31 = vld [vmem:[#allocation16 + $0x1c8] ss:$16 sps:$4 sm:$0xff]   ;;  %v6235_v32 = vld [vmem:[#allocation16 + $0x1e4] ss:$16 sps:$4 sm:$0xff]  }
 0x4e4   :  { %v6238_v33 = vld [vmem:[#allocation16 + $0x1ec] ss:$16 sps:$4 sm:$0xff]  }
 0x4e6   :  { %1884 = vmatpush1.bf16.msra.mxu0 %v5529_v34  ;;  %1997 = vmatpush1.bf16.msra.mxu1 %v5531_v35  ;;  %v6233_v34 = vld [vmem:[#allocation16 + $0x1e0] ss:$16 sps:$4 sm:$0xff]   ;;  %v6236_v35 = vld [vmem:[#allocation16 + $0x1e8] ss:$16 sps:$4 sm:$0xff]  }
 0x4e8   :  { %1716 = vmatmul.mubr.bf16.gmra.mrb[32].mxu0 %v7297_v60  ;;  %1829 = vmatmul.mubr.bf16.gmra.mrb[64].mxu1 %v7297_v60 }
 0x4e9   :  { %1725 = vmatprep.mubr.bf16.mxu0 %v6913_v37  ;;  %1838 = vmatprep.mubr.bf16.mxu1 %v6913_v37 }
 0x4f0   :  { %1726 = vmatmul.mubr.bf16.gmra.mrb[36].mxu0 %v7295_v59  ;;  %1839 = vmatmul.mubr.bf16.gmra.mrb[68].mxu1 %v7295_v59 }
 0x4f1   :  { %1735 = vmatprep.mubr.bf16.mxu0 %v6913_v37  ;;  %1848 = vmatprep.mubr.bf16.mxu1 %v6913_v37 }
 0x4f8   :  { %1736 = vmatmul.mubr.bf16.gmra.mrb[40].mxu0 %v7309_v30  ;;  %1849 = vmatmul.mubr.bf16.gmra.mrb[72].mxu1 %v7309_v30 }
 0x4f9   :  { %1745 = vmatprep.mubr.bf16.mxu0 %v6913_v37  ;;  %1858 = vmatprep.mubr.bf16.mxu1 %v6913_v37 }
 0x500   :  { %1746 = vmatmul.mubr.bf16.gmra.mrb[44].mxu0 %v7307_v29  ;;  %1859 = vmatmul.mubr.bf16.gmra.mrb[76].mxu1 %v7307_v29 }
 0x501   :  { %1901 = vmatprep.mubr.bf16.mxu0 %v6913_v37  ;;  %2014 = vmatprep.mubr.bf16.mxu1 %v6913_v37 }
 0x508   :  { %1902 = vmatmul.mubr.bf16.vlgmr.msra.gmra.mrb[48].mxu0 %v7273_v0  ;;  %2015 = vmatmul.mubr.bf16.vlgmr.msra.gmra.mrb[80].mxu1 %v7273_v0  ;;  %v6148_v0 = vld [vmem:[#allocation16 + $0xc] ss:$16 sps:$4 sm:$0xff]  }
 0x509   :  { %1911 = vmatprep.mubr.bf16.mxu0 %v6913_v37  ;;  %2024 = vmatprep.mubr.bf16.mxu1 %v6913_v37 }
 0x50a   :  { %4571 = vmatprep.subr.bf16.mxu1 %v6148_v0 }
 0x50b   :  { %4572 = vmatpush1.bf16.msra.mxu1 %v6146_v36 }
 0x50c   :  { %4573 = vmatprep.subr.bf16.mxu1 %v6154_v38 }
 0x50f   :  { %4574 = vmatpush1.bf16.msra.mxu1 %v6152_v40  ;;  %v6241_v40 = vld [vmem:[#allocation16 + $0x204] ss:$16 sps:$4 sm:$0xff]  }
 0x510   :  { %1912 = vmatmul.mubr.bf16.gmra.mrb[52].mxu0 %v7271_v63  ;;  %2025 = vmatmul.mubr.bf16.gmra.mrb[84].mxu1 %v7271_v63  ;;  %v6145_v63 = vld [vmem:[#allocation16 + $0x4] ss:$16 sps:$4 sm:$0xff]  }
 0x511   :  { %1921 = vmatprep.mubr.bf16.mxu0 %v6913_v37  ;;  %2034 = vmatprep.mubr.bf16.mxu1 %v6913_v37 }
 0x512   :  { %4407 = vmatprep.subr.bf16.mxu0 %v6145_v63  ;;  %4575 = vmatprep.subr.bf16.mxu1 %v6160_v42  ;;  %v1283_v63 = vlaneseq }
 0x513   :  { %4576 = vmatpush1.bf16.msra.mxu1 %v6158_v44 }
 0x514   :  { %4577 = vmatprep.subr.bf16.mxu1 %v6166_v49  ;;  %v7361_v0 = vshrl.u32 %v1283_v63, 7 }
 0x516   :  { %8108 = vst [vmem:[#allocation29_spill] sm:$0xff] %v7361_v0  ;;  %v8095_v36 = vsub.s32 2, %v7361_v0  ;;  %v7371_v38 = vsub.s32 1, %v7361_v0 }
 0x517   :  { %4578 = vmatpush1.bf16.msra.mxu1 %v6164_v52 }
 0x518   :  { %1922 = vmatmul.mubr.bf16.gmra.mrb[56].mxu0 %v7285_v8  ;;  %2035 = vmatmul.mubr.bf16.gmra.mrb[88].mxu1 %v7285_v8  ;;  %v6143_v8 = vld [vmem:[#allocation16] ss:$16 sps:$4 sm:$0xff]   ;;  %8110 = vst [vmem:[#allocation31_spill] sm:$0xff] %v7371_v38 }
 0x519   :  { %1931 = vmatprep.mubr.bf16.mxu0 %v6913_v37  ;;  %2044 = vmatprep.mubr.bf16.mxu1 %v6913_v37 }
 0x51a   :  { %4408 = vmatpush1.bf16.msra.mxu0 %v6143_v8  ;;  %4579 = vmatprep.subr.bf16.mxu1 %v6172_v46  ;;  %v7364_v8 = vsub.s32 0, %v7361_v0 }
 0x51b   :  { %4580 = vmatpush1.bf16.msra.mxu1 %v6170_v51 }
 0x51c   :  { %4581 = vmatprep.subr.bf16.mxu1 %v6178_v54  ;;  %8109 = vst [vmem:[#allocation30_spill] sm:$0xff] %v7364_v8 }
 0x51f   :  { %4582 = vmatpush1.bf16.msra.mxu1 %v6176_v56 }
 0x520   :  { %1932 = vmatmul.mubr.bf16.gmra.mrb[60].mxu0 %v7283_v28  ;;  %2045 = vmatmul.mubr.bf16.gmra.mrb[92].mxu1 %v7283_v28  ;;  %v6151_v28 = vld [vmem:[#allocation16 + $0x24] ss:$16 sps:$4 sm:$0xff]  }
 0x521   :  { %1941 = vmatprep.mubr.bf16.mxu0 %v6913_v37  ;;  %2054 = vmatprep.mubr.bf16.mxu1 %v6913_v37 }
 0x522   :  { %4409 = vmatprep.subr.bf16.mxu0 %v6151_v28  ;;  %4583 = vmatprep.subr.bf16.mxu1 %v6184_v58  ;;  %v1257_v28 = vld [vmem:[%s8083_s10] sm:$0xff] }
 0x523   :  { %4410 = vmatpush1.bf16.msra.mxu0 %v6149_v39  ;;  %v8096_v39 = vsub.s32 3, %v7361_v0  ;;  %v7379_v42 = vrot.slane %v1257_v28, %v8095_v36  ;;  %v7382_v44 = vrot.slane %v1257_v28, %v7371_v38 }
 0x524   :  { %4411 = vmatprep.subr.bf16.mxu0 %v6157_v41  ;;  %v7375_v41 = vrot.slane %v1257_v28, %v7364_v8 }
 0x527   :  { %4412 = vmatpush1.bf16.msra.mxu0 %v6155_v43  ;;  %v6244_v43 = vld [vmem:[#allocation16 + $0x20c] ss:$16 sps:$4 sm:$0xff]  }
 0x528   :  { %1942 = vmatmul.mubr.bf16.gmra.mrb[64].mxu0 %v7297_v60  ;;  %2055 = vmatmul.mubr.bf16.gmra.mrb[96].mxu1 %v7297_v60  ;;  %v6182_v60 = vld [vmem:[#allocation16 + $0xc8] ss:$16 sps:$4 sm:$0xff]  }
 0x529   :  { %1951 = vmatprep.mubr.bf16.mxu0 %v6913_v37  ;;  %2064 = vmatprep.mubr.bf16.mxu1 %v6913_v37 }
 0x52a   :  { %4413 = vmatprep.subr.bf16.mxu0 %v6163_v45  ;;  %4584 = vmatpush1.bf16.msra.mxu1 %v6182_v60  ;;  %v7386_v45 = vrot.slane %v1257_v28, %v8096_v39  ;;  %v1301_v60 = vsub.s32 4, %v7361_v0 }
 0x52b   :  { %4414 = vmatpush1.bf16.msra.mxu0 %v6161_v48  ;;  %4585 = vmatprep.subr.bf16.mxu1 %v6190_v62 }
 0x52e   :  { %4586 = vmatpush1.bf16.msra.mxu1 %v6188_v2  ;;  %v1305_v2 = vsub.s32 5, %v7361_v0 }
 0x52f   :  { %4587 = vmatprep.subr.bf16.mxu1 %v6196_v4 }
 0x530   :  { %1952 = vmatmul.mubr.bf16.gmra.mrb[68].mxu0 %v7295_v59  ;;  %2065 = vmatmul.mubr.bf16.gmra.mrb[100].mxu1 %v7295_v59  ;;  %v6179_v59 = vld [vmem:[#allocation16 + $0xc0] ss:$16 sps:$4 sm:$0xff]  }
 0x531   :  { %1961 = vmatprep.mubr.bf16.mxu0 %v6913_v37  ;;  %2074 = vmatprep.mubr.bf16.mxu1 %v6913_v37 }
 0x532   :  { %4588 = vmatpush1.bf16.msra.mxu1 %v6194_v6 }
 0x533   :  { %4589 = vmatprep.subr.bf16.mxu1 %v6202_v9 }
 0x536   :  { %4590 = vmatpush1.bf16.msra.mxu1 %v6200_v11 }
 0x537   :  { %4591 = vmatprep.subr.bf16.mxu1 %v6208_v13 }
 0x538   :  { %1962 = vmatmul.mubr.bf16.gmra.mrb[72].mxu0 %v7309_v30  ;;  %2075 = vmatmul.mubr.bf16.gmra.mrb[104].mxu1 %v7309_v30  ;;  %v6232_v30 = vld [vmem:[#allocation16 + $0x1cc] ss:$16 sps:$4 sm:$0xff]  }
 0x539   :  { %1971 = vmatprep.mubr.bf16.mxu0 %v6913_v37  ;;  %2084 = vmatprep.mubr.bf16.mxu1 %v6913_v37  ;;  %v6169_v37 = vld [vmem:[#allocation16 + $0x84] ss:$16 sps:$4 sm:$0xff]  }
 0x53a   :  { %4415 = vmatprep.subr.bf16.mxu0 %v6169_v37  ;;  %4592 = vmatpush1.bf16.msra.mxu1 %v6206_v15  ;;  %v7400_v15 = vrot.slane %v1257_v28, %v1301_v60 }
 0x53b   :  { %4416 = vmatpush1.bf16.msra.mxu0 %v6167_v50  ;;  %4593 = vmatprep.subr.bf16.mxu1 %v6214_v17 }
 0x53c   :  { %4417 = vmatprep.subr.bf16.mxu0 %v6175_v53 }
 0x53e   :  { %4594 = vmatpush1.bf16.msra.mxu1 %v6212_v19 }
 0x53f   :  { %4418 = vmatpush1.bf16.msra.mxu0 %v6173_v55  ;;  %4595 = vmatprep.subr.bf16.mxu1 %v6220_v21  ;;  %v7404_v21 = vrot.slane %v1257_v28, %v1305_v2 }
 0x540   :  { %1972 = vmatmul.mubr.bf16.gmra.mrb[76].mxu0 %v7307_v29  ;;  %2085 = vmatmul.mubr.bf16.gmra.mrb[108].mxu1 %v7307_v29  ;;  %v6229_v29 = vld [vmem:[#allocation16 + $0x1c4] ss:$16 sps:$4 sm:$0xff]  }
 0x541   :  { %4419 = vmatprep.subr.bf16.mxu0 %v6181_v57 }
 0x542   :  { %4596 = vmatpush1.bf16.msra.mxu1 %v6218_v23 }
 0x543   :  { %4420 = vmatpush1.bf16.msra.mxu0 %v6179_v59  ;;  %4597 = vmatprep.subr.bf16.mxu1 %v6226_v25 }
 0x544   :  { %4421 = vmatprep.subr.bf16.mxu0 %v6187_v61  ;;  %v1309_v61 = vsub.s32 6, %v7361_v0 }
 0x546   :  { %4598 = vmatpush1.bf16.msra.mxu1 %v6224_v27 }
 0x547   :  { %4422 = vmatpush1.bf16.msra.mxu0 %v6185_v1  ;;  %4599 = vmatprep.subr.bf16.mxu1 %v6232_v30 }
 0x548   :  { %4423 = vmatprep.subr.bf16.mxu0 %v6193_v3  ;;  %v1313_v3 = vsub.s32 7, %v7361_v0 }
 0x54a   :  { %4600 = vmatpush1.bf16.msra.mxu1 %v6230_v31 }
 0x54b   :  { %4424 = vmatpush1.bf16.msra.mxu0 %v6191_v5  ;;  %4601 = vmatprep.subr.bf16.mxu1 %v6238_v33 }
 0x54c   :  { %4425 = vmatprep.subr.bf16.mxu0 %v6199_v7 }
 0x54e   :  { %4602 = vmatpush1.bf16.msra.mxu1 %v6236_v35 }
 0x54f   :  { %4426 = vmatpush1.bf16.msra.mxu0 %v6197_v10  ;;  %4612 = vmatprep.subr.bf16.mxu1 %v6244_v43 }
 0x550   :  { %4427 = vmatprep.subr.bf16.mxu0 %v6205_v12 }
 0x553   :  { %4428 = vmatpush1.bf16.msra.mxu0 %v6203_v14 }
 0x554   :  { %4429 = vmatprep.subr.bf16.mxu0 %v6211_v16  ;;  %v7402_v16 = vrot.slane %v1257_v28, %v1309_v61 }
 0x557   :  { %4430 = vmatpush1.bf16.msra.mxu0 %v6209_v18 }
 0x558   :  { %4431 = vmatprep.subr.bf16.mxu0 %v6217_v20 }
 0x55b   :  { %4432 = vmatpush1.bf16.msra.mxu0 %v6215_v22  ;;  %v7406_v22 = vrot.slane %v1257_v28, %v1313_v3 }
 0x55c   :  { %4433 = vmatprep.subr.bf16.mxu0 %v6223_v24 }
 0x55f   :  { %4434 = vmatpush1.bf16.msra.mxu0 %v6221_v26 }
 0x560   :  { %4435 = vmatprep.subr.bf16.mxu0 %v6229_v29 }
 0x563   :  { %4436 = vmatpush1.bf16.msra.mxu0 %v6227_v47 }
 0x564   :  { %4437 = vmatprep.subr.bf16.mxu0 %v6235_v32 }
 0x567   :  { %4438 = vmatpush1.bf16.msra.mxu0 %v6233_v34 }
 0x568   :  { %4448 = vmatprep.subr.bf16.mxu0 %v6241_v40 }
 0x59b   :  { %v1677_v49 = vpop.f32.mrb[16].mxu0  ;;  %v1790_v48 = vpop.f32.mrb[48].mxu1 }
 0x59c   :  { %v1678_v52 = vadd.f32 %v1677_v49, %v7375_v41  ;;  %v1791_v37 = vadd.f32 %v1790_v48, %v7379_v42  ;;  %v1679_v46 = vpop.f32.mrb[17].mxu0  ;;  %v1792_v50 = vpop.f32.mrb[49].mxu1 }
 0x59d   :  { %v1680_v51 = vadd.f32 %v1679_v46, %v7382_v44  ;;  %v1793_v53 = vadd.f32 %v1792_v50, %v7386_v45  ;;  %v1681_v54 = vpop.f32.mrb[18].mxu0  ;;  %v1794_v55 = vpop.f32.mrb[50].mxu1 }
 0x59e   :  { %v1682_v56 = vadd.f32 %v1681_v54, %v7375_v41  ;;  %v1795_v57 = vadd.f32 %v1794_v55, %v7379_v42  ;;  %v1683_v58 = vpop.f32.mrb[19].mxu0  ;;  %v1796_v59 = vpop.f32.mrb[51].mxu1  ;;  %v2095_v4 = vmax.f32 %v1678_v52, 0.0  ;;  %v2097_v5 = vmax.f32 %v1791_v37, 0.0 }
 0x59f   :  { %v1684_v62 = vadd.f32 %v1683_v58, %v7382_v44  ;;  %v1797_v1 = vadd.f32 %v1796_v59, %v7386_v45  ;;  %v2096_v9 = vmax.f32 %v1680_v51, 0.0  ;;  %v2098_v10 = vmax.f32 %v1793_v53, 0.0 }
 0x5a0   :  { %v2103_v6 = vmax.f32 %v1682_v56, 0.0  ;;  %v2105_v7 = vmax.f32 %v1795_v57, 0.0 }
 0x5a1   :  { %v2104_v11 = vmax.f32 %v1684_v62, 0.0  ;;  %v2106_v12 = vmax.f32 %v1797_v1, 0.0 }
 0x5a2   :  { %v2223_v13 = vmax.f32 %v2095_v4, %v2103_v6  ;;  %v2237_v14 = vmax.f32 %v2097_v5, %v2105_v7 }
 0x5a3   :  { %v2230_v17 = vmax.f32 %v2096_v9, %v2104_v11  ;;  %v2244_v18 = vmax.f32 %v2098_v10, %v2106_v12  ;;  %v1687_v19 = vpop.f32.mrb[20].mxu0  ;;  %v1800_v20 = vpop.f32.mrb[52].mxu1 }
 0x5a4   :  { %v2224_v23 = vrot.slane %v2223_v13, 4  ;;  %v2238_v24 = vrot.slane %v2237_v14, 4  ;;  %v1688_v25 = vadd.f32 %v1687_v19, %v7375_v41  ;;  %v1801_v26 = vadd.f32 %v1800_v20, %v7379_v42  ;;  %v1689_v27 = vpop.f32.mrb[21].mxu0  ;;  %v1802_v29 = vpop.f32.mrb[53].mxu1 }
 0x5a5   :  { %v2231_v30 = vrot.slane %v2230_v17, 4  ;;  %v2245_v47 = vrot.slane %v2244_v18, 4  ;;  %v1690_v31 = vadd.f32 %v1689_v27, %v7382_v44  ;;  %v1803_v32 = vadd.f32 %v1802_v29, %v7386_v45  ;;  %v1691_v33 = vpop.f32.mrb[22].mxu0  ;;  %v1804_v34 = vpop.f32.mrb[54].mxu1 }
 0x5a6   :  { %v2225_v35 = vmax.f32 %v2223_v13, %v2224_v23  ;;  %v2239_v63 = vmax.f32 %v2237_v14, %v2238_v24  ;;  %v2111_v28 = vmax.f32 %v1688_v25, 0.0  ;;  %v2113_v40 = vmax.f32 %v1801_v26, 0.0  ;;  %v1693_v43 = vpop.f32.mrb[23].mxu0  ;;  %v1806_v49 = vpop.f32.mrb[55].mxu1 }
 0x5a7   :  { %v2232_v48 = vmax.f32 %v2230_v17, %v2231_v30  ;;  %v2246_v52 = vmax.f32 %v2244_v18, %v2245_v47  ;;  %v2112_v37 = vmax.f32 %v1690_v31, 0.0  ;;  %v2114_v46 = vmax.f32 %v1803_v32, 0.0 }
 0x5a8   :  { %v2226_v50 = vrot.slane %v2225_v35, 2  ;;  %v2240_v51 = vrot.slane %v2239_v63, 2  ;;  %v1692_v53 = vadd.f32 %v1691_v33, %v7375_v41  ;;  %v1805_v54 = vadd.f32 %v1804_v34, %v7379_v42 }
 0x5a9   :  { %v2233_v55 = vrot.slane %v2232_v48, 2  ;;  %v2247_v56 = vrot.slane %v2246_v52, 2  ;;  %v1694_v57 = vadd.f32 %v1693_v43, %v7382_v44  ;;  %v1807_v58 = vadd.f32 %v1806_v49, %v7386_v45 }
 0x5aa   :  { %v2227_v59 = vmax.f32 %v2225_v35, %v2226_v50  ;;  %v2241_v60 = vmax.f32 %v2239_v63, %v2240_v51  ;;  %v2119_v61 = vmax.f32 %v1692_v53, 0.0  ;;  %v2121_v62 = vmax.f32 %v1805_v54, 0.0 }
 0x5ab   :  { %v2234_v1 = vmax.f32 %v2232_v48, %v2233_v55  ;;  %v2248_v2 = vmax.f32 %v2246_v52, %v2247_v56  ;;  %v2120_v3 = vmax.f32 %v1694_v57, 0.0  ;;  %v2122_v4 = vmax.f32 %v1807_v58, 0.0  ;;  %v1697_v5 = vpop.f32.mrb[24].mxu0  ;;  %v1810_v6 = vpop.f32.mrb[56].mxu1 }
 0x5ac   :  { %v2228_v7 = vrot.slane %v2227_v59, 1  ;;  %v2242_v9 = vrot.slane %v2241_v60, 1  ;;  %v2279_v10 = vmax.f32 %v2111_v28, %v2119_v61  ;;  %v2293_v11 = vmax.f32 %v2113_v40, %v2121_v62  ;;  %v1699_v12 = vpop.f32.mrb[25].mxu0  ;;  %v1812_v13 = vpop.f32.mrb[57].mxu1 }
 0x5ad   :  { %v2235_v14 = vrot.slane %v2234_v1, 1  ;;  %v2249_v17 = vrot.slane %v2248_v2, 1  ;;  %v2286_v18 = vmax.f32 %v2112_v37, %v2120_v3  ;;  %v2300_v19 = vmax.f32 %v2114_v46, %v2122_v4  ;;  %v1701_v20 = vpop.f32.mrb[26].mxu0  ;;  %v1814_v23 = vpop.f32.mrb[58].mxu1 }
 0x5ae   :  { %v2229_v24 = vmax.f32 %v2227_v59, %v2228_v7  ;;  %v2243_v25 = vmax.f32 %v2241_v60, %v2242_v9  ;;  %v2280_v26 = vrot.slane %v2279_v10, 4  ;;  %v2294_v27 = vrot.slane %v2293_v11, 4  ;;  %v1703_v29 = vpop.f32.mrb[27].mxu0  ;;  %v1816_v30 = vpop.f32.mrb[59].mxu1 }
 0x5af   :  { %v2236_v47 = vmax.f32 %v2234_v1, %v2235_v14  ;;  %v2250_v31 = vmax.f32 %v2248_v2, %v2249_v17  ;;  %v2287_v32 = vrot.slane %v2286_v18, 4  ;;  %v2301_v33 = vrot.slane %v2300_v19, 4 }
 0x5b0   :  { %v2281_v34 = vmax.f32 %v2279_v10, %v2280_v26  ;;  %v2295_v35 = vmax.f32 %v2293_v11, %v2294_v27  ;;  %v1698_v63 = vadd.f32 %v1697_v5, %v7375_v41  ;;  %v1811_v28 = vadd.f32 %v1810_v6, %v7379_v42 }
 0x5b1   :  { %v2288_v40 = vmax.f32 %v2286_v18, %v2287_v32  ;;  %v2302_v43 = vmax.f32 %v2300_v19, %v2301_v33  ;;  %v1700_v49 = vadd.f32 %v1699_v12, %v7382_v44  ;;  %v1813_v48 = vadd.f32 %v1812_v13, %v7386_v45 }
 0x5b2   :  { %v2282_v52 = vrot.slane %v2281_v34, 2  ;;  %v2296_v37 = vrot.slane %v2295_v35, 2  ;;  %v2127_v46 = vmax.f32 %v1698_v63, 0.0  ;;  %v2129_v50 = vmax.f32 %v1811_v28, 0.0 }
 0x5b3   :  { %v2289_v51 = vrot.slane %v2288_v40, 2  ;;  %v2303_v53 = vrot.slane %v2302_v43, 2  ;;  %v2128_v54 = vmax.f32 %v1700_v49, 0.0  ;;  %v2130_v55 = vmax.f32 %v1813_v48, 0.0  ;;  %v1707_v56 = vpop.f32.mrb[28].mxu0  ;;  %v1820_v57 = vpop.f32.mrb[60].mxu1 }
 0x5b4   :  { %v2283_v58 = vmax.f32 %v2281_v34, %v2282_v52  ;;  %v2297_v59 = vmax.f32 %v2295_v35, %v2296_v37  ;;  %v1702_v60 = vadd.f32 %v1701_v20, %v7375_v41  ;;  %v1815_v61 = vadd.f32 %v1814_v23, %v7379_v42  ;;  %v1709_v62 = vpop.f32.mrb[29].mxu0  ;;  %v1822_v1 = vpop.f32.mrb[61].mxu1 }
 0x5b5   :  { %v2290_v2 = vmax.f32 %v2288_v40, %v2289_v51  ;;  %v2304_v3 = vmax.f32 %v2302_v43, %v2303_v53  ;;  %v1704_v4 = vadd.f32 %v1703_v29, %v7382_v44  ;;  %v1817_v5 = vadd.f32 %v1816_v30, %v7386_v45  ;;  %v1711_v6 = vpop.f32.mrb[30].mxu0  ;;  %v1824_v7 = vpop.f32.mrb[62].mxu1 }
 0x5b6   :  { %v2284_v9 = vrot.slane %v2283_v58, 1  ;;  %v2298_v10 = vrot.slane %v2297_v59, 1  ;;  %v2135_v11 = vmax.f32 %v1702_v60, 0.0  ;;  %v2137_v12 = vmax.f32 %v1815_v61, 0.0  ;;  %v1713_v13 = vpop.f32.mrb[31].mxu0  ;;  %v1826_v14 = vpop.f32.mrb[63].mxu1 }
 0x5b7   :  { %v2291_v17 = vrot.slane %v2290_v2, 1  ;;  %v2305_v18 = vrot.slane %v2304_v3, 1  ;;  %v2136_v19 = vmax.f32 %v1704_v4, 0.0  ;;  %v2138_v20 = vmax.f32 %v1817_v5, 0.0 }
 0x5b8   :  { %v2285_v23 = vmax.f32 %v2283_v58, %v2284_v9  ;;  %v2299_v26 = vmax.f32 %v2297_v59, %v2298_v10  ;;  %v2335_v27 = vmax.f32 %v2127_v46, %v2135_v11  ;;  %v2349_v32 = vmax.f32 %v2129_v50, %v2137_v12 }
 0x5b9   :  { %v2292_v33 = vmax.f32 %v2290_v2, %v2291_v17  ;;  %v2306_v29 = vmax.f32 %v2304_v3, %v2305_v18  ;;  %v2342_v34 = vmax.f32 %v2128_v54, %v2136_v19  ;;  %v2356_v30 = vmax.f32 %v2130_v55, %v2138_v20 }
 0x5ba   :  { %v7425_v35 = vsel %vm2743_vm3, %v2285_v23, %v2229_v24  ;;  %v7428_v63 = vsel %vm2743_vm3, %v2299_v26, %v2243_v25  ;;  %v2336_v28 = vrot.slane %v2335_v27, 4  ;;  %v2350_v40 = vrot.slane %v2349_v32, 4 }
 0x5bb   :  { %v7431_v43 = vsel %vm2743_vm3, %v2292_v33, %v2236_v47  ;;  %v7434_v49 = vsel %vm2743_vm3, %v2306_v29, %v2250_v31  ;;  %v2343_v48 = vrot.slane %v2342_v34, 4  ;;  %v2357_v52 = vrot.slane %v2356_v30, 4  ;;  %v7436_v37 = vpop.f32.mrb[32].mxu0  ;;  %v7438_v46 = vpop.f32.mrb[64].mxu1 }
 0x5bc   :  { %v2337_v24 = vmax.f32 %v2335_v27, %v2336_v28  ;;  %v2351_v50 = vmax.f32 %v2349_v32, %v2350_v40  ;;  %v1708_v25 = vadd.f32 %v1707_v56, %v7375_v41  ;;  %v1821_v51 = vadd.f32 %v1820_v57, %v7379_v42  ;;  %v7442_v53 = vpop.f32.mrb[33].mxu0  ;;  %v7444_v47 = vpop.f32.mrb[65].mxu1 }
 0x5bd   :  { %v2344_v54 = vmax.f32 %v2342_v34, %v2343_v48  ;;  %v2358_v31 = vmax.f32 %v2356_v30, %v2357_v52  ;;  %v1710_v55 = vadd.f32 %v1709_v62, %v7382_v44  ;;  %v1823_v58 = vadd.f32 %v1822_v1, %v7386_v45  ;;  %v7448_v59 = vpop.f32.mrb[34].mxu0  ;;  %v7450_v60 = vpop.f32.mrb[66].mxu1 }
 0x5be   :  { %v2338_v61 = vrot.slane %v2337_v24, 2  ;;  %v2352_v2 = vrot.slane %v2351_v50, 2  ;;  %v2143_v3 = vmax.f32 %v1708_v25, 0.0  ;;  %v2145_v56 = vmax.f32 %v1821_v51, 0.0  ;;  %v7452_v4 = vpop.f32.mrb[35].mxu0  ;;  %v7454_v57 = vpop.f32.mrb[67].mxu1 }
 0x5bf   :  { %v2345_v5 = vrot.slane %v2344_v54, 2  ;;  %v2359_v9 = vrot.slane %v2358_v31, 2  ;;  %v2144_v10 = vmax.f32 %v1710_v55, 0.0  ;;  %v2146_v11 = vmax.f32 %v1823_v58, 0.0 }
 0x5c0   :  { %v2339_v12 = vmax.f32 %v2337_v24, %v2338_v61  ;;  %v2353_v62 = vmax.f32 %v2351_v50, %v2352_v2  ;;  %v1712_v1 = vadd.f32 %v1711_v6, %v7375_v41  ;;  %v1825_v17 = vadd.f32 %v1824_v7, %v7379_v42 }
 0x5c1   :  { %v2346_v18 = vmax.f32 %v2344_v54, %v2345_v5  ;;  %v2360_v19 = vmax.f32 %v2358_v31, %v2359_v9  ;;  %v1714_v20 = vadd.f32 %v1713_v13, %v7382_v44  ;;  %v1827_v23 = vadd.f32 %v1826_v14, %v7386_v45 }
 0x5c2   :  { %v2340_v26 = vrot.slane %v2339_v12, 1  ;;  %v2354_v27 = vrot.slane %v2353_v62, 1  ;;  %v2151_v32 = vmax.f32 %v1712_v1, 0.0  ;;  %v2153_v33 = vmax.f32 %v1825_v17, 0.0 }
 0x5c3   :  { %v2347_v29 = vrot.slane %v2346_v18, 1  ;;  %v2361_v34 = vrot.slane %v2360_v19, 1  ;;  %v2152_v30 = vmax.f32 %v1714_v20, 0.0  ;;  %v2154_v28 = vmax.f32 %v1827_v23, 0.0  ;;  %v7460_v40 = vpop.f32.mrb[36].mxu0  ;;  %v7462_v48 = vpop.f32.mrb[68].mxu1 }
 0x5c4   :  { %v2341_v6 = vmax.f32 %v2339_v12, %v2340_v26  ;;  %v2355_v7 = vmax.f32 %v2353_v62, %v2354_v27  ;;  %v2391_v52 = vmax.f32 %v2143_v3, %v2151_v32  ;;  %v2405_v24 = vmax.f32 %v2145_v56, %v2153_v33  ;;  %v7464_v50 = vpop.f32.mrb[37].mxu0  ;;  %v7466_v13 = vpop.f32.mrb[69].mxu1 }
 0x5c5   :  { %v2348_v14 = vmax.f32 %v2346_v18, %v2347_v29  ;;  %v2362_v25 = vmax.f32 %v2360_v19, %v2361_v34  ;;  %v2398_v51 = vmax.f32 %v2144_v10, %v2152_v30  ;;  %v2412_v54 = vmax.f32 %v2146_v11, %v2154_v28  ;;  %v7468_v31 = vpop.f32.mrb[38].mxu0  ;;  %v7470_v55 = vpop.f32.mrb[70].mxu1 }
 0x5c6   :  { %v2746_v58 = vsel %vm2745_vm4, %v2341_v6, %v7425_v35  ;;  %v2765_v61 = vsel %vm2745_vm4, %v2355_v7, %v7428_v63  ;;  %v2392_v2 = vrot.slane %v2391_v52, 4  ;;  %v2406_v3 = vrot.slane %v2405_v24, 4  ;;  %v7476_v56 = vpop.f32.mrb[39].mxu0  ;;  %v7478_v5 = vpop.f32.mrb[71].mxu1 }
 0x5c7   :  { %v7482_v9 = vsel %vm2745_vm4, %v2348_v14, %v7431_v43  ;;  %v7486_v10 = vsel %vm2745_vm4, %v2362_v25, %v7434_v49  ;;  %v2399_v11 = vrot.slane %v2398_v51, 4  ;;  %v2413_v35 = vrot.slane %v2412_v54, 4 }
 0x5c8   :  { %8111 = vst [vmem:[#allocation32_spill] sm:$0xff] %v7486_v10  ;;  %v2393_v12 = vmax.f32 %v2391_v52, %v2392_v2  ;;  %v2407_v62 = vmax.f32 %v2405_v24, %v2406_v3  ;;  %v1718_v63 = vadd.f32 %v7436_v37, %v7375_v41  ;;  %v1831_v1 = vadd.f32 %v7438_v46, %v7379_v42 }
 0x5c9   :  { %v2400_v17 = vmax.f32 %v2398_v51, %v2399_v11  ;;  %v2414_v18 = vmax.f32 %v2412_v54, %v2413_v35  ;;  %v1720_v43 = vadd.f32 %v7442_v53, %v7382_v44  ;;  %v1833_v49 = vadd.f32 %v7444_v47, %v7386_v45 }
 0x5ca   :  { %v2394_v19 = vrot.slane %v2393_v12, 2  ;;  %v2408_v20 = vrot.slane %v2407_v62, 2  ;;  %v2159_v23 = vmax.f32 %v1718_v63, 0.0  ;;  %v2161_v26 = vmax.f32 %v1831_v1, 0.0 }
 0x5cb   :  { %v2401_v27 = vrot.slane %v2400_v17, 2  ;;  %v2415_v32 = vrot.slane %v2414_v18, 2  ;;  %v2160_v33 = vmax.f32 %v1720_v43, 0.0  ;;  %v2162_v29 = vmax.f32 %v1833_v49, 0.0  ;;  %v7496_v37 = vpop.f32.mrb[40].mxu0  ;;  %v7498_v34 = vpop.f32.mrb[72].mxu1 }
 0x5cc   :  { %v2395_v46 = vmax.f32 %v2393_v12, %v2394_v19  ;;  %v2409_v30 = vmax.f32 %v2407_v62, %v2408_v20  ;;  %v1722_v53 = vadd.f32 %v7448_v59, %v7375_v41  ;;  %v1835_v47 = vadd.f32 %v7450_v60, %v7379_v42  ;;  %v7504_v28 = vpop.f32.mrb[41].mxu0  ;;  %v7506_v6 = vpop.f32.mrb[73].mxu1 }
 0x5cd   :  { %v2402_v7 = vmax.f32 %v2400_v17, %v2401_v27  ;;  %v2416_v52 = vmax.f32 %v2414_v18, %v2415_v32  ;;  %v1724_v24 = vadd.f32 %v7452_v4, %v7382_v44  ;;  %v1837_v14 = vadd.f32 %v7454_v57, %v7386_v45  ;;  %v7512_v25 = vpop.f32.mrb[42].mxu0  ;;  %v7514_v51 = vpop.f32.mrb[74].mxu1 }
 0x5ce   :  { %v2396_v59 = vrot.slane %v2395_v46, 1  ;;  %v2410_v54 = vrot.slane %v2409_v30, 1  ;;  %v2167_v2 = vmax.f32 %v1722_v53, 0.0  ;;  %v2169_v60 = vmax.f32 %v1835_v47, 0.0  ;;  %v7516_v3 = vpop.f32.mrb[43].mxu0  ;;  %v7518_v11 = vpop.f32.mrb[75].mxu1 }
 0x5cf   :  { %v2403_v35 = vrot.slane %v2402_v7, 1  ;;  %v2417_v12 = vrot.slane %v2416_v52, 1  ;;  %v2168_v62 = vmax.f32 %v1724_v24, 0.0  ;;  %v2170_v63 = vmax.f32 %v1837_v14, 0.0 }
 0x5d0   :  { %v2397_v4 = vmax.f32 %v2395_v46, %v2396_v59  ;;  %v2411_v1 = vmax.f32 %v2409_v30, %v2410_v54  ;;  %v2447_v17 = vmax.f32 %v2159_v23, %v2167_v2  ;;  %v2461_v57 = vmax.f32 %v2161_v26, %v2169_v60 }
 0x5d1   :  { %v7520_v18 = vmax.f32 %v2402_v7, %v2403_v35  ;;  %v7522_v43 = vmax.f32 %v2416_v52, %v2417_v12  ;;  %v2454_v49 = vmax.f32 %v2160_v33, %v2168_v62  ;;  %v2468_v19 = vmax.f32 %v2162_v29, %v2170_v63 }
 0x5d2   :  { %v7525_v20 = vsel %vm2747_vm5, %v2397_v4, %v2746_v58  ;;  %v7528_v27 = vsel %vm2747_vm5, %v2411_v1, %v2765_v61  ;;  %v2448_v32 = vrot.slane %v2447_v17, 4  ;;  %v2462_v53 = vrot.slane %v2461_v57, 4 }
 0x5d3   :  { %8112 = vst [vmem:[#allocation33_spill] sm:$0xff] %v7522_v43  ;;  %v2455_v47 = vrot.slane %v2454_v49, 4  ;;  %v2469_v46 = vrot.slane %v2468_v19, 4  ;;  %v1728_v23 = vadd.f32 %v7460_v40, %v7375_v41  ;;  %v1841_v26 = vadd.f32 %v7462_v48, %v7379_v42  ;;  %v7534_v30 = vpop.f32.mrb[44].mxu0  ;;  %v7536_v33 = vpop.f32.mrb[76].mxu1 }
 0x5d4   :  { %v2449_v58 = vmax.f32 %v2447_v17, %v2448_v32  ;;  %v2463_v29 = vmax.f32 %v2461_v57, %v2462_v53  ;;  %v1730_v61 = vadd.f32 %v7464_v50, %v7382_v44  ;;  %v1843_v7 = vadd.f32 %v7466_v13, %v7386_v45  ;;  %v7542_v52 = vpop.f32.mrb[45].mxu0  ;;  %v7544_v24 = vpop.f32.mrb[77].mxu1 }
 0x5d5   :  { %v2456_v40 = vmax.f32 %v2454_v49, %v2455_v47  ;;  %v2470_v14 = vmax.f32 %v2468_v19, %v2469_v46  ;;  %v2175_v59 = vmax.f32 %v1728_v23, 0.0  ;;  %v2177_v48 = vmax.f32 %v1841_v26, 0.0  ;;  %v7546_v54 = vpop.f32.mrb[46].mxu0  ;;  %v7548_v2 = vpop.f32.mrb[78].mxu1 }
 0x5d6   :  { %v2450_v60 = vrot.slane %v2449_v58, 2  ;;  %v2464_v35 = vrot.slane %v2463_v29, 2  ;;  %v2176_v12 = vmax.f32 %v1730_v61, 0.0  ;;  %v2178_v62 = vmax.f32 %v1843_v7, 0.0  ;;  %v7550_v50 = vpop.f32.mrb[47].mxu0  ;;  %v7552_v63 = vpop.f32.mrb[79].mxu1 }
 0x5d7   :  { %v2457_v13 = vrot.slane %v2456_v40, 2  ;;  %v2471_v4 = vrot.slane %v2470_v14, 2  ;;  %v1732_v1 = vadd.f32 %v7468_v31, %v7375_v41  ;;  %v1845_v17 = vadd.f32 %v7470_v55, %v7379_v42 }
 0x5d8   :  { %v2451_v57 = vmax.f32 %v2449_v58, %v2450_v60  ;;  %v2465_v49 = vmax.f32 %v2463_v29, %v2464_v35  ;;  %v1734_v19 = vadd.f32 %v7476_v56, %v7382_v44  ;;  %v1847_v32 = vadd.f32 %v7478_v5, %v7386_v45 }
 0x5d9   :  { %v2458_v53 = vmax.f32 %v2456_v40, %v2457_v13  ;;  %v2472_v47 = vmax.f32 %v2470_v14, %v2471_v4  ;;  %v2183_v46 = vmax.f32 %v1732_v1, 0.0  ;;  %v2185_v23 = vmax.f32 %v1845_v17, 0.0 }
 0x5da   :  { %v2452_v26 = vrot.slane %v2451_v57, 1  ;;  %v2466_v61 = vrot.slane %v2465_v49, 1  ;;  %v2184_v7 = vmax.f32 %v1734_v19, 0.0  ;;  %v2186_v36 = vmax.f32 %v1847_v32, 0.0 }
 0x5db   :  { %v2459_v31 = vrot.slane %v2458_v53, 1  ;;  %v2473_v39 = vrot.slane %v2472_v47, 1  ;;  %v2503_v0 = vmax.f32 %v2175_v59, %v2183_v46  ;;  %v2517_v55 = vmax.f32 %v2177_v48, %v2185_v23  ;;  %v7562_v58 = vpop.f32.mrb[48].mxu0  ;;  %v7564_v29 = vpop.f32.mrb[80].mxu1 }
 0x5dc   :  { %v2453_v56 = vmax.f32 %v2451_v57, %v2452_v26  ;;  %v2467_v60 = vmax.f32 %v2465_v49, %v2466_v61  ;;  %v2510_v35 = vmax.f32 %v2176_v12, %v2184_v7  ;;  %v2524_v5 = vmax.f32 %v2178_v62, %v2186_v36  ;;  %v7566_v40 = vpop.f32.mrb[49].mxu0  ;;  %v7568_v14 = vpop.f32.mrb[81].mxu1 }
 0x5dd   :  { %v7570_v13 = vmax.f32 %v2458_v53, %v2459_v31  ;;  %v7572_v4 = vmax.f32 %v2472_v47, %v2473_v39  ;;  %v2504_v1 = vrot.slane %v2503_v0, 4  ;;  %v2518_v17 = vrot.slane %v2517_v55, 4  ;;  %v7574_v59 = vpop.f32.mrb[50].mxu0  ;;  %v7576_v48 = vpop.f32.mrb[82].mxu1 }
 0x5de   :  { %v2750_v57 = vsel %vm2749_vm6, %v2453_v56, %v7525_v20  ;;  %v7582_v36 = vsel %vm2749_vm6, %v2467_v60, %v7528_v27  ;;  %v2511_v12 = vrot.slane %v2510_v35, 4  ;;  %v2525_v62 = vrot.slane %v2524_v5, 4  ;;  %v7584_v49 = vpop.f32.mrb[51].mxu0  ;;  %v7586_v39 = vpop.f32.mrb[83].mxu1 }
 0x5df   :  { %8113 = vst [vmem:[#allocation34_spill] sm:$0xff] %v7570_v13  ;;  %8114 = vst [vmem:[#allocation35_spill] sm:$0xff] %v7572_v4  ;;  %v2505_v19 = vmax.f32 %v2503_v0, %v2504_v1  ;;  %v2519_v32 = vmax.f32 %v2517_v55, %v2518_v17  ;;  %v1738_v53 = vadd.f32 %v7496_v37, %v7375_v41 }
 0x5e0   :  { %8115 = vst [vmem:[#allocation36_spill] sm:$0xff] %v7582_v36  ;;  %v1851_v47 = vadd.f32 %v7498_v34, %v7379_v42  ;;  %v2512_v20 = vmax.f32 %v2510_v35, %v2511_v12  ;;  %v2526_v46 = vmax.f32 %v2524_v5, %v2525_v62  ;;  %v1740_v27 = vadd.f32 %v7504_v28, %v7382_v44 }
 0x5e1   :  { %v1853_v23 = vadd.f32 %v7506_v6, %v7386_v45  ;;  %v2506_v26 = vrot.slane %v2505_v19, 2  ;;  %v2520_v61 = vrot.slane %v2519_v32, 2  ;;  %v2191_v7 = vmax.f32 %v1738_v53, 0.0 }
 0x5e2   :  { %v2193_v31 = vmax.f32 %v1851_v47, 0.0  ;;  %v2513_v0 = vrot.slane %v2512_v20, 2  ;;  %v2527_v55 = vrot.slane %v2526_v46, 2  ;;  %v2192_v56 = vmax.f32 %v1740_v27, 0.0 }
 0x5e3   :  { %v2194_v60 = vmax.f32 %v1853_v23, 0.0  ;;  %v2507_v37 = vmax.f32 %v2505_v19, %v2506_v26  ;;  %v2521_v1 = vmax.f32 %v2519_v32, %v2520_v61  ;;  %v1742_v34 = vadd.f32 %v7512_v25, %v7375_v41  ;;  %v7600_v28 = vpop.f32.mrb[52].mxu0  ;;  %v7602_v5 = vpop.f32.mrb[84].mxu1 }
 0x5e4   :  { %v1855_v35 = vadd.f32 %v7514_v51, %v7379_v42  ;;  %v2514_v6 = vmax.f32 %v2512_v20, %v2513_v0  ;;  %v2528_v17 = vmax.f32 %v2526_v46, %v2527_v55  ;;  %v1744_v12 = vadd.f32 %v7516_v3, %v7382_v44  ;;  %v7608_v19 = vpop.f32.mrb[53].mxu0  ;;  %v7610_v32 = vpop.f32.mrb[85].mxu1 }
 0x5e5   :  { %v1857_v62 = vadd.f32 %v7518_v11, %v7386_v45  ;;  %v2508_v25 = vrot.slane %v2507_v37, 1  ;;  %v2522_v53 = vrot.slane %v2521_v1, 1  ;;  %v2199_v47 = vmax.f32 %v1742_v34, 0.0  ;;  %v7612_v27 = vpop.f32.mrb[54].mxu0  ;;  %v7614_v23 = vpop.f32.mrb[86].mxu1 }
 0x5e6   :  { %v2201_v51 = vmax.f32 %v1855_v35, 0.0  ;;  %v2515_v20 = vrot.slane %v2514_v6, 1  ;;  %v2529_v46 = vrot.slane %v2528_v17, 1  ;;  %v2200_v26 = vmax.f32 %v1744_v12, 0.0  ;;  %v7616_v3 = vpop.f32.mrb[55].mxu0  ;;  %v7618_v0 = vpop.f32.mrb[87].mxu1 }
 0x5e7   :  { %v2202_v61 = vmax.f32 %v1857_v62, 0.0  ;;  %v2509_v11 = vmax.f32 %v2507_v37, %v2508_v25  ;;  %v7620_v55 = vmax.f32 %v2521_v1, %v2522_v53  ;;  %v2559_v38 = vmax.f32 %v2191_v7, %v2199_v47 }
 0x5e8   :  { %v2573_v8 = vmax.f32 %v2193_v31, %v2201_v51  ;;  %v7622_v36 = vmax.f32 %v2514_v6, %v2515_v20  ;;  %v7624_v34 = vmax.f32 %v2528_v17, %v2529_v46  ;;  %v2566_v35 = vmax.f32 %v2192_v56, %v2200_v26 }
 0x5e9   :  { %8116 = vst [vmem:[#allocation37_spill] sm:$0xff] %v7620_v55  ;;  %v2580_v4 = vmax.f32 %v2194_v60, %v2202_v61  ;;  %v2752_v43 = vsel %vm2751_vm7, %v2509_v11, %v2750_v57  ;;  %v2560_v10 = vrot.slane %v2559_v38, 4  ;;  %v1748_v62 = vadd.f32 %v7534_v30, %v7375_v41 }
 0x5ea   :  { %8117 = vst [vmem:[#allocation38_spill] sm:$0xff] %v7622_v36  ;;  %8118 = vst [vmem:[#allocation39_spill] sm:$0xff] %v7624_v34  ;;  %v2574_v12 = vrot.slane %v2573_v8, 4  ;;  %v2567_v13 = vrot.slane %v2566_v35, 4  ;;  %v1861_v7 = vadd.f32 %v7536_v33, %v7379_v42  ;;  %v1750_v31 = vadd.f32 %v7542_v52, %v7382_v44 }
 0x5eb   :  { %v2581_v37 = vrot.slane %v2580_v4, 4  ;;  %v2561_v1 = vmax.f32 %v2559_v38, %v2560_v10  ;;  %v2207_v56 = vmax.f32 %v1748_v62, 0.0  ;;  %v1863_v57 = vadd.f32 %v7544_v24, %v7386_v45  ;;  %v7635_v60 = vpop.f32.mrb[56].mxu0  ;;  %v7637_v17 = vpop.f32.mrb[88].mxu1 }
 0x5ec   :  { %v2575_v6 = vmax.f32 %v2573_v8, %v2574_v12  ;;  %v2568_v30 = vmax.f32 %v2566_v35, %v2567_v13  ;;  %v2209_v53 = vmax.f32 %v1861_v7, 0.0  ;;  %v2208_v47 = vmax.f32 %v1750_v31, 0.0  ;;  %v7639_v51 = vpop.f32.mrb[57].mxu0  ;;  %v7641_v33 = vpop.f32.mrb[89].mxu1 }
 0x5ed   :  { %v2582_v25 = vmax.f32 %v2580_v4, %v2581_v37  ;;  %v2562_v20 = vrot.slane %v2561_v1, 2  ;;  %v2210_v38 = vmax.f32 %v1863_v57, 0.0  ;;  %v1752_v8 = vadd.f32 %v7546_v54, %v7375_v41  ;;  %v7645_v10 = vpop.f32.mrb[58].mxu0  ;;  %v7647_v24 = vpop.f32.mrb[90].mxu1 }
 0x5ee   :  { %v2576_v52 = vrot.slane %v2575_v6, 2  ;;  %v2569_v46 = vrot.slane %v2568_v30, 2  ;;  %v1865_v13 = vadd.f32 %v7548_v2, %v7379_v42  ;;  %v1754_v4 = vadd.f32 %v7550_v50, %v7382_v44  ;;  %v7653_v61 = vpop.f32.mrb[59].mxu0  ;;  %v7655_v11 = vpop.f32.mrb[91].mxu1 }
 0x5ef   :  { %v2583_v26 = vrot.slane %v2582_v25, 2  ;;  %8119 = vst [vmem:[#allocation40_spill] sm:$0xff] %v7653_v61  ;;  %8120 = vst [vmem:[#allocation41_spill] sm:$0xff] %v7655_v11  ;;  %v2563_v35 = vmax.f32 %v2561_v1, %v2562_v20  ;;  %v2215_v62 = vmax.f32 %v1752_v8, 0.0  ;;  %v1867_v41 = vadd.f32 %v7552_v63, %v7386_v45 }
 0x5f0   :  { %v2577_v12 = vmax.f32 %v2575_v6, %v2576_v52  ;;  %v2570_v54 = vmax.f32 %v2568_v30, %v2569_v46  ;;  %v2217_v7 = vmax.f32 %v1865_v13, 0.0  ;;  %v2216_v31 = vmax.f32 %v1754_v4, 0.0 }
 0x5f1   :  { %v2584_v37 = vmax.f32 %v2582_v25, %v2583_v26  ;;  %v2564_v57 = vrot.slane %v2563_v35, 1  ;;  %v2615_v42 = vmax.f32 %v2207_v56, %v2215_v62  ;;  %v2218_v2 = vmax.f32 %v1867_v41, 0.0 }
 0x5f2   :  { %v2578_v55 = vrot.slane %v2577_v12, 1  ;;  %v2571_v34 = vrot.slane %v2570_v54, 1  ;;  %v2629_v50 = vmax.f32 %v2209_v53, %v2217_v7  ;;  %v2622_v61 = vmax.f32 %v2208_v47, %v2216_v31 }
 0x5f3   :  { %v2585_v44 = vrot.slane %v2584_v37, 1  ;;  %v2565_v36 = vmax.f32 %v2563_v35, %v2564_v57  ;;  %v2616_v1 = vrot.slane %v2615_v42, 4  ;;  %v2636_v6 = vmax.f32 %v2210_v38, %v2218_v2  ;;  %v7661_v20 = vpop.f32.mrb[60].mxu0  ;;  %v7663_v45 = vpop.f32.mrb[92].mxu1 }
 0x5f4   :  { %v7659_v11 = vmax.f32 %v2577_v12, %v2578_v55  ;;  %v7665_v63 = vmax.f32 %v2570_v54, %v2571_v34  ;;  %v2630_v25 = vrot.slane %v2629_v50, 4  ;;  %v2623_v56 = vrot.slane %v2622_v61, 4  ;;  %v7669_v52 = vpop.f32.mrb[61].mxu0  ;;  %v7671_v8 = vpop.f32.mrb[93].mxu1 }
 0x5f5   :  { %v7667_v30 = vmax.f32 %v2584_v37, %v2585_v44  ;;  %v7674_v53 = vsel %vm2753_vm8, %v2565_v36, %v2752_v43  ;;  %v2617_v55 = vmax.f32 %v2615_v42, %v2616_v1  ;;  %v2637_v47 = vrot.slane %v2636_v6, 4  ;;  %v7678_v46 = vpop.f32.mrb[62].mxu0  ;;  %v7680_v34 = vpop.f32.mrb[94].mxu1 }
 0x5f6   :  { %8121 = vst [vmem:[#allocation42_spill] sm:$0xff] %v7659_v11  ;;  %v1904_v38 = vadd.f32 %v7562_v58, %v7400_v15  ;;  %v2631_v26 = vmax.f32 %v2629_v50, %v2630_v25  ;;  %v2624_v13 = vmax.f32 %v2622_v61, %v2623_v56  ;;  %v2017_v4 = vadd.f32 %v7564_v29, %v7402_v16  ;;  %v7686_v12 = vpop.f32.mrb[63].mxu0  ;;  %v7688_v43 = vpop.f32.mrb[95].mxu1 }
 0x5f7   :  { %v1906_v35 = vadd.f32 %v7566_v40, %v7404_v21  ;;  %v2618_v36 = vrot.slane %v2617_v55, 2  ;;  %v2638_v62 = vmax.f32 %v2636_v6, %v2637_v47  ;;  %v2019_v58 = vadd.f32 %v7568_v14, %v7406_v22 }
 0x5f8   :  { %v2099_v41 = vmax.f32 %v1904_v38, 0.0  ;;  %v2632_v54 = vrot.slane %v2631_v26, 2  ;;  %v2625_v37 = vrot.slane %v2624_v13, 2  ;;  %v2101_v7 = vmax.f32 %v2017_v4, 0.0 }
 0x5f9   :  { %v2100_v61 = vmax.f32 %v1906_v35, 0.0  ;;  %v2619_v31 = vmax.f32 %v2617_v55, %v2618_v36  ;;  %v2639_v57 = vrot.slane %v2638_v62, 2  ;;  %v2102_v29 = vmax.f32 %v2019_v58, 0.0 }
 0x5fa   :  { %v1908_v40 = vadd.f32 %v7574_v59, %v7400_v15  ;;  %v2633_v42 = vmax.f32 %v2631_v26, %v2632_v54  ;;  %v7694_v2 = vmax.f32 %v2624_v13, %v2625_v37  ;;  %v2021_v44 = vadd.f32 %v7576_v48, %v7402_v16 }
 0x5fb   :  { %v1910_v50 = vadd.f32 %v7584_v49, %v7404_v21  ;;  %v2620_v14 = vrot.slane %v2619_v31, 1  ;;  %v7700_v1 = vmax.f32 %v2638_v62, %v2639_v57  ;;  %v2023_v25 = vadd.f32 %v7586_v39, %v7406_v22  ;;  %v7704_v56 = vpop.f32.mrb[64].mxu0  ;;  %v7706_v55 = vpop.f32.mrb[96].mxu1 }
 0x5fc   :  { %v2107_v6 = vmax.f32 %v1908_v40, 0.0  ;;  %v2634_v59 = vrot.slane %v2633_v42, 1  ;;  %v2109_v38 = vmax.f32 %v2021_v44, 0.0  ;;  %v7709_v48 = vpop.f32.mrb[65].mxu0  ;;  %v7711_v13 = vpop.f32.mrb[97].mxu1  ;;  %v1914_v57 = vadd.f32 %v7600_v28, %v7400_v15 }
 0x5fd   :  { %v2108_v26 = vmax.f32 %v1910_v50, 0.0  ;;  %v7713_v49 = vmax.f32 %v2619_v31, %v2620_v14  ;;  %v2110_v36 = vmax.f32 %v2023_v25, 0.0  ;;  %v7716_v39 = vpop.f32.mrb[66].mxu0  ;;  %v7718_v62 = vpop.f32.mrb[98].mxu1  ;;  %v1916_v14 = vadd.f32 %v7608_v19, %v7404_v21 }
 0x5fe   :  { %v2251_v35 = vmax.f32 %v2099_v41, %v2107_v6  ;;  %8122 = vst [vmem:[#allocation43_spill] sm:$0xff] %v7718_v62  ;;  %v7720_v58 = vmax.f32 %v2633_v42, %v2634_v59  ;;  %v2265_v54 = vmax.f32 %v2101_v7, %v2109_v38  ;;  %v7724_v40 = vpop.f32.mrb[67].mxu0  ;;  %v7726_v44 = vpop.f32.mrb[99].mxu1  ;;  %v2027_v41 = vadd.f32 %v7602_v5, %v7402_v16 }
 0x5ff   :  { %v2258_v37 = vmax.f32 %v2100_v61, %v2108_v26  ;;  %8124 = vst [vmem:[#allocation45_spill] sm:$0xff] %v7724_v40  ;;  %8125 = vst [vmem:[#allocation46_spill] sm:$0xff] %v7726_v44  ;;  %v2272_v50 = vmax.f32 %v2102_v29, %v2110_v36  ;;  %v2115_v25 = vmax.f32 %v1914_v57, 0.0  ;;  %v2029_v7 = vadd.f32 %v7610_v32, %v7406_v22 }
 0x600   :  { %8123 = vst [vmem:[#allocation44_spill] sm:$0xff] %v7720_v58  ;;  %v2252_v31 = vrot.slane %v2251_v35, 4  ;;  %v2266_v6 = vrot.slane %v2265_v54, 4  ;;  %v2117_v59 = vmax.f32 %v2027_v41, 0.0  ;;  %v2116_v38 = vmax.f32 %v1916_v14, 0.0 }
 0x601   :  { %v2259_v42 = vrot.slane %v2258_v37, 4  ;;  %v2273_v28 = vrot.slane %v2272_v50, 4  ;;  %v2118_v47 = vmax.f32 %v2029_v7, 0.0  ;;  %v1918_v29 = vadd.f32 %v7612_v27, %v7400_v15 }
 0x602   :  { %v2253_v61 = vmax.f32 %v2251_v35, %v2252_v31  ;;  %v2267_v26 = vmax.f32 %v2265_v54, %v2266_v6  ;;  %v2031_v19 = vadd.f32 %v7614_v23, %v7402_v16  ;;  %v1920_v57 = vadd.f32 %v7616_v3, %v7404_v21 }
 0x603   :  { %v2260_v4 = vmax.f32 %v2258_v37, %v2259_v42  ;;  %v2274_v36 = vmax.f32 %v2272_v50, %v2273_v28  ;;  %v7740_v58 = vpop.f32.mrb[68].mxu0  ;;  %v7742_v32 = vpop.f32.mrb[100].mxu1  ;;  %v2123_v54 = vmax.f32 %v1918_v29, 0.0  ;;  %v2033_v37 = vadd.f32 %v7618_v0, %v7406_v22 }
 0x604   :  { %v2254_v5 = vrot.slane %v2253_v61, 2  ;;  %8126 = vst [vmem:[#allocation47_spill] sm:$0xff] %v7740_v58  ;;  %8127 = vst [vmem:[#allocation48_spill] sm:$0xff] %v7742_v32  ;;  %v2268_v35 = vrot.slane %v2267_v26, 2  ;;  %v7746_v41 = vpop.f32.mrb[69].mxu0  ;;  %v7748_v27 = vpop.f32.mrb[101].mxu1 }
 0x605   :  { %v2261_v31 = vrot.slane %v2260_v4, 2  ;;  %8128 = vst [vmem:[#allocation49_spill] sm:$0xff] %v7746_v41  ;;  %8129 = vst [vmem:[#allocation50_spill] sm:$0xff] %v7748_v27  ;;  %v2275_v14 = vrot.slane %v2274_v36, 2  ;;  %v2125_v23 = vmax.f32 %v2031_v19, 0.0  ;;  %v2124_v6 = vmax.f32 %v1920_v57, 0.0 }
 0x606   :  { %v2255_v50 = vmax.f32 %v2253_v61, %v2254_v5  ;;  %v7750_v42 = vpop.f32.mrb[70].mxu0  ;;  %v7752_v3 = vpop.f32.mrb[102].mxu1  ;;  %v2269_v7 = vmax.f32 %v2267_v26, %v2268_v35  ;;  %v2307_v11 = vmax.f32 %v2115_v25, %v2123_v54  ;;  %v2126_v32 = vmax.f32 %v2033_v37, 0.0 }
 0x607   :  { %8130 = vst [vmem:[#allocation51_spill] sm:$0xff] %v7750_v42  ;;  %8131 = vst [vmem:[#allocation52_spill] sm:$0xff] %v7752_v3  ;;  %v2262_v28 = vmax.f32 %v2260_v4, %v2261_v31  ;;  %v7754_v29 = vpop.f32.mrb[71].mxu0  ;;  %v7756_v58 = vpop.f32.mrb[103].mxu1  ;;  %v2276_v41 = vmax.f32 %v2274_v36, %v2275_v14  ;;  %v2321_v44 = vmax.f32 %v2117_v59, %v2125_v23 }
 0x608   :  { %v2256_v0 = vrot.slane %v2255_v50, 1  ;;  %v2314_v27 = vmax.f32 %v2116_v38, %v2124_v6  ;;  %v2270_v61 = vrot.slane %v2269_v7, 1  ;;  %v2308_v19 = vrot.slane %v2307_v11, 4 }
 0x609   :  { %v2263_v5 = vrot.slane %v2262_v28, 1  ;;  %v2328_v57 = vmax.f32 %v2118_v47, %v2126_v32  ;;  %v2277_v42 = vrot.slane %v2276_v41, 1  ;;  %v2322_v62 = vrot.slane %v2321_v44, 4 }
 0x60a   :  { %v2257_v40 = vmax.f32 %v2255_v50, %v2256_v0  ;;  %v2315_v3 = vrot.slane %v2314_v27, 4  ;;  %v2271_v4 = vmax.f32 %v2269_v7, %v2270_v61  ;;  %v2309_v26 = vmax.f32 %v2307_v11, %v2308_v19 }
 0x60b   :  { %v2264_v25 = vmax.f32 %v2262_v28, %v2263_v5  ;;  %v2329_v35 = vrot.slane %v2328_v57, 4  ;;  %v2278_v31 = vmax.f32 %v2276_v41, %v2277_v42  ;;  %v2323_v54 = vmax.f32 %v2321_v44, %v2322_v62  ;;  %v7760_v38 = vpop.f32.mrb[72].mxu0  ;;  %v7762_v36 = vpop.f32.mrb[104].mxu1 }
 0x60c   :  { %v2316_v37 = vmax.f32 %v2314_v27, %v2315_v3  ;;  %v1924_v59 = vadd.f32 %v7635_v60, %v7400_v15  ;;  %v2310_v47 = vrot.slane %v2309_v26, 2  ;;  %v2037_v50 = vadd.f32 %v7637_v17, %v7402_v16  ;;  %v7770_v11 = vpop.f32.mrb[73].mxu0  ;;  %v7772_v62 = vpop.f32.mrb[105].mxu1 }
 0x60d   :  { %v2330_v32 = vmax.f32 %v2328_v57, %v2329_v35  ;;  %v7768_v14 = vadd.f32 %v7639_v51, %v7404_v21  ;;  %v2324_v44 = vrot.slane %v2323_v54, 2  ;;  %v7776_v27 = vadd.f32 %v7641_v33, %v7406_v22  ;;  %v7778_v23 = vpop.f32.mrb[74].mxu0  ;;  %v7780_v6 = vpop.f32.mrb[106].mxu1  ;;  %v8134_v51 = vld [vmem:[#allocation34_spill] sm:$0xff] }
 0x60e   :  { %v2317_v41 = vrot.slane %v2316_v37, 2  ;;  %v2131_v60 = vmax.f32 %v1924_v59, 0.0  ;;  %v2311_v17 = vmax.f32 %v2309_v26, %v2310_v47  ;;  %v2133_v3 = vmax.f32 %v2037_v50, 0.0  ;;  %v7783_v7 = vpop.f32.mrb[75].mxu0  ;;  %v7785_v28 = vpop.f32.mrb[107].mxu1 }
 0x60f   :  { %v2331_v42 = vrot.slane %v2330_v32, 2  ;;  %8132 = vst [vmem:[#allocation53_spill] sm:$0xff] %v7785_v28  ;;  %v2325_v0 = vmax.f32 %v2323_v54, %v2324_v44  ;;  %v8133_v33 = vrot.slane %v7694_v2, 1  ;;  %v2759_v26 = vsel %vm2747_vm5, %v7520_v18, %v7482_v9 }
 0x610   :  { %v2318_v61 = vmax.f32 %v2316_v37, %v2317_v41  ;;  %v2312_v57 = vrot.slane %v2311_v17, 1  ;;  %v1928_v59 = vadd.f32 %v7645_v10, %v7400_v15  ;;  %v2760_v54 = vsel %vm2749_vm6, %v8134_v51, %v2759_v26 }
 0x611   :  { %v2628_v19 = vmax.f32 %v7694_v2, %v8133_v33  ;;  %v2332_v35 = vmax.f32 %v2330_v32, %v2331_v42  ;;  %v2326_v47 = vrot.slane %v2325_v0, 1  ;;  %v2041_v37 = vadd.f32 %v7647_v24, %v7402_v16  ;;  %v8135_v2 = vld [vmem:[#allocation38_spill] sm:$0xff] }
 0x612   :  { %v2319_v50 = vrot.slane %v2318_v61, 1  ;;  %v2313_v44 = vmax.f32 %v2311_v17, %v2312_v57  ;;  %v2761_v32 = vsel %vm2751_vm7, %v8135_v2, %v2760_v54  ;;  %v2139_v42 = vmax.f32 %v1928_v59, 0.0 }
 0x613   :  { %v2333_v41 = vrot.slane %v2332_v35, 1  ;;  %v2327_v33 = vmax.f32 %v2325_v0, %v2326_v47  ;;  %v2762_v9 = vsel %vm2753_vm8, %v7665_v63, %v2761_v32  ;;  %v2141_v18 = vmax.f32 %v2041_v37, 0.0  ;;  %v7804_v10 = vpop.f32.mrb[76].mxu0  ;;  %v7806_v28 = vpop.f32.mrb[108].mxu1  ;;  %v6239_v47 = vld [vmem:[#allocation16 + $0x200] ss:$16 sps:$4 sm:$0xff]  }
 0x614   :  { %v2320_v5 = vmax.f32 %v2318_v61, %v2319_v50  ;;  %v7809_v51 = vsel %vm2743_vm3, %v2313_v44, %v2257_v40  ;;  %v2763_v17 = vsel %vm2755_vm9, %v2628_v19, %v2762_v9  ;;  %v2363_v57 = vmax.f32 %v2131_v60, %v2139_v42  ;;  %v7812_v26 = vpop.f32.mrb[77].mxu0  ;;  %v7814_v59 = vpop.f32.mrb[109].mxu1  ;;  %v6242_v60 = vld [vmem:[#allocation16 + $0x208] ss:$16 sps:$4 sm:$0xff]   ;;  %v8136_v37 = vld [vmem:[#allocation40_spill] sm:$0xff] }
 0x615   :  { %v2334_v24 = vmax.f32 %v2332_v35, %v2333_v41  ;;  %v7817_v0 = vsel %vm2743_vm3, %v2327_v33, %v2271_v4  ;;  %v2842_v61 = vpack.c.bf16 %v2763_v17, %v2763_v17  ;;  %v2377_v50 = vmax.f32 %v2133_v3, %v2141_v18  ;;  %v7822_v54 = vpop.f32.mrb[78].mxu0  ;;  %v7824_v40 = vpop.f32.mrb[110].mxu1  ;;  %v6247_v33 = vld [vmem:[#allocation16 + $0x224] ss:$16 sps:$4 sm:$0xff]  }
 0x616   :  { %v7820_v63 = vsel %vm2743_vm3, %v2320_v5, %v2264_v25  ;;  %v2364_v35 = vrot.slane %v2363_v57, 4  ;;  %v2756_v4 = vsel %vm2755_vm9, %v7713_v49, %v7674_v53  ;;  %v1930_v25 = vadd.f32 %v8136_v37, %v7404_v21  ;;  %v7834_v5 = vpop.f32.mrb[79].mxu0  ;;  %v7836_v44 = vpop.f32.mrb[111].mxu1  ;;  %v6250_v53 = vld [vmem:[#allocation16 + $0x22c] ss:$16 sps:$4 sm:$0xff]   ;;  %v8140_v18 = vld [vmem:[#allocation32_spill] sm:$0xff] }
 0x617   :  { %v7827_v19 = vsel %vm2743_vm3, %v2334_v24, %v2278_v31  ;;  %8137 = vst [vmem:[#allocation34_spill] sm:$0xff] %v7836_v44  ;;  %4439 = vmatprep.mubr.bf16.mxu0 %v2842_v61  ;;  %4603 = vmatprep.mubr.bf16.mxu1 %v2842_v61  ;;  %v2378_v3 = vrot.slane %v2377_v50, 4  ;;  %v2841_v41 = vpack.c.bf16 %v2756_v4, %v2756_v4  ;;  %v8138_v31 = vld [vmem:[#allocation41_spill] sm:$0xff]  ;;  %v8139_v32 = vrot.slane %v7700_v1, 1 }
 0x618   :  { %v2043_v2 = vadd.f32 %v8138_v31, %v7406_v22  ;;  %v2365_v49 = vmax.f32 %v2363_v57, %v2364_v35  ;;  %v2140_v9 = vmax.f32 %v1930_v25, 0.0  ;;  %v8141_v24 = vld [vmem:[#allocation33_spill] sm:$0xff]  ;;  %v1934_v61 = vadd.f32 %v7661_v20, %v7400_v15  ;;  %v8142_v31 = vld [vmem:[#allocation35_spill] sm:$0xff]  ;;  %v6245_v20 = vld [vmem:[#allocation16 + $0x220] ss:$16 sps:$4 sm:$0xff]  }
 0x619   :  { %v2642_v42 = vmax.f32 %v7700_v1, %v8139_v32  ;;  %v2773_v17 = vsel %vm2747_vm5, %v8141_v24, %v8140_v18  ;;  %v2379_v37 = vmax.f32 %v2377_v50, %v2378_v3  ;;  %4440 = vmatmul.mubr.bf16.vlgmr.msra.gmra.mrb[80].mxu0 %v2841_v41  ;;  %4604 = vmatmul.mubr.bf16.vlgmr.msra.gmra.mrb[112].mxu1 %v2841_v41  ;;  %v8143_v57 = vmax.f32 %v7768_v14, 0.0  ;;  %v8144_v25 = vld [vmem:[#allocation39_spill] sm:$0xff] }
 0x61a   :  { %v2142_v4 = vmax.f32 %v2043_v2, 0.0  ;;  %v2774_v44 = vsel %vm2749_vm6, %v8142_v31, %v2773_v17  ;;  %v2047_v1 = vadd.f32 %v7663_v45, %v7402_v16  ;;  %v2366_v32 = vrot.slane %v2365_v49, 2  ;;  %4449 = vmatpush1.bf16.msra.mxu0 %v6239_v47  ;;  %4613 = vmatpush1.bf16.msra.mxu1 %v6242_v60  ;;  %v6248_v50 = vld [vmem:[#allocation16 + $0x228] ss:$16 sps:$4 sm:$0xff]   ;;  %v6256_v31 = vld [vmem:[#allocation16 + $0x24c] ss:$16 sps:$4 sm:$0xff]  }
 0x61b   :  { %v2370_v35 = vmax.f32 %v8143_v57, %v2140_v9  ;;  %v2775_v18 = vsel %vm2751_vm7, %v8144_v25, %v2774_v44  ;;  %v2147_v3 = vmax.f32 %v1934_v61, 0.0  ;;  %v2380_v41 = vrot.slane %v2379_v37, 2  ;;  %4450 = vmatprep.subr.bf16.mxu0 %v6247_v33  ;;  %4614 = vmatprep.subr.bf16.mxu1 %v6250_v53  ;;  %v6253_v9 = vld [vmem:[#allocation16 + $0x244] ss:$16 sps:$4 sm:$0xff]   ;;  %v6251_v53 = vld [vmem:[#allocation16 + $0x240] ss:$16 sps:$4 sm:$0xff]  }
 0x61c   :  { %v8145_v2 = vmax.f32 %v7776_v27, 0.0  ;;  %v2776_v17 = vsel %vm2753_vm8, %v7667_v30, %v2775_v18  ;;  %v2149_v45 = vmax.f32 %v2047_v1, 0.0  ;;  %v2367_v47 = vmax.f32 %v2365_v49, %v2366_v32  ;;  %v6254_v49 = vld [vmem:[#allocation16 + $0x248] ss:$16 sps:$4 sm:$0xff]   ;;  %v6259_v18 = vld [vmem:[#allocation16 + $0x264] ss:$16 sps:$4 sm:$0xff]  }
 0x61d   :  { %v2371_v60 = vrot.slane %v2370_v35, 4  ;;  %v2777_v14 = vsel %vm2755_vm9, %v2642_v42, %v2776_v17  ;;  %v1936_v44 = vadd.f32 %v7669_v52, %v7404_v21  ;;  %v2381_v61 = vmax.f32 %v2379_v37, %v2380_v41 }
 0x61e   :  { %v2384_v24 = vmax.f32 %v8145_v2, %v2142_v4  ;;  %v2844_v25 = vpack.c.bf16 %v2777_v14, %v2777_v14  ;;  %v2049_v27 = vadd.f32 %v7671_v8, %v7406_v22  ;;  %v2368_v4 = vrot.slane %v2367_v47, 1  ;;  %4451 = vmatpush1.bf16.msra.mxu0 %v6245_v20  ;;  %4615 = vmatpush1.bf16.msra.mxu1 %v6248_v50  ;;  %v6262_v8 = vld [vmem:[#allocation16 + $0x26c] ss:$16 sps:$4 sm:$0xff]  }
 0x61f   :  { %v2372_v30 = vmax.f32 %v2370_v35, %v2371_v60  ;;  %v2148_v33 = vmax.f32 %v1936_v44, 0.0  ;;  %v1938_v42 = vadd.f32 %v7678_v46, %v7400_v15  ;;  %v2382_v1 = vrot.slane %v2381_v61, 1  ;;  %4452 = vmatprep.subr.bf16.mxu0 %v6253_v9  ;;  %4616 = vmatprep.subr.bf16.mxu1 %v6256_v31  ;;  %v6257_v44 = vld [vmem:[#allocation16 + $0x260] ss:$16 sps:$4 sm:$0xff]   ;;  %v6260_v9 = vld [vmem:[#allocation16 + $0x268] ss:$16 sps:$4 sm:$0xff]  }
 0x620   :  { %v2385_v57 = vrot.slane %v2384_v24, 4  ;;  %4480 = vmatprep.mubr.bf16.mxu0 %v2844_v25  ;;  %4644 = vmatprep.mubr.bf16.mxu1 %v2844_v25  ;;  %v2150_v37 = vmax.f32 %v2049_v27, 0.0  ;;  %v2051_v32 = vadd.f32 %v7680_v34, %v7402_v16  ;;  %v2369_v41 = vmax.f32 %v2367_v47, %v2368_v4  ;;  %v6268_v25 = vld [vmem:[#allocation16 + $0x28c] ss:$16 sps:$4 sm:$0xff]  }
 0x621   :  { %v2373_v35 = vrot.slane %v2372_v30, 2  ;;  %v2155_v20 = vmax.f32 %v1938_v42, 0.0  ;;  %v1940_v50 = vadd.f32 %v7686_v12, %v7404_v21  ;;  %v2383_v2 = vmax.f32 %v2381_v61, %v2382_v1 }
 0x622   :  { %v2386_v52 = vmax.f32 %v2384_v24, %v2385_v57  ;;  %v2157_v17 = vmax.f32 %v2051_v32, 0.0  ;;  %v2053_v24 = vadd.f32 %v7688_v43, %v7406_v22  ;;  %v7875_v60 = vsel %vm2745_vm4, %v2369_v41, %v7809_v51  ;;  %4453 = vmatpush1.bf16.msra.mxu0 %v6251_v53  ;;  %4617 = vmatpush1.bf16.msra.mxu1 %v6254_v49  ;;  %v6265_v43 = vld [vmem:[#allocation16 + $0x284] ss:$16 sps:$4 sm:$0xff]   ;;  %v6263_v32 = vld [vmem:[#allocation16 + $0x280] ss:$16 sps:$4 sm:$0xff]  }
 0x623   :  { %v2374_v34 = vmax.f32 %v2372_v30, %v2373_v35  ;;  %v2419_v14 = vmax.f32 %v2147_v3, %v2155_v20  ;;  %v2156_v47 = vmax.f32 %v1940_v50, 0.0  ;;  %v7879_v12 = vsel %vm2745_vm4, %v2383_v2, %v7817_v0  ;;  %4454 = vmatprep.subr.bf16.mxu0 %v6259_v18  ;;  %4618 = vmatprep.subr.bf16.mxu1 %v6262_v8  ;;  %v6266_v18 = vld [vmem:[#allocation16 + $0x288] ss:$16 sps:$4 sm:$0xff]   ;;  %v6274_v20 = vld [vmem:[#allocation16 + $0x2ac] ss:$16 sps:$4 sm:$0xff]  }
 0x624   :  { %v2387_v46 = vrot.slane %v2386_v52, 2  ;;  %v2433_v61 = vmax.f32 %v2149_v45, %v2157_v17  ;;  %v2158_v57 = vmax.f32 %v2053_v24, 0.0  ;;  %v1944_v3 = vadd.f32 %v7704_v56, %v7400_v15  ;;  %v6271_v56 = vld [vmem:[#allocation16 + $0x2a4] ss:$16 sps:$4 sm:$0xff]  }
 0x625   :  { %v2375_v51 = vrot.slane %v2374_v34, 1  ;;  %v2420_v27 = vrot.slane %v2419_v14, 4  ;;  %v2426_v4 = vmax.f32 %v2148_v33, %v2156_v47  ;;  %v2057_v0 = vadd.f32 %v7706_v55, %v7402_v16 }
 0x626   :  { %v2388_v31 = vmax.f32 %v2386_v52, %v2387_v46  ;;  %v2434_v53 = vrot.slane %v2433_v61, 4  ;;  %v2440_v49 = vmax.f32 %v2150_v37, %v2158_v57  ;;  %4455 = vmatpush1.bf16.msra.mxu0 %v6257_v44  ;;  %4619 = vmatpush1.bf16.msra.mxu1 %v6260_v9  ;;  %v2163_v52 = vmax.f32 %v1944_v3, 0.0  ;;  %v6269_v9 = vld [vmem:[#allocation16 + $0x2a0] ss:$16 sps:$4 sm:$0xff]   ;;  %v8147_v3 = vld [vmem:[#allocation45_spill] sm:$0xff] }
 0x627   :  { %v2376_v42 = vmax.f32 %v2374_v34, %v2375_v51  ;;  %v2421_v1 = vmax.f32 %v2419_v14, %v2420_v27  ;;  %v2427_v45 = vrot.slane %v2426_v4, 4  ;;  %v2165_v35 = vmax.f32 %v2057_v0, 0.0  ;;  %4456 = vmatprep.subr.bf16.mxu0 %v6265_v43  ;;  %4620 = vmatprep.subr.bf16.mxu1 %v6268_v25  ;;  %v6277_v25 = vld [vmem:[#allocation16 + $0x2c4] ss:$16 sps:$4 sm:$0xff]  }
 0x628   :  { %v2389_v30 = vrot.slane %v2388_v31, 1  ;;  %v2435_v41 = vmax.f32 %v2433_v61, %v2434_v53  ;;  %v2441_v33 = vrot.slane %v2440_v49, 4  ;;  %v1946_v2 = vadd.f32 %v7709_v48, %v7404_v21  ;;  %v8148_v0 = vld [vmem:[#allocation46_spill] sm:$0xff] }
 0x629   :  { %v7887_v37 = vsel %vm2745_vm4, %v2376_v42, %v7820_v63  ;;  %v2422_v55 = vrot.slane %v2421_v1, 2  ;;  %v2428_v50 = vmax.f32 %v2426_v4, %v2427_v45  ;;  %v2059_v34 = vadd.f32 %v7711_v13, %v7406_v22  ;;  %v6280_v13 = vld [vmem:[#allocation16 + $0x2cc] ss:$16 sps:$4 sm:$0xff]  }
 0x62a   :  { %v2390_v8 = vmax.f32 %v2388_v31, %v2389_v30  ;;  %v2436_v17 = vrot.slane %v2435_v41, 2  ;;  %v2442_v24 = vmax.f32 %v2440_v49, %v2441_v33  ;;  %v2164_v44 = vmax.f32 %v1946_v2, 0.0  ;;  %4457 = vmatpush1.bf16.msra.mxu0 %v6263_v32  ;;  %4621 = vmatpush1.bf16.msra.mxu1 %v6266_v18  ;;  %v6272_v31 = vld [vmem:[#allocation16 + $0x2a8] ss:$16 sps:$4 sm:$0xff]   ;;  %v6286_v2 = vld [vmem:[#allocation16 + $0x2ec] ss:$16 sps:$4 sm:$0xff]  }
 0x62b   :  { %v2423_v14 = vmax.f32 %v2421_v1, %v2422_v55  ;;  %v2429_v47 = vrot.slane %v2428_v50, 2  ;;  %v1948_v63 = vadd.f32 %v7716_v39, %v7400_v15  ;;  %v2166_v57 = vmax.f32 %v2059_v34, 0.0  ;;  %4458 = vmatprep.subr.bf16.mxu0 %v6271_v56  ;;  %4622 = vmatprep.subr.bf16.mxu1 %v6274_v20 }
 0x62c   :  { %v7893_v46 = vsel %vm2745_vm4, %v2390_v8, %v7827_v19  ;;  %v2437_v48 = vmax.f32 %v2435_v41, %v2436_v17  ;;  %v2443_v61 = vrot.slane %v2442_v24, 2  ;;  %v8146_v19 = vld [vmem:[#allocation43_spill] sm:$0xff]  ;;  %v1950_v39 = vadd.f32 %v8147_v3, %v7404_v21  ;;  %v6275_v8 = vld [vmem:[#allocation16 + $0x2c0] ss:$16 sps:$4 sm:$0xff]  }
 0x62d   :  { %v2061_v43 = vadd.f32 %v8146_v19, %v7402_v16  ;;  %v2424_v51 = vrot.slane %v2423_v14, 1  ;;  %v2430_v27 = vmax.f32 %v2428_v50, %v2429_v47  ;;  %v2171_v4 = vmax.f32 %v1948_v63, 0.0  ;;  %v6278_v41 = vld [vmem:[#allocation16 + $0x2c8] ss:$16 sps:$4 sm:$0xff]   ;;  %v6283_v50 = vld [vmem:[#allocation16 + $0x2e4] ss:$16 sps:$4 sm:$0xff]  }
 0x62e   :  { %v2438_v30 = vrot.slane %v2437_v48, 1  ;;  %v2444_v53 = vmax.f32 %v2442_v24, %v2443_v61  ;;  %v2063_v42 = vadd.f32 %v8148_v0, %v7406_v22  ;;  %v2172_v18 = vmax.f32 %v1950_v39, 0.0  ;;  %4459 = vmatpush1.bf16.msra.mxu0 %v6269_v9  ;;  %4623 = vmatpush1.bf16.msra.mxu1 %v6272_v31  ;;  %v6292_v3 = vld [vmem:[#allocation16 + $0x30c] ss:$16 sps:$4 sm:$0xff]  }
 0x62f   :  { %v2173_v49 = vmax.f32 %v2061_v43, 0.0  ;;  %v2425_v1 = vmax.f32 %v2423_v14, %v2424_v51  ;;  %v2431_v45 = vrot.slane %v2430_v27, 1  ;;  %v2475_v32 = vmax.f32 %v2163_v52, %v2171_v4  ;;  %4460 = vmatprep.subr.bf16.mxu0 %v6277_v25  ;;  %4624 = vmatprep.subr.bf16.mxu1 %v6280_v13  ;;  %v6281_v43 = vld [vmem:[#allocation16 + $0x2e0] ss:$16 sps:$4 sm:$0xff]   ;;  %v6289_v4 = vld [vmem:[#allocation16 + $0x304] ss:$16 sps:$4 sm:$0xff]  }
 0x630   :  { %v2439_v33 = vmax.f32 %v2437_v48, %v2438_v30  ;;  %v2445_v56 = vrot.slane %v2444_v53, 1  ;;  %v2174_v55 = vmax.f32 %v2063_v42, 0.0  ;;  %v2482_v34 = vmax.f32 %v2164_v44, %v2172_v18  ;;  %v8149_v48 = vld [vmem:[#allocation47_spill] sm:$0xff] }
 0x631   :  { %v2489_v20 = vmax.f32 %v2165_v35, %v2173_v49  ;;  %v7907_v17 = vsel %vm2747_vm5, %v2425_v1, %v7875_v60  ;;  %v7909_v24 = vmax.f32 %v2430_v27, %v2431_v45  ;;  %v2476_v52 = vrot.slane %v2475_v32, 4  ;;  %v8150_v60 = vld [vmem:[#allocation48_spill] sm:$0xff]  ;;  %v6284_v44 = vld [vmem:[#allocation16 + $0x2e8] ss:$16 sps:$4 sm:$0xff]   ;;  %v8152_v27 = vld [vmem:[#allocation50_spill] sm:$0xff] }
 0x632   :  { %v7913_v14 = vsel %vm2747_vm5, %v2439_v33, %v7879_v12  ;;  %v7915_v47 = vmax.f32 %v2444_v53, %v2445_v56  ;;  %v2496_v63 = vmax.f32 %v2166_v57, %v2174_v55  ;;  %v2483_v31 = vrot.slane %v2482_v34, 4  ;;  %4461 = vmatpush1.bf16.msra.mxu0 %v6275_v8  ;;  %4625 = vmatpush1.bf16.msra.mxu1 %v6278_v41  ;;  %v8151_v12 = vld [vmem:[#allocation49_spill] sm:$0xff]  ;;  %v8153_v8 = vld [vmem:[#allocation51_spill] sm:$0xff]  ;;  %v8154_v33 = vld [vmem:[#allocation52_spill] sm:$0xff] }
 0x633   :  { %v2490_v35 = vrot.slane %v2489_v20, 4  ;;  %v2477_v9 = vmax.f32 %v2475_v32, %v2476_v52  ;;  %v1954_v61 = vadd.f32 %v8149_v48, %v7400_v15  ;;  %v2067_v19 = vadd.f32 %v8150_v60, %v7402_v16  ;;  %4462 = vmatprep.subr.bf16.mxu0 %v6283_v50  ;;  %4626 = vmatprep.subr.bf16.mxu1 %v6286_v2  ;;  %v6290_v55 = vld [vmem:[#allocation16 + $0x308] ss:$16 sps:$4 sm:$0xff]  }
 0x634   :  { %v2497_v13 = vrot.slane %v2496_v63, 4  ;;  %v1956_v51 = vadd.f32 %v8151_v12, %v7404_v21  ;;  %v2069_v57 = vadd.f32 %v8152_v27, %v7406_v22  ;;  %v2484_v30 = vmax.f32 %v2482_v34, %v2483_v31 }
 0x635   :  { %v2491_v25 = vmax.f32 %v2489_v20, %v2490_v35  ;;  %v2478_v39 = vrot.slane %v2477_v9, 2  ;;  %v2179_v53 = vmax.f32 %v1954_v61, 0.0  ;;  %v2181_v49 = vmax.f32 %v2067_v19, 0.0  ;;  %v6287_v20 = vld [vmem:[#allocation16 + $0x300] ss:$16 sps:$4 sm:$0xff]  }
 0x636   :  { %v2498_v42 = vmax.f32 %v2496_v63, %v2497_v13  ;;  %v2180_v1 = vmax.f32 %v1956_v51, 0.0  ;;  %v2182_v45 = vmax.f32 %v2069_v57, 0.0  ;;  %v2485_v18 = vrot.slane %v2484_v30, 2  ;;  %4463 = vmatpush1.bf16.msra.mxu0 %v6281_v43  ;;  %4627 = vmatpush1.bf16.msra.mxu1 %v6284_v44  ;;  %v6295_v35 = vld [vmem:[#allocation16 + $0x324] ss:$16 sps:$4 sm:$0xff]  }
 0x637   :  { %v2492_v0 = vrot.slane %v2491_v25, 2  ;;  %v2479_v32 = vmax.f32 %v2477_v9, %v2478_v39  ;;  %v1958_v41 = vadd.f32 %v8153_v8, %v7400_v15  ;;  %v2071_v56 = vadd.f32 %v8154_v33, %v7402_v16  ;;  %4464 = vmatprep.subr.bf16.mxu0 %v6289_v4  ;;  %4628 = vmatprep.subr.bf16.mxu1 %v6292_v3  ;;  %v6298_v63 = vld [vmem:[#allocation16 + $0x32c] ss:$16 sps:$4 sm:$0xff]   ;;  %v6296_v3 = vld [vmem:[#allocation16 + $0x328] ss:$16 sps:$4 sm:$0xff]  }
 0x638   :  { %v2499_v2 = vrot.slane %v2498_v42, 2  ;;  %v1960_v52 = vadd.f32 %v7754_v29, %v7404_v21  ;;  %v2073_v34 = vadd.f32 %v7756_v58, %v7406_v22  ;;  %v2486_v31 = vmax.f32 %v2484_v30, %v2485_v18  ;;  %v6293_v29 = vld [vmem:[#allocation16 + $0x320] ss:$16 sps:$4 sm:$0xff]  }
 0x639   :  { %v2493_v50 = vmax.f32 %v2491_v25, %v2492_v0  ;;  %v2480_v9 = vrot.slane %v2479_v32, 1  ;;  %v2187_v48 = vmax.f32 %v1958_v41, 0.0  ;;  %v2189_v61 = vmax.f32 %v2071_v56, 0.0  ;;  %v6299_v56 = vld [vmem:[#allocation16 + $0x340] ss:$16 sps:$4 sm:$0xff]  }
 0x63a   :  { %v2500_v19 = vmax.f32 %v2498_v42, %v2499_v2  ;;  %v2188_v43 = vmax.f32 %v1960_v52, 0.0  ;;  %v2190_v44 = vmax.f32 %v2073_v34, 0.0  ;;  %v2487_v13 = vrot.slane %v2486_v31, 1  ;;  %4465 = vmatpush1.bf16.msra.mxu0 %v6287_v20  ;;  %4629 = vmatpush1.bf16.msra.mxu1 %v6290_v55  ;;  %v6302_v2 = vld [vmem:[#allocation16 + $0x348] ss:$16 sps:$4 sm:$0xff]  }
 0x63b   :  { %v2494_v60 = vrot.slane %v2493_v50, 1  ;;  %v2481_v25 = vmax.f32 %v2479_v32, %v2480_v9  ;;  %v2531_v12 = vmax.f32 %v2179_v53, %v2187_v48  ;;  %v2545_v51 = vmax.f32 %v2181_v49, %v2189_v61  ;;  %4466 = vmatprep.subr.bf16.mxu0 %v6295_v35  ;;  %4630 = vmatprep.subr.bf16.mxu1 %v6298_v63  ;;  %v6301_v53 = vld [vmem:[#allocation16 + $0x344] ss:$16 sps:$4 sm:$0xff]   ;;  %v6304_v49 = vld [vmem:[#allocation16 + $0x34c] ss:$16 sps:$4 sm:$0xff]  }
 0x63c   :  { %v2501_v27 = vrot.slane %v2500_v19, 1  ;;  %v2538_v57 = vmax.f32 %v2180_v1, %v2188_v43  ;;  %v2552_v4 = vmax.f32 %v2182_v45, %v2190_v44  ;;  %v7937_v30 = vmax.f32 %v2486_v31, %v2487_v13  ;;  %v6307_v52 = vld [vmem:[#allocation16 + $0x364] ss:$16 sps:$4 sm:$0xff]   ;;  %v6305_v43 = vld [vmem:[#allocation16 + $0x360] ss:$16 sps:$4 sm:$0xff]  }
 0x63d   :  { %v2495_v58 = vmax.f32 %v2493_v50, %v2494_v60  ;;  %v7935_v39 = vsel %vm2749_vm6, %v2481_v25, %v7907_v17  ;;  %v2532_v0 = vrot.slane %v2531_v12, 4  ;;  %v2546_v42 = vrot.slane %v2545_v51, 4 }
 0x63e   :  { %v7943_v18 = vmax.f32 %v2500_v19, %v2501_v27  ;;  %v2539_v1 = vrot.slane %v2538_v57, 4  ;;  %v2553_v45 = vrot.slane %v2552_v4, 4  ;;  %v1964_v17 = vadd.f32 %v7760_v38, %v7400_v15  ;;  %4467 = vmatpush1.bf16.msra.mxu0 %v6293_v29  ;;  %4631 = vmatpush1.bf16.msra.mxu1 %v6296_v3  ;;  %v6308_v29 = vld [vmem:[#allocation16 + $0x368] ss:$16 sps:$4 sm:$0xff]  }
 0x63f   :  { %v7941_v32 = vsel %vm2749_vm6, %v2495_v58, %v7913_v14  ;;  %v2533_v8 = vmax.f32 %v2531_v12, %v2532_v0  ;;  %v2547_v41 = vmax.f32 %v2545_v51, %v2546_v42  ;;  %v2077_v33 = vadd.f32 %v7762_v36, %v7402_v16  ;;  %4468 = vmatprep.subr.bf16.mxu0 %v6301_v53  ;;  %v6310_v36 = vld [vmem:[#allocation16 + $0x36c] ss:$16 sps:$4 sm:$0xff]   ;;  %v6313_v58 = vld [vmem:[#allocation16 + $0x384] ss:$16 sps:$4 sm:$0xff]  }
 0x640   :  { %v2540_v20 = vmax.f32 %v2538_v57, %v2539_v1  ;;  %v2554_v55 = vmax.f32 %v2552_v4, %v2553_v45  ;;  %v1966_v14 = vadd.f32 %v7770_v11, %v7404_v21  ;;  %v2079_v50 = vadd.f32 %v7772_v62, %v7406_v22  ;;  %4632 = vmatprep.subr.bf16.mxu1 %v6304_v49  ;;  %v8155_v12 = vld [vmem:[#allocation53_spill] sm:$0xff] }
 0x641   :  { %v2534_v34 = vrot.slane %v2533_v8, 2  ;;  %v2548_v35 = vrot.slane %v2547_v41, 2  ;;  %v2195_v63 = vmax.f32 %v1964_v17, 0.0  ;;  %v2197_v38 = vmax.f32 %v2077_v33, 0.0 }
 0x642   :  { %v2541_v9 = vrot.slane %v2540_v20, 2  ;;  %v2555_v31 = vrot.slane %v2554_v55, 2  ;;  %v2196_v48 = vmax.f32 %v1966_v14, 0.0  ;;  %v2198_v61 = vmax.f32 %v2079_v50, 0.0  ;;  %4469 = vmatpush1.bf16.msra.mxu0 %v6299_v56  ;;  %4633 = vmatpush1.bf16.msra.mxu1 %v6302_v2 }
 0x643   :  { %v2535_v60 = vmax.f32 %v2533_v8, %v2534_v34  ;;  %v2549_v19 = vmax.f32 %v2547_v41, %v2548_v35  ;;  %v1968_v11 = vadd.f32 %v7778_v23, %v7400_v15  ;;  %v2081_v62 = vadd.f32 %v7780_v6, %v7402_v16  ;;  %4470 = vmatprep.subr.bf16.mxu0 %v6307_v52  ;;  %v6316_v6 = vld [vmem:[#allocation16 + $0x38c] ss:$16 sps:$4 sm:$0xff]   ;;  %v6311_v8 = vld [vmem:[#allocation16 + $0x380] ss:$16 sps:$4 sm:$0xff]  }
 0x644   :  { %v2542_v44 = vmax.f32 %v2540_v20, %v2541_v9  ;;  %v2556_v25 = vmax.f32 %v2554_v55, %v2555_v31  ;;  %v1970_v13 = vadd.f32 %v7783_v7, %v7404_v21  ;;  %v2083_v51 = vadd.f32 %v8155_v12, %v7406_v22  ;;  %4634 = vmatprep.subr.bf16.mxu1 %v6310_v36  ;;  %v6314_v20 = vld [vmem:[#allocation16 + $0x388] ss:$16 sps:$4 sm:$0xff]   ;;  %v6319_v55 = vld [vmem:[#allocation16 + $0x3a4] ss:$16 sps:$4 sm:$0xff]   ;;  %v6322_v34 = vld [vmem:[#allocation16 + $0x3ac] ss:$16 sps:$4 sm:$0xff]  }
 0x645   :  { %v2536_v27 = vrot.slane %v2535_v60, 1  ;;  %v2550_v57 = vrot.slane %v2549_v19, 1  ;;  %v2203_v4 = vmax.f32 %v1968_v11, 0.0  ;;  %v2205_v23 = vmax.f32 %v2081_v62, 0.0  ;;  %v6320_v62 = vld [vmem:[#allocation16 + $0x3a8] ss:$16 sps:$4 sm:$0xff]  }
 0x646   :  { %v2543_v3 = vrot.slane %v2542_v44, 1  ;;  %v2557_v0 = vrot.slane %v2556_v25, 1  ;;  %v2204_v42 = vmax.f32 %v1970_v13, 0.0  ;;  %v2206_v53 = vmax.f32 %v2083_v51, 0.0  ;;  %4471 = vmatpush1.bf16.msra.mxu0 %v6305_v43  ;;  %4635 = vmatpush1.bf16.msra.mxu1 %v6308_v29  ;;  %v6325_v43 = vld [vmem:[#allocation16 + $0x3c4] ss:$16 sps:$4 sm:$0xff]  }
 0x647   :  { %v7961_v49 = vmax.f32 %v2535_v60, %v2536_v27  ;;  %v7963_v7 = vmax.f32 %v2549_v19, %v2550_v57  ;;  %v2587_v1 = vmax.f32 %v2195_v63, %v2203_v4  ;;  %v2601_v45 = vmax.f32 %v2197_v38, %v2205_v23  ;;  %4472 = vmatprep.subr.bf16.mxu0 %v6313_v58  ;;  %v6328_v13 = vld [vmem:[#allocation16 + $0x3cc] ss:$16 sps:$4 sm:$0xff]   ;;  %v8156_v58 = vld [vmem:[#allocation34_spill] sm:$0xff] }
 0x648   :  { %v7965_v41 = vmax.f32 %v2542_v44, %v2543_v3  ;;  %v7967_v17 = vmax.f32 %v2556_v25, %v2557_v0  ;;  %v2594_v33 = vmax.f32 %v2196_v48, %v2204_v42  ;;  %v2608_v56 = vmax.f32 %v2198_v61, %v2206_v53  ;;  %4636 = vmatprep.subr.bf16.mxu1 %v6316_v6  ;;  %v6323_v3 = vld [vmem:[#allocation16 + $0x3c0] ss:$16 sps:$4 sm:$0xff]   ;;  %v6331_v42 = vld [vmem:[#allocation16 + $0x3e4] ss:$16 sps:$4 sm:$0xff]  }
 0x649   :  { %v2588_v14 = vrot.slane %v2587_v1, 4  ;;  %v2602_v50 = vrot.slane %v2601_v45, 4  ;;  %v1974_v2 = vadd.f32 %v7804_v10, %v7400_v15  ;;  %v2087_v52 = vadd.f32 %v7806_v28, %v7402_v16  ;;  %v6317_v10 = vld [vmem:[#allocation16 + $0x3a0] ss:$16 sps:$4 sm:$0xff]  }
 0x64a   :  { %v2595_v35 = vrot.slane %v2594_v33, 4  ;;  %v2609_v63 = vrot.slane %v2608_v56, 4  ;;  %v1976_v38 = vadd.f32 %v7812_v26, %v7404_v21  ;;  %v2089_v36 = vadd.f32 %v7814_v59, %v7406_v22  ;;  %4473 = vmatpush1.bf16.msra.mxu0 %v6311_v8  ;;  %4637 = vmatpush1.bf16.msra.mxu1 %v6314_v20 }
 0x64b   :  { %v2589_v9 = vmax.f32 %v2587_v1, %v2588_v14  ;;  %v2603_v31 = vmax.f32 %v2601_v45, %v2602_v50  ;;  %v2211_v48 = vmax.f32 %v1974_v2, 0.0  ;;  %v2213_v61 = vmax.f32 %v2087_v52, 0.0  ;;  %4474 = vmatprep.subr.bf16.mxu0 %v6319_v55  ;;  %4638 = vmatprep.subr.bf16.mxu1 %v6322_v34  ;;  %v6329_v2 = vld [vmem:[#allocation16 + $0x3e0] ss:$16 sps:$4 sm:$0xff]  }
 0x64c   :  { %v2596_v60 = vmax.f32 %v2594_v33, %v2595_v35  ;;  %v2610_v19 = vmax.f32 %v2608_v56, %v2609_v63  ;;  %v2212_v28 = vmax.f32 %v1976_v38, 0.0  ;;  %v2214_v11 = vmax.f32 %v2089_v36, 0.0  ;;  %v6332_v38 = vld [vmem:[#allocation16 + $0x3e8] ss:$16 sps:$4 sm:$0xff]   ;;  %v6337_v36 = vld [vmem:[#allocation16 + $0x404] ss:$16 sps:$4 sm:$0xff]  }
 0x64d   :  { %v2590_v44 = vrot.slane %v2589_v9, 2  ;;  %v2604_v25 = vrot.slane %v2603_v31, 2  ;;  %v1978_v26 = vadd.f32 %v7822_v54, %v7400_v15  ;;  %v2091_v59 = vadd.f32 %v7824_v40, %v7402_v16  ;;  %v6326_v40 = vld [vmem:[#allocation16 + $0x3c8] ss:$16 sps:$4 sm:$0xff]  }
 0x64e   :  { %v2597_v12 = vrot.slane %v2596_v60, 2  ;;  %v2611_v51 = vrot.slane %v2610_v19, 2  ;;  %v1980_v29 = vadd.f32 %v7834_v5, %v7404_v21  ;;  %v2093_v27 = vadd.f32 %v8156_v58, %v7406_v22  ;;  %4475 = vmatpush1.bf16.msra.mxu0 %v6317_v10  ;;  %4639 = vmatpush1.bf16.msra.mxu1 %v6320_v62  ;;  %v6334_v22 = vld [vmem:[#allocation16 + $0x3ec] ss:$16 sps:$4 sm:$0xff]   ;;  %v8159_v62 = vld [vmem:[#allocation42_spill] sm:$0xff] }
 0x64f   :  { %v2591_v57 = vmax.f32 %v2589_v9, %v2590_v44  ;;  %v2605_v4 = vmax.f32 %v2603_v31, %v2604_v25  ;;  %v2219_v23 = vmax.f32 %v1978_v26, 0.0  ;;  %v2221_v6 = vmax.f32 %v2091_v59, 0.0  ;;  %4476 = vmatprep.subr.bf16.mxu0 %v6325_v43  ;;  %4640 = vmatprep.subr.bf16.mxu1 %v6328_v13  ;;  %v8160_v59 = vld [vmem:[#allocation44_spill] sm:$0xff]  ;;  %v6338_v58 = vld [vmem:[#allocation16 + $0x408] ss:$16 sps:$4 sm:$0xff]  }
 0x650   :  { %v2598_v15 = vmax.f32 %v2596_v60, %v2597_v12  ;;  %v2612_v54 = vmax.f32 %v2610_v19, %v2611_v51  ;;  %v2220_v0 = vmax.f32 %v1980_v29, 0.0  ;;  %v2222_v16 = vmax.f32 %v2093_v27, 0.0  ;;  %v6340_v60 = vld [vmem:[#allocation16 + $0x40c] ss:$16 sps:$4 sm:$0xff]   ;;  %v6335_v12 = vld [vmem:[#allocation16 + $0x400] ss:$16 sps:$4 sm:$0xff]  }
 0x651   :  { %v2592_v53 = vrot.slane %v2591_v57, 1  ;;  %v2606_v1 = vrot.slane %v2605_v4, 1  ;;  %v2643_v21 = vmax.f32 %v2211_v48, %v2219_v23  ;;  %v2657_v5 = vmax.f32 %v2213_v61, %v2221_v6  ;;  %v8157_v48 = vld [vmem:[#allocation36_spill] sm:$0xff]  ;;  %v8158_v61 = vld [vmem:[#allocation37_spill] sm:$0xff] }
 0x652   :  { %v2599_v45 = vrot.slane %v2598_v15, 1  ;;  %v2613_v8 = vrot.slane %v2612_v54, 1  ;;  %v2650_v33 = vmax.f32 %v2212_v28, %v2220_v0  ;;  %v2664_v56 = vmax.f32 %v2214_v11, %v2222_v16  ;;  %4477 = vmatpush1.bf16.msra.mxu0 %v6323_v3  ;;  %4641 = vmatpush1.bf16.msra.mxu1 %v6326_v40  ;;  %v6346_v23 = vld [vmem:[#allocation16 + $0x42c] ss:$16 sps:$4 sm:$0xff]  }
 0x653   :  { %v2593_v20 = vmax.f32 %v2591_v57, %v2592_v53  ;;  %v7985_v55 = vmax.f32 %v2605_v4, %v2606_v1  ;;  %v2644_v14 = vrot.slane %v2643_v21, 4  ;;  %v2658_v50 = vrot.slane %v2657_v5, 4  ;;  %4478 = vmatprep.subr.bf16.mxu0 %v6331_v42  ;;  %4642 = vmatprep.subr.bf16.mxu1 %v6334_v22  ;;  %v6343_v57 = vld [vmem:[#allocation16 + $0x424] ss:$16 sps:$4 sm:$0xff]   ;;  %v6341_v42 = vld [vmem:[#allocation16 + $0x420] ss:$16 sps:$4 sm:$0xff]  }
 0x654   :  { %v2600_v52 = vmax.f32 %v2598_v15, %v2599_v45  ;;  %v2614_v34 = vmax.f32 %v2612_v54, %v2613_v8  ;;  %v2651_v35 = vrot.slane %v2650_v33, 4  ;;  %v2665_v63 = vrot.slane %v2664_v56, 4  ;;  %v6344_v53 = vld [vmem:[#allocation16 + $0x428] ss:$16 sps:$4 sm:$0xff]   ;;  %v6349_v1 = vld [vmem:[#allocation16 + $0x444] ss:$16 sps:$4 sm:$0xff]  }
 0x655   :  { %v2645_v9 = vmax.f32 %v2643_v21, %v2644_v14  ;;  %v2659_v31 = vmax.f32 %v2657_v5, %v2658_v50  ;;  %v2768_v10 = vsel %vm2751_vm7, %v8158_v61, %v8157_v48  ;;  %v2787_v19 = vsel %vm2747_vm5, %v7909_v24, %v7887_v37  ;;  %v6352_v45 = vld [vmem:[#allocation16 + $0x44c] ss:$16 sps:$4 sm:$0xff]   ;;  %v6355_v50 = vld [vmem:[#allocation16 + $0x464] ss:$16 sps:$4 sm:$0xff]   ;;  %v6365_v48 = vld [vmem:[#allocation16 + $0x4a0] ss:$16 sps:$4 sm:$0xff]  }
 0x656   :  { %v2652_v28 = vmax.f32 %v2650_v33, %v2651_v35  ;;  %v2666_v11 = vmax.f32 %v2664_v56, %v2665_v63  ;;  %v2769_v43 = vsel %vm2753_vm8, %v8159_v62, %v2768_v10  ;;  %v2788_v44 = vsel %vm2749_vm6, %v7937_v30, %v2787_v19  ;;  %4479 = vmatpush1.bf16.msra.mxu0 %v6329_v2  ;;  %v6347_v56 = vld [vmem:[#allocation16 + $0x440] ss:$16 sps:$4 sm:$0xff]   ;;  %v6358_v2 = vld [vmem:[#allocation16 + $0x46c] ss:$16 sps:$4 sm:$0xff]   ;;  %v6361_v35 = vld [vmem:[#allocation16 + $0x484] ss:$16 sps:$4 sm:$0xff]  }
 0x657   :  { %v2646_v25 = vrot.slane %v2645_v9, 2  ;;  %v2660_v26 = vrot.slane %v2659_v31, 2  ;;  %v2770_v13 = vsel %vm2755_vm9, %v8160_v59, %v2769_v43  ;;  %v2789_v51 = vsel %vm2751_vm7, %v7965_v41, %v2788_v44  ;;  %4643 = vmatpush1.bf16.msra.mxu1 %v6332_v38  ;;  %4489 = vmatprep.subr.bf16.mxu0 %v6337_v36  ;;  %v6364_v63 = vld [vmem:[#allocation16 + $0x48c] ss:$16 sps:$4 sm:$0xff]   ;;  %v6359_v38 = vld [vmem:[#allocation16 + $0x480] ss:$16 sps:$4 sm:$0xff]  }
 0x658   :  { %v2653_v29 = vrot.slane %v2652_v28, 2  ;;  %v2667_v37 = vrot.slane %v2666_v11, 2  ;;  %v2843_v24 = vpack.c.bf16 %v2770_v13, %v2770_v13  ;;  %v2790_v27 = vsel %vm2753_vm8, %v2600_v52, %v2789_v51  ;;  %4653 = vmatprep.subr.bf16.mxu1 %v6340_v60  ;;  %v6353_v52 = vld [vmem:[#allocation16 + $0x460] ss:$16 sps:$4 sm:$0xff]   ;;  %v6362_v36 = vld [vmem:[#allocation16 + $0x488] ss:$16 sps:$4 sm:$0xff]  }
 0x659   :  { %v2647_v30 = vmax.f32 %v2645_v9, %v2646_v25  ;;  %v2661_v4 = vmax.f32 %v2659_v31, %v2660_v26  ;;  %v2782_v6 = vsel %vm2751_vm7, %v7961_v49, %v7935_v39  ;;  %v2801_v41 = vsel %vm2747_vm5, %v7915_v47, %v7893_v46  ;;  %v6367_v9 = vld [vmem:[#allocation16 + $0x4a4] ss:$16 sps:$4 sm:$0xff]   ;;  %v6370_v31 = vld [vmem:[#allocation16 + $0x4ac] ss:$16 sps:$4 sm:$0xff]   ;;  %v6368_v61 = vld [vmem:[#allocation16 + $0x4a8] ss:$16 sps:$4 sm:$0xff]  }
 0x65a   :  { %v2654_v3 = vmax.f32 %v2652_v28, %v2653_v29  ;;  %v2668_v15 = vmax.f32 %v2666_v11, %v2667_v37  ;;  %4481 = vmatmul.mubr.bf16.vlgmr.msra.gmra.mrb[80].mxu0 %v2843_v24  ;;  %v2783_v54 = vsel %vm2753_vm8, %v2593_v20, %v2782_v6  ;;  %v2802_v0 = vsel %vm2749_vm6, %v7943_v18, %v2801_v41  ;;  %v6350_v20 = vld [vmem:[#allocation16 + $0x448] ss:$16 sps:$4 sm:$0xff]   ;;  %v6373_v10 = vld [vmem:[#allocation16 + $0x4c4] ss:$16 sps:$4 sm:$0xff]   ;;  %v6376_v60 = vld [vmem:[#allocation16 + $0x4cc] ss:$16 sps:$4 sm:$0xff]  }
 0x65b   :  { %v2648_v16 = vrot.slane %v2647_v30, 1  ;;  %v2662_v40 = vrot.slane %v2661_v4, 1  ;;  %4645 = vmatmul.mubr.bf16.vlgmr.msra.gmra.mrb[112].mxu1 %v2843_v24  ;;  %4490 = vmatpush1.bf16.msra.mxu0 %v6335_v12  ;;  %v2803_v39 = vsel %vm2751_vm7, %v7967_v17, %v2802_v0  ;;  %v2796_v46 = vsel %vm2751_vm7, %v7963_v7, %v7941_v32  ;;  %v6371_v19 = vld [vmem:[#allocation16 + $0x4c0] ss:$16 sps:$4 sm:$0xff]   ;;  %v6374_v28 = vld [vmem:[#allocation16 + $0x4c8] ss:$16 sps:$4 sm:$0xff]  }
 0x65c   :  { %v2655_v47 = vrot.slane %v2654_v3, 1  ;;  %v2669_v49 = vrot.slane %v2668_v15, 1  ;;  %4654 = vmatpush1.bf16.msra.mxu1 %v6338_v58  ;;  %4491 = vmatprep.subr.bf16.mxu0 %v6343_v57  ;;  %v2804_v18 = vsel %vm2753_vm8, %v2614_v34, %v2803_v39  ;;  %v2797_v21 = vsel %vm2753_vm8, %v7985_v55, %v2796_v46  ;;  %v6356_v34 = vld [vmem:[#allocation16 + $0x468] ss:$16 sps:$4 sm:$0xff]   ;;  %v6379_v11 = vld [vmem:[#allocation16 + $0x4e4] ss:$16 sps:$4 sm:$0xff]  }
 0x65d   :  { %v2649_v5 = vmax.f32 %v2647_v30, %v2648_v16  ;;  %v2663_v22 = vmax.f32 %v2661_v4, %v2662_v40  ;;  %4655 = vmatprep.subr.bf16.mxu1 %v6346_v23  ;;  %v6382_v62 = vld [vmem:[#allocation16 + $0x4ec] ss:$16 sps:$4 sm:$0xff]   ;;  %v6377_v43 = vld [vmem:[#allocation16 + $0x4e0] ss:$16 sps:$4 sm:$0xff]   ;;  %v6380_v44 = vld [vmem:[#allocation16 + $0x4e8] ss:$16 sps:$4 sm:$0xff]  }
 0x65e   :  { %v2656_v17 = vmax.f32 %v2654_v3, %v2655_v47  ;;  %v2670_v8 = vmax.f32 %v2668_v15, %v2669_v49  ;;  %v6385_v25 = vld [vmem:[#allocation16 + $0x504] ss:$16 sps:$4 sm:$0xff]   ;;  %v6388_v26 = vld [vmem:[#allocation16 + $0x50c] ss:$16 sps:$4 sm:$0xff]   ;;  %v6383_v59 = vld [vmem:[#allocation16 + $0x500] ss:$16 sps:$4 sm:$0xff]  }
 0x65f   :  { %4492 = vmatpush1.bf16.msra.mxu0 %v6341_v42  ;;  %v8020_v32 = vsel %vm2755_vm9, %v2649_v5, %v2783_v54  ;;  %v8023_v7 = vsel %vm2755_vm9, %v2663_v22, %v2797_v21  ;;  %v6386_v13 = vld [vmem:[#allocation16 + $0x508] ss:$16 sps:$4 sm:$0xff]   ;;  %v6391_v12 = vld [vmem:[#allocation16 + $0x524] ss:$16 sps:$4 sm:$0xff]   ;;  %v6394_v51 = vld [vmem:[#allocation16 + $0x52c] ss:$16 sps:$4 sm:$0xff]  }
 0x660   :  { %v2791_v33 = vsel %vm2755_vm9, %v2656_v17, %v2790_v27  ;;  %4656 = vmatpush1.bf16.msra.mxu1 %v6344_v53  ;;  %4493 = vmatprep.subr.bf16.mxu0 %v6349_v1  ;;  %v8027_v55 = vsel %vm2755_vm9, %v2670_v8, %v2804_v18  ;;  %v6389_v29 = vld [vmem:[#allocation16 + $0x520] ss:$16 sps:$4 sm:$0xff]   ;;  %v6392_v37 = vld [vmem:[#allocation16 + $0x528] ss:$16 sps:$4 sm:$0xff]   ;;  %v6397_v24 = vld [vmem:[#allocation16 + $0x544] ss:$16 sps:$4 sm:$0xff]   ;;  %v2845_v17 = vpack.c.bf16 %v8020_v32, %v8020_v32 }
 0x661   :  { %v2846_v14 = vpack.c.bf16 %v2791_v33, %v2791_v33  ;;  %4657 = vmatprep.subr.bf16.mxu1 %v6352_v45  ;;  %v6400_v58 = vld [vmem:[#allocation16 + $0x54c] ss:$16 sps:$4 sm:$0xff]   ;;  %v6395_v27 = vld [vmem:[#allocation16 + $0x540] ss:$16 sps:$4 sm:$0xff]   ;;  %v6398_v57 = vld [vmem:[#allocation16 + $0x548] ss:$16 sps:$4 sm:$0xff]   ;;  %v2848_v33 = vpack.c.bf16 %v8027_v55, %v8027_v55 }
 0x662   :  { %v6403_v30 = vld [vmem:[#allocation16 + $0x564] ss:$16 sps:$4 sm:$0xff]   ;;  %v6406_v4 = vld [vmem:[#allocation16 + $0x56c] ss:$16 sps:$4 sm:$0xff]   ;;  %v6401_v23 = vld [vmem:[#allocation16 + $0x560] ss:$16 sps:$4 sm:$0xff]  }
 0x663   :  { %4521 = vmatprep.mubr.bf16.mxu0 %v2846_v14  ;;  %4685 = vmatprep.mubr.bf16.mxu1 %v2846_v14  ;;  %v6404_v6 = vld [vmem:[#allocation16 + $0x568] ss:$16 sps:$4 sm:$0xff]   ;;  %v6409_v41 = vld [vmem:[#allocation16 + $0x584] ss:$16 sps:$4 sm:$0xff]   ;;  %v6412_v3 = vld [vmem:[#allocation16 + $0x58c] ss:$16 sps:$4 sm:$0xff]  }
 0x664   :  { %4494 = vmatpush1.bf16.msra.mxu0 %v6347_v56  ;;  %4658 = vmatpush1.bf16.msra.mxu1 %v6350_v20  ;;  %v6407_v15 = vld [vmem:[#allocation16 + $0x580] ss:$16 sps:$4 sm:$0xff]   ;;  %v6410_v54 = vld [vmem:[#allocation16 + $0x588] ss:$16 sps:$4 sm:$0xff]   ;;  %v6415_v0 = vld [vmem:[#allocation16 + $0x5a4] ss:$16 sps:$4 sm:$0xff]  }
 0x665   :  { %4495 = vmatprep.subr.bf16.mxu0 %v6355_v50  ;;  %4659 = vmatprep.subr.bf16.mxu1 %v6358_v2  ;;  %v6418_v16 = vld [vmem:[#allocation16 + $0x5ac] ss:$16 sps:$4 sm:$0xff]   ;;  %v6413_v40 = vld [vmem:[#allocation16 + $0x5a0] ss:$16 sps:$4 sm:$0xff]   ;;  %v6416_v42 = vld [vmem:[#allocation16 + $0x5a8] ss:$16 sps:$4 sm:$0xff]  }
 0x666   :  { %v6421_v39 = vld [vmem:[#allocation16 + $0x5c4] ss:$16 sps:$4 sm:$0xff]   ;;  %v6424_v46 = vld [vmem:[#allocation16 + $0x5cc] ss:$16 sps:$4 sm:$0xff]   ;;  %v6419_v47 = vld [vmem:[#allocation16 + $0x5c0] ss:$16 sps:$4 sm:$0xff]  }
 0x667   :  { %v6422_v49 = vld [vmem:[#allocation16 + $0x5c8] ss:$16 sps:$4 sm:$0xff]   ;;  %v6427_v53 = vld [vmem:[#allocation16 + $0x5e4] ss:$16 sps:$4 sm:$0xff]   ;;  %v6430_v1 = vld [vmem:[#allocation16 + $0x5ec] ss:$16 sps:$4 sm:$0xff]  }
 0x668   :  { %4496 = vmatpush1.bf16.msra.mxu0 %v6353_v52  ;;  %4660 = vmatpush1.bf16.msra.mxu1 %v6356_v34  ;;  %v6425_v18 = vld [vmem:[#allocation16 + $0x5e0] ss:$16 sps:$4 sm:$0xff]   ;;  %v6428_v21 = vld [vmem:[#allocation16 + $0x5e8] ss:$16 sps:$4 sm:$0xff]   ;;  %v6433_v5 = vld [vmem:[#allocation16 + $0x604] ss:$16 sps:$4 sm:$0xff]  }
 0x669   :  { %4497 = vmatprep.subr.bf16.mxu0 %v6361_v35  ;;  %4661 = vmatprep.subr.bf16.mxu1 %v6364_v63  ;;  %v6436_v22 = vld [vmem:[#allocation16 + $0x60c] ss:$16 sps:$4 sm:$0xff]   ;;  %v6431_v45 = vld [vmem:[#allocation16 + $0x600] ss:$16 sps:$4 sm:$0xff]   ;;  %v6434_v8 = vld [vmem:[#allocation16 + $0x608] ss:$16 sps:$4 sm:$0xff]  }
 0x66a   :  { %v6439_v56 = vld [vmem:[#allocation16 + $0x624] ss:$16 sps:$4 sm:$0xff]   ;;  %v6442_v20 = vld [vmem:[#allocation16 + $0x62c] ss:$16 sps:$4 sm:$0xff]   ;;  %v6437_v14 = vld [vmem:[#allocation16 + $0x620] ss:$16 sps:$4 sm:$0xff]  }
 0x66b   :  { %v6440_v50 = vld [vmem:[#allocation16 + $0x628] ss:$16 sps:$4 sm:$0xff]   ;;  %v6445_v2 = vld [vmem:[#allocation16 + $0x644] ss:$16 sps:$4 sm:$0xff]   ;;  %v6448_v32 = vld [vmem:[#allocation16 + $0x64c] ss:$16 sps:$4 sm:$0xff]  }
 0x66c   :  { %4498 = vmatpush1.bf16.msra.mxu0 %v6359_v38  ;;  %4662 = vmatpush1.bf16.msra.mxu1 %v6362_v36  ;;  %v6443_v52 = vld [vmem:[#allocation16 + $0x640] ss:$16 sps:$4 sm:$0xff]   ;;  %v6446_v34 = vld [vmem:[#allocation16 + $0x648] ss:$16 sps:$4 sm:$0xff]   ;;  %v6451_v55 = vld [vmem:[#allocation16 + $0x664] ss:$16 sps:$4 sm:$0xff]  }
 0x66d   :  { %4499 = vmatprep.subr.bf16.mxu0 %v6367_v9  ;;  %4663 = vmatprep.subr.bf16.mxu1 %v6370_v31  ;;  %v6454_v35 = vld [vmem:[#allocation16 + $0x66c] ss:$16 sps:$4 sm:$0xff]   ;;  %v6449_v63 = vld [vmem:[#allocation16 + $0x660] ss:$16 sps:$4 sm:$0xff]   ;;  %v6452_v38 = vld [vmem:[#allocation16 + $0x668] ss:$16 sps:$4 sm:$0xff]  }
 0x66e   :  { %v6457_v36 = vld [vmem:[#allocation16 + $0x684] ss:$16 sps:$4 sm:$0xff]   ;;  %v6460_v9 = vld [vmem:[#allocation16 + $0x68c] ss:$16 sps:$4 sm:$0xff]   ;;  %v6455_v31 = vld [vmem:[#allocation16 + $0x680] ss:$16 sps:$4 sm:$0xff]  }
 0x670   :  { %4500 = vmatpush1.bf16.msra.mxu0 %v6365_v48  ;;  %4664 = vmatpush1.bf16.msra.mxu1 %v6368_v61  ;;  %v6458_v48 = vld [vmem:[#allocation16 + $0x688] ss:$16 sps:$4 sm:$0xff]   ;;  %v6463_v61 = vld [vmem:[#allocation16 + $0x6a4] ss:$16 sps:$4 sm:$0xff]  }
 0x671   :  { %4501 = vmatprep.subr.bf16.mxu0 %v6373_v10  ;;  %4665 = vmatprep.subr.bf16.mxu1 %v6376_v60  ;;  %v6466_v10 = vld [vmem:[#allocation16 + $0x6ac] ss:$16 sps:$4 sm:$0xff]   ;;  %v6461_v60 = vld [vmem:[#allocation16 + $0x6a0] ss:$16 sps:$4 sm:$0xff]  }
 0x674   :  { %4502 = vmatpush1.bf16.msra.mxu0 %v6371_v19  ;;  %4666 = vmatpush1.bf16.msra.mxu1 %v6374_v28  ;;  %v6464_v19 = vld [vmem:[#allocation16 + $0x6a8] ss:$16 sps:$4 sm:$0xff]   ;;  %v6469_v28 = vld [vmem:[#allocation16 + $0x6c4] ss:$16 sps:$4 sm:$0xff]  }
 0x675   :  { %4503 = vmatprep.subr.bf16.mxu0 %v6379_v11  ;;  %4667 = vmatprep.subr.bf16.mxu1 %v6382_v62  ;;  %v6472_v11 = vld [vmem:[#allocation16 + $0x6cc] ss:$16 sps:$4 sm:$0xff]   ;;  %v6467_v62 = vld [vmem:[#allocation16 + $0x6c0] ss:$16 sps:$4 sm:$0xff]  }
 0x678   :  { %4504 = vmatpush1.bf16.msra.mxu0 %v6377_v43  ;;  %4668 = vmatpush1.bf16.msra.mxu1 %v6380_v44  ;;  %v6470_v43 = vld [vmem:[#allocation16 + $0x6c8] ss:$16 sps:$4 sm:$0xff]   ;;  %v6475_v44 = vld [vmem:[#allocation16 + $0x6e4] ss:$16 sps:$4 sm:$0xff]  }
 0x679   :  { %4505 = vmatprep.subr.bf16.mxu0 %v6385_v25  ;;  %4669 = vmatprep.subr.bf16.mxu1 %v6388_v26  ;;  %v6478_v25 = vld [vmem:[#allocation16 + $0x6ec] ss:$16 sps:$4 sm:$0xff]   ;;  %v6473_v26 = vld [vmem:[#allocation16 + $0x6e0] ss:$16 sps:$4 sm:$0xff]  }
 0x67c   :  { %4506 = vmatpush1.bf16.msra.mxu0 %v6383_v59  ;;  %4670 = vmatpush1.bf16.msra.mxu1 %v6386_v13  ;;  %v6476_v59 = vld [vmem:[#allocation16 + $0x6e8] ss:$16 sps:$4 sm:$0xff]   ;;  %v6481_v13 = vld [vmem:[#allocation16 + $0x704] ss:$16 sps:$4 sm:$0xff]  }
 0x67d   :  { %4507 = vmatprep.subr.bf16.mxu0 %v6391_v12  ;;  %4671 = vmatprep.subr.bf16.mxu1 %v6394_v51  ;;  %v6484_v12 = vld [vmem:[#allocation16 + $0x70c] ss:$16 sps:$4 sm:$0xff]   ;;  %v6479_v51 = vld [vmem:[#allocation16 + $0x700] ss:$16 sps:$4 sm:$0xff]  }
 0x680   :  { %4508 = vmatpush1.bf16.msra.mxu0 %v6389_v29  ;;  %4672 = vmatpush1.bf16.msra.mxu1 %v6392_v37  ;;  %v6482_v29 = vld [vmem:[#allocation16 + $0x708] ss:$16 sps:$4 sm:$0xff]   ;;  %v6487_v37 = vld [vmem:[#allocation16 + $0x724] ss:$16 sps:$4 sm:$0xff]  }
 0x681   :  { %4509 = vmatprep.subr.bf16.mxu0 %v6397_v24  ;;  %4673 = vmatprep.subr.bf16.mxu1 %v6400_v58  ;;  %v6490_v24 = vld [vmem:[#allocation16 + $0x72c] ss:$16 sps:$4 sm:$0xff]   ;;  %v6485_v58 = vld [vmem:[#allocation16 + $0x720] ss:$16 sps:$4 sm:$0xff]  }
 0x684   :  { %4510 = vmatpush1.bf16.msra.mxu0 %v6395_v27  ;;  %4674 = vmatpush1.bf16.msra.mxu1 %v6398_v57  ;;  %v6488_v27 = vld [vmem:[#allocation16 + $0x728] ss:$16 sps:$4 sm:$0xff]   ;;  %v6493_v57 = vld [vmem:[#allocation16 + $0x744] ss:$16 sps:$4 sm:$0xff]  }
 0x685   :  { %4511 = vmatprep.subr.bf16.mxu0 %v6403_v30  ;;  %4675 = vmatprep.subr.bf16.mxu1 %v6406_v4  ;;  %v6496_v30 = vld [vmem:[#allocation16 + $0x74c] ss:$16 sps:$4 sm:$0xff]   ;;  %v6491_v4 = vld [vmem:[#allocation16 + $0x740] ss:$16 sps:$4 sm:$0xff]  }
 0x688   :  { %4512 = vmatpush1.bf16.msra.mxu0 %v6401_v23  ;;  %4676 = vmatpush1.bf16.msra.mxu1 %v6404_v6  ;;  %v6494_v23 = vld [vmem:[#allocation16 + $0x748] ss:$16 sps:$4 sm:$0xff]   ;;  %v6499_v6 = vld [vmem:[#allocation16 + $0x764] ss:$16 sps:$4 sm:$0xff]  }
 0x689   :  { %4513 = vmatprep.subr.bf16.mxu0 %v6409_v41  ;;  %4677 = vmatprep.subr.bf16.mxu1 %v6412_v3  ;;  %v6502_v41 = vld [vmem:[#allocation16 + $0x76c] ss:$16 sps:$4 sm:$0xff]   ;;  %v6497_v3 = vld [vmem:[#allocation16 + $0x760] ss:$16 sps:$4 sm:$0xff]  }
 0x68c   :  { %4514 = vmatpush1.bf16.msra.mxu0 %v6407_v15  ;;  %4678 = vmatpush1.bf16.msra.mxu1 %v6410_v54  ;;  %v6500_v15 = vld [vmem:[#allocation16 + $0x768] ss:$16 sps:$4 sm:$0xff]   ;;  %v6505_v54 = vld [vmem:[#allocation16 + $0x784] ss:$16 sps:$4 sm:$0xff]  }
 0x68d   :  { %4515 = vmatprep.subr.bf16.mxu0 %v6415_v0  ;;  %4679 = vmatprep.subr.bf16.mxu1 %v6418_v16  ;;  %v6508_v0 = vld [vmem:[#allocation16 + $0x78c] ss:$16 sps:$4 sm:$0xff]   ;;  %v6503_v16 = vld [vmem:[#allocation16 + $0x780] ss:$16 sps:$4 sm:$0xff]  }
 0x690   :  { %4516 = vmatpush1.bf16.msra.mxu0 %v6413_v40  ;;  %4680 = vmatpush1.bf16.msra.mxu1 %v6416_v42  ;;  %v6506_v40 = vld [vmem:[#allocation16 + $0x788] ss:$16 sps:$4 sm:$0xff]   ;;  %v6511_v42 = vld [vmem:[#allocation16 + $0x7a4] ss:$16 sps:$4 sm:$0xff]  }
 0x691   :  { %4517 = vmatprep.subr.bf16.mxu0 %v6421_v39  ;;  %4681 = vmatprep.subr.bf16.mxu1 %v6424_v46  ;;  %v6514_v39 = vld [vmem:[#allocation16 + $0x7ac] ss:$16 sps:$4 sm:$0xff]   ;;  %v6509_v46 = vld [vmem:[#allocation16 + $0x7a0] ss:$16 sps:$4 sm:$0xff]  }
 0x694   :  { %4518 = vmatpush1.bf16.msra.mxu0 %v6419_v47  ;;  %4682 = vmatpush1.bf16.msra.mxu1 %v6422_v49  ;;  %v6512_v47 = vld [vmem:[#allocation16 + $0x7a8] ss:$16 sps:$4 sm:$0xff]   ;;  %v6517_v49 = vld [vmem:[#allocation16 + $0x7c4] ss:$16 sps:$4 sm:$0xff]  }
 0x695   :  { %4519 = vmatprep.subr.bf16.mxu0 %v6427_v53  ;;  %4683 = vmatprep.subr.bf16.mxu1 %v6430_v1  ;;  %v6520_v53 = vld [vmem:[#allocation16 + $0x7cc] ss:$16 sps:$4 sm:$0xff]   ;;  %v6515_v1 = vld [vmem:[#allocation16 + $0x7c0] ss:$16 sps:$4 sm:$0xff]  }
 0x698   :  { %4520 = vmatpush1.bf16.msra.mxu0 %v6425_v18  ;;  %4684 = vmatpush1.bf16.msra.mxu1 %v6428_v21  ;;  %v6518_v18 = vld [vmem:[#allocation16 + $0x7c8] ss:$16 sps:$4 sm:$0xff]   ;;  %v6523_v21 = vld [vmem:[#allocation16 + $0x7e4] ss:$16 sps:$4 sm:$0xff]  }
 0x699   :  { %4530 = vmatprep.subr.bf16.mxu0 %v6433_v5  ;;  %4694 = vmatprep.subr.bf16.mxu1 %v6436_v22  ;;  %v6526_v5 = vld [vmem:[#allocation16 + $0x7ec] ss:$16 sps:$4 sm:$0xff]   ;;  %v6521_v22 = vld [vmem:[#allocation16 + $0x7e0] ss:$16 sps:$4 sm:$0xff]  }
 0x69b   :  { %4522 = vmatmul.mubr.bf16.vlgmr.msra.gmra.mrb[80].mxu0 %v2845_v17  ;;  %4686 = vmatmul.mubr.bf16.vlgmr.msra.gmra.mrb[112].mxu1 %v2845_v17  ;;  %v6529_v17 = vld [vmem:[#allocation18 + $0x4] ss:$8 sps:$4 sm:$0xff]  }
 0x69c   :  { %4531 = vmatpush1.bf16.msra.mxu0 %v6431_v45  ;;  %4562 = vmatprep.mubr.bf16.mxu0 %v2848_v33  ;;  %v6524_v45 = vld [vmem:[#allocation16 + $0x7e8] ss:$16 sps:$4 sm:$0xff]  }
 0x69d   :  { %4695 = vmatpush1.bf16.msra.mxu1 %v6434_v8  ;;  %4726 = vmatprep.mubr.bf16.mxu1 %v2848_v33  ;;  %v6527_v8 = vld [vmem:[#allocation18] ss:$8 sps:$4 sm:$0xff]   ;;  %v2847_v33 = vpack.c.bf16 %v8023_v7, %v8023_v7  ;;  %v6544_v7 = vld [vmem:[#allocation18 + $0x54] ss:$8 sps:$4 sm:$0xff]  }
 0x69e   :  { %4532 = vmatprep.subr.bf16.mxu0 %v6439_v56  ;;  %4696 = vmatprep.subr.bf16.mxu1 %v6442_v20  ;;  %v6532_v56 = vld [vmem:[#allocation18 + $0x14] ss:$8 sps:$4 sm:$0xff]   ;;  %v6530_v20 = vld [vmem:[#allocation18 + $0x10] ss:$8 sps:$4 sm:$0xff]  }
 0x6a0   :  { %4533 = vmatpush1.bf16.msra.mxu0 %v6437_v14  ;;  %v6535_v14 = vld [vmem:[#allocation18 + $0x24] ss:$8 sps:$4 sm:$0xff]  }
 0x6a1   :  { %4697 = vmatpush1.bf16.msra.mxu1 %v6440_v50  ;;  %4534 = vmatprep.subr.bf16.mxu0 %v6445_v2  ;;  %v6533_v50 = vld [vmem:[#allocation18 + $0x20] ss:$8 sps:$4 sm:$0xff]   ;;  %v6538_v2 = vld [vmem:[#allocation18 + $0x34] ss:$8 sps:$4 sm:$0xff]  }
 0x6a2   :  { %4698 = vmatprep.subr.bf16.mxu1 %v6448_v32  ;;  %v6536_v32 = vld [vmem:[#allocation18 + $0x30] ss:$8 sps:$4 sm:$0xff]  }
 0x6a4   :  { %4535 = vmatpush1.bf16.msra.mxu0 %v6443_v52  ;;  %v6541_v52 = vld [vmem:[#allocation18 + $0x44] ss:$8 sps:$4 sm:$0xff]  }
 0x6a5   :  { %4699 = vmatpush1.bf16.msra.mxu1 %v6446_v34  ;;  %4536 = vmatprep.subr.bf16.mxu0 %v6451_v55  ;;  %v6539_v34 = vld [vmem:[#allocation18 + $0x40] ss:$8 sps:$4 sm:$0xff]   ;;  %v6542_v55 = vld [vmem:[#allocation18 + $0x50] ss:$8 sps:$4 sm:$0xff]  }
 0x6a6   :  { %4700 = vmatprep.subr.bf16.mxu1 %v6454_v35  ;;  %v6547_v35 = vld [vmem:[#allocation18 + $0x64] ss:$8 sps:$4 sm:$0xff]  }
 0x6a8   :  { %4537 = vmatpush1.bf16.msra.mxu0 %v6449_v63  ;;  %v6545_v63 = vld [vmem:[#allocation18 + $0x60] ss:$8 sps:$4 sm:$0xff]  }
 0x6a9   :  { %4701 = vmatpush1.bf16.msra.mxu1 %v6452_v38  ;;  %4538 = vmatprep.subr.bf16.mxu0 %v6457_v36  ;;  %v6550_v38 = vld [vmem:[#allocation18 + $0x74] ss:$8 sps:$4 sm:$0xff]   ;;  %v6548_v36 = vld [vmem:[#allocation18 + $0x70] ss:$8 sps:$4 sm:$0xff]  }
 0x6aa   :  { %4702 = vmatprep.subr.bf16.mxu1 %v6460_v9  ;;  %v6553_v9 = vld [vmem:[#allocation18 + $0x84] ss:$8 sps:$4 sm:$0xff]  }
 0x6ac   :  { %4539 = vmatpush1.bf16.msra.mxu0 %v6455_v31  ;;  %v6551_v31 = vld [vmem:[#allocation18 + $0x80] ss:$8 sps:$4 sm:$0xff]  }
 0x6ad   :  { %4703 = vmatpush1.bf16.msra.mxu1 %v6458_v48  ;;  %4540 = vmatprep.subr.bf16.mxu0 %v6463_v61  ;;  %v6556_v48 = vld [vmem:[#allocation18 + $0x94] ss:$8 sps:$4 sm:$0xff]   ;;  %v6554_v61 = vld [vmem:[#allocation18 + $0x90] ss:$8 sps:$4 sm:$0xff]  }
 0x6ae   :  { %4704 = vmatprep.subr.bf16.mxu1 %v6466_v10  ;;  %v6559_v10 = vld [vmem:[#allocation18 + $0xa4] ss:$8 sps:$4 sm:$0xff]  }
 0x6b0   :  { %4541 = vmatpush1.bf16.msra.mxu0 %v6461_v60  ;;  %v6557_v60 = vld [vmem:[#allocation18 + $0xa0] ss:$8 sps:$4 sm:$0xff]  }
 0x6b1   :  { %4705 = vmatpush1.bf16.msra.mxu1 %v6464_v19  ;;  %4542 = vmatprep.subr.bf16.mxu0 %v6469_v28  ;;  %v6562_v19 = vld [vmem:[#allocation18 + $0xb4] ss:$8 sps:$4 sm:$0xff]   ;;  %v6560_v28 = vld [vmem:[#allocation18 + $0xb0] ss:$8 sps:$4 sm:$0xff]  }
 0x6b2   :  { %4706 = vmatprep.subr.bf16.mxu1 %v6472_v11  ;;  %v6565_v11 = vld [vmem:[#allocation18 + $0xc4] ss:$8 sps:$4 sm:$0xff]  }
 0x6b4   :  { %4543 = vmatpush1.bf16.msra.mxu0 %v6467_v62  ;;  %v6563_v62 = vld [vmem:[#allocation18 + $0xc0] ss:$8 sps:$4 sm:$0xff]  }
 0x6b5   :  { %4707 = vmatpush1.bf16.msra.mxu1 %v6470_v43  ;;  %4544 = vmatprep.subr.bf16.mxu0 %v6475_v44  ;;  %v6568_v43 = vld [vmem:[#allocation18 + $0xd4] ss:$8 sps:$4 sm:$0xff]   ;;  %v6566_v44 = vld [vmem:[#allocation18 + $0xd0] ss:$8 sps:$4 sm:$0xff]  }
 0x6b6   :  { %4708 = vmatprep.subr.bf16.mxu1 %v6478_v25  ;;  %v6569_v25 = vld [vmem:[#allocation18 + $0xe0] ss:$8 sps:$4 sm:$0xff]  }
 0x6b8   :  { %4545 = vmatpush1.bf16.msra.mxu0 %v6473_v26  ;;  %v6571_v26 = vld [vmem:[#allocation18 + $0xe4] ss:$8 sps:$4 sm:$0xff]  }
 0x6b9   :  { %4709 = vmatpush1.bf16.msra.mxu1 %v6476_v59  ;;  %4546 = vmatprep.subr.bf16.mxu0 %v6481_v13  ;;  %v6574_v59 = vld [vmem:[#allocation18 + $0xf4] ss:$8 sps:$4 sm:$0xff]   ;;  %v6572_v13 = vld [vmem:[#allocation18 + $0xf0] ss:$8 sps:$4 sm:$0xff]  }
 0x6ba   :  { %4710 = vmatprep.subr.bf16.mxu1 %v6484_v12  ;;  %v6577_v12 = vld [vmem:[#allocation18 + $0x104] ss:$8 sps:$4 sm:$0xff]  }
 0x6bc   :  { %4547 = vmatpush1.bf16.msra.mxu0 %v6479_v51  ;;  %v6623_v51 = vld [vmem:[#allocation19 + $0x40] sm:$0xff]  }
 0x6bd   :  { %4711 = vmatpush1.bf16.msra.mxu1 %v6482_v29  ;;  %4548 = vmatprep.subr.bf16.mxu0 %v6487_v37  ;;  %v6624_v29 = vld [vmem:[#allocation19] sm:$0xff]   ;;  %v6625_v37 = vld [vmem:[#allocation19 + $0x48] sm:$0xff]  }
 0x6be   :  { %4712 = vmatprep.subr.bf16.mxu1 %v6490_v24  ;;  %v6626_v24 = vld [vmem:[#allocation19 + $0x8] sm:$0xff]  }
 0x6c0   :  { %4549 = vmatpush1.bf16.msra.mxu0 %v6485_v58  ;;  %v6627_v58 = vld [vmem:[#allocation19 + $0x50] sm:$0xff]  }
 0x6c1   :  { %4713 = vmatpush1.bf16.msra.mxu1 %v6488_v27  ;;  %4550 = vmatprep.subr.bf16.mxu0 %v6493_v57  ;;  %v6628_v27 = vld [vmem:[#allocation19 + $0x10] sm:$0xff]   ;;  %v6629_v57 = vld [vmem:[#allocation19 + $0x58] sm:$0xff]  }
 0x6c2   :  { %4714 = vmatprep.subr.bf16.mxu1 %v6496_v30  ;;  %v6630_v30 = vld [vmem:[#allocation19 + $0x18] sm:$0xff]  }
 0x6c4   :  { %4551 = vmatpush1.bf16.msra.mxu0 %v6491_v4  ;;  %v6631_v4 = vld [vmem:[#allocation19 + $0x60] sm:$0xff]  }
 0x6c5   :  { %4715 = vmatpush1.bf16.msra.mxu1 %v6494_v23  ;;  %4552 = vmatprep.subr.bf16.mxu0 %v6499_v6  ;;  %v6632_v23 = vld [vmem:[#allocation19 + $0x20] sm:$0xff]   ;;  %v6633_v6 = vld [vmem:[#allocation19 + $0x68] sm:$0xff]  }
 0x6c6   :  { %4716 = vmatprep.subr.bf16.mxu1 %v6502_v41  ;;  %v6634_v41 = vld [vmem:[#allocation19 + $0x28] sm:$0xff]  }
 0x6c8   :  { %4553 = vmatpush1.bf16.msra.mxu0 %v6497_v3  ;;  %v8038_v3 = vld [vmem:[%s8085_s12] sm:$0xf] }
 0x6c9   :  { %4717 = vmatpush1.bf16.msra.mxu1 %v6500_v15  ;;  %4554 = vmatprep.subr.bf16.mxu0 %v6505_v54  ;;  %v8161_v15 = vld [vmem:[#allocation30_spill] sm:$0xff] }
 0x6ca   :  { %4718 = vmatprep.subr.bf16.mxu1 %v6508_v0  ;;  %v3110_v54 = vrot.slane %v8038_v3, %v8161_v15  ;;  %v8162_v0 = vld [vmem:[#allocation31_spill] sm:$0xff] }
 0x6cc   :  { %4555 = vmatpush1.bf16.msra.mxu0 %v6503_v16  ;;  %v3114_v16 = vrot.slane %v8038_v3, %v8162_v0 }
 0x6cd   :  { %4719 = vmatpush1.bf16.msra.mxu1 %v6506_v40  ;;  %4556 = vmatprep.subr.bf16.mxu0 %v6511_v42  ;;  %v8163_v40 = vld [vmem:[#allocation29_spill] sm:$0xff] }
 0x6ce   :  { %4720 = vmatprep.subr.bf16.mxu1 %v6514_v39  ;;  %v8164_v42 = vsub.s32 3, %v8163_v40 }
 0x6d0   :  { %4557 = vmatpush1.bf16.msra.mxu0 %v6509_v46  ;;  %v3122_v39 = vrot.slane %v8038_v3, %v8164_v42 }
 0x6d1   :  { %4721 = vmatpush1.bf16.msra.mxu1 %v6512_v47  ;;  %4558 = vmatprep.subr.bf16.mxu0 %v6517_v49 }
 0x6d2   :  { %4722 = vmatprep.subr.bf16.mxu1 %v6520_v53 }
 0x6d4   :  { %4559 = vmatpush1.bf16.msra.mxu0 %v6515_v1 }
 0x6d5   :  { %4723 = vmatpush1.bf16.msra.mxu1 %v6518_v18  ;;  %4560 = vmatprep.subr.bf16.mxu0 %v6523_v21 }
 0x6d6   :  { %4724 = vmatprep.subr.bf16.mxu1 %v6526_v5 }
 0x6d8   :  { %4561 = vmatpush1.bf16.msra.mxu0 %v6521_v22 }
 0x6d9   :  { %4725 = vmatpush1.bf16.msra.mxu1 %v6524_v45  ;;  %5139 = vmatprep.subr.bf16.mxu0 %v6529_v17 }
 0x6da   :  { %5915 = vmatprep.subr.bf16.mxu1 %v6623_v51  ;;  %v8165_v51 = vsub.s32 2, %v8163_v40 }
 0x6db   :  { %4563 = vmatmul.mubr.bf16.vlgmr.msra.gmra.mrb[80].mxu0 %v2847_v33 }
 0x6dc   :  { %4727 = vmatmul.mubr.bf16.vlgmr.msra.gmra.mrb[112].mxu1 %v2847_v33  ;;  %5140 = vmatpush1.bf16.msra.mxu0 %v6527_v8 }
 0x6dd   :  { %5141 = vmatprep.subr.bf16.mxu0 %v6532_v56  ;;  %5916 = vmatpush3.bf16.msra.mxu1 %v6624_v29  ;;  %v3118_v29 = vrot.slane %v8038_v3, %v8165_v51  ;;  %v6638_v3 = vld [vmem:[#allocation19 + $0x38] sm:$0xff]  }
 0x6de   :  { %5917 = vmatprep.subr.bf16.mxu1 %v6625_v37  ;;  %v6619_v37 = vld [vmem:[#allocation18 + $0x1e4] ss:$8 sps:$4 sm:$0xff]  }
 0x6e0   :  { %5142 = vmatpush1.bf16.msra.mxu0 %v6530_v20 }
 0x6e1   :  { %5143 = vmatprep.subr.bf16.mxu0 %v6535_v14  ;;  %5918 = vmatpush3.bf16.msra.mxu1 %v6626_v24  ;;  %v6575_v14 = vld [vmem:[#allocation18 + $0x100] ss:$8 sps:$4 sm:$0xff]  }
 0x6e2   :  { %5919 = vmatprep.subr.bf16.mxu1 %v6627_v58  ;;  %v6617_v24 = vld [vmem:[#allocation18 + $0x1e0] ss:$8 sps:$4 sm:$0xff]  }
 0x6e4   :  { %5144 = vmatpush1.bf16.msra.mxu0 %v6533_v50 }
 0x6e5   :  { %5145 = vmatprep.subr.bf16.mxu0 %v6538_v2  ;;  %5920 = vmatpush3.bf16.msra.mxu1 %v6628_v27  ;;  %v6580_v2 = vld [vmem:[#allocation18 + $0x114] ss:$8 sps:$4 sm:$0xff]  }
 0x6e6   :  { %5921 = vmatprep.subr.bf16.mxu1 %v6629_v57  ;;  %v6622_v27 = vld [vmem:[#allocation18 + $0x1f4] ss:$8 sps:$4 sm:$0xff]   ;;  %v6620_v57 = vld [vmem:[#allocation18 + $0x1f0] ss:$8 sps:$4 sm:$0xff]  }
 0x6e8   :  { %5146 = vmatpush1.bf16.msra.mxu0 %v6536_v32 }
 0x6e9   :  { %5147 = vmatprep.subr.bf16.mxu0 %v6541_v52  ;;  %5922 = vmatpush3.bf16.msra.mxu1 %v6630_v30  ;;  %v6578_v52 = vld [vmem:[#allocation18 + $0x110] ss:$8 sps:$4 sm:$0xff]  }
 0x6ea   :  { %5923 = vmatprep.subr.bf16.mxu1 %v6631_v4 }
 0x6ec   :  { %5148 = vmatpush1.bf16.msra.mxu0 %v6539_v34  ;;  %v6583_v34 = vld [vmem:[#allocation18 + $0x124] ss:$8 sps:$4 sm:$0xff]  }
 0x6ed   :  { %5149 = vmatprep.subr.bf16.mxu0 %v6544_v7  ;;  %5924 = vmatpush3.bf16.msra.mxu1 %v6632_v23  ;;  %v6581_v7 = vld [vmem:[#allocation18 + $0x120] ss:$8 sps:$4 sm:$0xff]   ;;  %v6635_v23 = vld [vmem:[#allocation19 + $0x70] sm:$0xff]  }
 0x6ee   :  { %5925 = vmatprep.subr.bf16.mxu1 %v6633_v6  ;;  %v6636_v6 = vld [vmem:[#allocation19 + $0x30] sm:$0xff]  }
 0x6f0   :  { %5150 = vmatpush1.bf16.msra.mxu0 %v6542_v55  ;;  %v6586_v55 = vld [vmem:[#allocation18 + $0x134] ss:$8 sps:$4 sm:$0xff]  }
 0x6f1   :  { %5151 = vmatprep.subr.bf16.mxu0 %v6547_v35  ;;  %5926 = vmatpush3.bf16.msra.mxu1 %v6634_v41  ;;  %v6584_v35 = vld [vmem:[#allocation18 + $0x130] ss:$8 sps:$4 sm:$0xff]  }
 0x6f2   :  { %v6637_v41 = vld [vmem:[#allocation19 + $0x78] sm:$0xff]   ;;  %5927 = vmatprep.subr.bf16.mxu1 %v6635_v23 }
 0x6f4   :  { %5152 = vmatpush1.bf16.msra.mxu0 %v6545_v63  ;;  %v6589_v63 = vld [vmem:[#allocation18 + $0x144] ss:$8 sps:$4 sm:$0xff]  }
 0x6f5   :  { %5153 = vmatprep.subr.bf16.mxu0 %v6550_v38  ;;  %v6587_v38 = vld [vmem:[#allocation18 + $0x140] ss:$8 sps:$4 sm:$0xff]   ;;  %5928 = vmatpush3.bf16.msra.mxu1 %v6636_v6 }
 0x6f6   :  { %5929 = vmatprep.subr.bf16.mxu1 %v6637_v41 }
 0x6f8   :  { %5154 = vmatpush1.bf16.msra.mxu0 %v6548_v36  ;;  %v6592_v36 = vld [vmem:[#allocation18 + $0x154] ss:$8 sps:$4 sm:$0xff]  }
 0x6f9   :  { %5155 = vmatprep.subr.bf16.mxu0 %v6553_v9  ;;  %v6590_v9 = vld [vmem:[#allocation18 + $0x150] ss:$8 sps:$4 sm:$0xff]   ;;  %5930 = vmatpush3.bf16.msra.mxu1 %v6638_v3 }
 0x6fc   :  { %5156 = vmatpush1.bf16.msra.mxu0 %v6551_v31  ;;  %v6595_v31 = vld [vmem:[#allocation18 + $0x164] ss:$8 sps:$4 sm:$0xff]  }
 0x6fd   :  { %5157 = vmatprep.subr.bf16.mxu0 %v6556_v48  ;;  %v6593_v48 = vld [vmem:[#allocation18 + $0x160] ss:$8 sps:$4 sm:$0xff]  }
 0x700   :  { %5158 = vmatpush1.bf16.msra.mxu0 %v6554_v61  ;;  %v6598_v61 = vld [vmem:[#allocation18 + $0x174] ss:$8 sps:$4 sm:$0xff]  }
 0x701   :  { %5159 = vmatprep.subr.bf16.mxu0 %v6559_v10  ;;  %v6596_v10 = vld [vmem:[#allocation18 + $0x170] ss:$8 sps:$4 sm:$0xff]  }
 0x704   :  { %5160 = vmatpush1.bf16.msra.mxu0 %v6557_v60  ;;  %v6601_v60 = vld [vmem:[#allocation18 + $0x184] ss:$8 sps:$4 sm:$0xff]  }
 0x705   :  { %5161 = vmatprep.subr.bf16.mxu0 %v6562_v19  ;;  %v6599_v19 = vld [vmem:[#allocation18 + $0x180] ss:$8 sps:$4 sm:$0xff]  }
 0x708   :  { %5162 = vmatpush1.bf16.msra.mxu0 %v6560_v28  ;;  %v6604_v28 = vld [vmem:[#allocation18 + $0x194] ss:$8 sps:$4 sm:$0xff]  }
 0x709   :  { %5163 = vmatprep.subr.bf16.mxu0 %v6565_v11  ;;  %v6602_v11 = vld [vmem:[#allocation18 + $0x190] ss:$8 sps:$4 sm:$0xff]  }
 0x70c   :  { %5164 = vmatpush1.bf16.msra.mxu0 %v6563_v62  ;;  %v6607_v62 = vld [vmem:[#allocation18 + $0x1a4] ss:$8 sps:$4 sm:$0xff]  }
 0x70d   :  { %5165 = vmatprep.subr.bf16.mxu0 %v6568_v43  ;;  %v6605_v43 = vld [vmem:[#allocation18 + $0x1a0] ss:$8 sps:$4 sm:$0xff]  }
 0x710   :  { %5166 = vmatpush1.bf16.msra.mxu0 %v6566_v44  ;;  %v6610_v44 = vld [vmem:[#allocation18 + $0x1b4] ss:$8 sps:$4 sm:$0xff]  }
 0x711   :  { %5167 = vmatprep.subr.bf16.mxu0 %v6571_v26  ;;  %v6613_v26 = vld [vmem:[#allocation18 + $0x1c4] ss:$8 sps:$4 sm:$0xff]  }
 0x714   :  { %5168 = vmatpush1.bf16.msra.mxu0 %v6569_v25  ;;  %v6608_v25 = vld [vmem:[#allocation18 + $0x1b0] ss:$8 sps:$4 sm:$0xff]  }
 0x715   :  { %5169 = vmatprep.subr.bf16.mxu0 %v6574_v59  ;;  %v6611_v59 = vld [vmem:[#allocation18 + $0x1c0] ss:$8 sps:$4 sm:$0xff]  }
 0x718   :  { %5170 = vmatpush1.bf16.msra.mxu0 %v6572_v13  ;;  %v6616_v13 = vld [vmem:[#allocation18 + $0x1d4] ss:$8 sps:$4 sm:$0xff]  }
 0x719   :  { %5180 = vmatprep.subr.bf16.mxu0 %v6577_v12  ;;  %v6614_v12 = vld [vmem:[#allocation18 + $0x1d0] ss:$8 sps:$4 sm:$0xff]  }
 0x7ae   :  { %v4564_v46 = vpop.f32.mrb[80].mxu0 }
 0x7af   :  { %v6027_v47 = vadd.f32 %v4564_v46, %v3110_v54  ;;  %v8047_v49 = vpop.f32.mrb[112].mxu1  ;;  %v4566_v53 = vpop.f32.mrb[81].mxu0  ;;  %v4807_v54 = vld [vmem:[%s8087_s14] sm:$0x3]  ;;  %s6914_s14 = smov [#allocation21]  }
 0x7b0   :  { %v6028_v1 = vadd.f32 %v4566_v53, %v3114_v16  ;;  %v4730_v18 = vpop.f32.mrb[113].mxu1  ;;  %v4568_v21 = vpop.f32.mrb[82].mxu0  ;;  %v6029_v58 = vadd.f32 %v8047_v49, %v3118_v29  ;;  %v4812_v16 = vrot.slane %v4807_v54, %v8161_v15  ;;  %v4816_v40 = vrot.slane %v4807_v54, %v8162_v0  ;;  %s5407_s29 = sshll.u32 %s6914_s14, 4  ;;  %s5408_s29 = int_to_ptr.vmem [resolvable:$true] %s5407_s29 }
 0x7b1   :  { %v4735_v5 = vmax.f32 %v6027_v47, 0.0  ;;  %v6030_v22 = vadd.f32 %v4730_v18, %v3122_v39  ;;  %v4732_v45 = vpop.f32.mrb[114].mxu1  ;;  %v4569_v17 = vpop.f32.mrb[83].mxu0  ;;  %s6859_s9 = scalar_lea.vmem %s5408_s29, 128  ;;  %p6864_p11 = scmp.lt.s32.totalorder %s5408_s29, %s5408_s29 }
 0x7b2   :  { %v4736_v8 = vmax.f32 %v6028_v1, 0.0  ;;  %v4733_v33 = vpop.f32.mrb[115].mxu1  ;;  %v4737_v30 = vmax.f32 %v6029_v58, 0.0  ;;  %v5853_v45 = vld [vmem:[%s8089_s16] ss:$0 sm:$0xff]  ;;  %p6860_p10 = scmp.ne.s32.totalorder %s5408_s29, %s6859_s9  ;;  %p6865_p12 = scmp.lt.s32.totalorder %s6859_s9, %s6859_s9 }
 0x7b3   :  { %v4738_v56 = vmax.f32 %v6030_v22, 0.0  ;;  %v4739_v50 = vpack.c.bf16 %v4735_v5, %v4735_v5 }
 0x7b4   :  { %v4740_v20 = vpack.c.bf16 %v4736_v8, %v4736_v8  ;;  %v4741_v4 = vpack.c.bf16 %v4737_v30, %v4737_v30  ;;  %p6866_p13 = por %p6865_p12, %p6864_p11 }
 0x7b5   :  { %v4742_v32 = vpack.c.bf16 %v4738_v56, %v4738_v56 }
 0x7b6   :  { %5171 = vmatprep.mubr.bf16.mxu0 %v4740_v20  ;;  %p6867_p0 = pnand %p6866_p13, %p6860_p10 }
 0x7b7   :  { %5172 = vmatmul.mubr.bf16.vlgmr.msra.gmra.mrb[84].mxu0 %v4739_v50 }
 0x7b8   :  { %5181 = vmatpush1.bf16.msra.mxu0 %v6575_v14  ;;  %5212 = vmatprep.mubr.bf16.mxu0 %v4742_v32 }
 0x7b9   :  { %5182 = vmatprep.subr.bf16.mxu0 %v6580_v2 }
 0x7bc   :  { %5183 = vmatpush1.bf16.msra.mxu0 %v6578_v52 }
 0x7bd   :  { %5184 = vmatprep.subr.bf16.mxu0 %v6583_v34 }
 0x7c0   :  { %5185 = vmatpush1.bf16.msra.mxu0 %v6581_v7 }
 0x7c1   :  { %5186 = vmatprep.subr.bf16.mxu0 %v6586_v55 }
 0x7c4   :  { %5187 = vmatpush1.bf16.msra.mxu0 %v6584_v35 }
 0x7c5   :  { %5188 = vmatprep.subr.bf16.mxu0 %v6589_v63 }
 0x7c8   :  { %5189 = vmatpush1.bf16.msra.mxu0 %v6587_v38 }
 0x7c9   :  { %5190 = vmatprep.subr.bf16.mxu0 %v6592_v36 }
 0x7cc   :  { %5191 = vmatpush1.bf16.msra.mxu0 %v6590_v9 }
 0x7cd   :  { %5192 = vmatprep.subr.bf16.mxu0 %v6595_v31 }
 0x7d0   :  { %5193 = vmatpush1.bf16.msra.mxu0 %v6593_v48 }
 0x7d1   :  { %5194 = vmatprep.subr.bf16.mxu0 %v6598_v61 }
 0x7d4   :  { %5195 = vmatpush1.bf16.msra.mxu0 %v6596_v10 }
 0x7d5   :  { %5196 = vmatprep.subr.bf16.mxu0 %v6601_v60 }
 0x7d8   :  { %5197 = vmatpush1.bf16.msra.mxu0 %v6599_v19 }
 0x7d9   :  { %5198 = vmatprep.subr.bf16.mxu0 %v6604_v28 }
 0x7dc   :  { %5199 = vmatpush1.bf16.msra.mxu0 %v6602_v11 }
 0x7dd   :  { %5200 = vmatprep.subr.bf16.mxu0 %v6607_v62 }
 0x7e0   :  { %5201 = vmatpush1.bf16.msra.mxu0 %v6605_v43 }
 0x7e1   :  { %5202 = vmatprep.subr.bf16.mxu0 %v6610_v44 }
 0x7e4   :  { %5203 = vmatpush1.bf16.msra.mxu0 %v6608_v25 }
 0x7e5   :  { %5204 = vmatprep.subr.bf16.mxu0 %v6613_v26 }
 0x7e8   :  { %5205 = vmatpush1.bf16.msra.mxu0 %v6611_v59 }
 0x7e9   :  { %5206 = vmatprep.subr.bf16.mxu0 %v6616_v13 }
 0x7ec   :  { %5207 = vmatpush1.bf16.msra.mxu0 %v6614_v12 }
 0x7ed   :  { %5208 = vmatprep.subr.bf16.mxu0 %v6619_v37 }
 0x7f0   :  { %5209 = vmatpush1.bf16.msra.mxu0 %v6617_v24 }
 0x7f1   :  { %5210 = vmatprep.subr.bf16.mxu0 %v6622_v27 }
 0x7f4   :  { %5211 = vmatpush1.bf16.msra.mxu0 %v6620_v57 }
 0x7f7   :  { %5213 = vmatmul.mubr.bf16.vlgmr.msra.gmra.mrb[84].mxu0 %v4741_v4 }
 0x8ca   :  { %v5214_v42 = vpop.f32.mrb[84].mxu0 }
 0x8cb   :  { %v6031_v39 = vadd.f32 %v5214_v42, %v4812_v16  ;;  %v5216_v46 = vpop.f32.mrb[85].mxu0 }
 0x8cc   :  { %v6032_v47 = vadd.f32 %v5216_v46, %v4816_v40  ;;  %v5218_v49 = vpop.f32.mrb[86].mxu0 }
 0x8cd   :  { %v5221_v53 = vmax.f32 %v6031_v39, 0.0  ;;  %v5219_v1 = vpop.f32.mrb[87].mxu0 }
 0x8ce   :  { %v5222_v18 = vmax.f32 %v6032_v47, 0.0 }
 0x8cf   :  { %v5223_v5 = vpack.c.bf16 %v5221_v53, %v5221_v53 }
 0x8d0   :  { %v5224_v21 = vpack.c.bf16 %v5222_v18, %v5222_v18 }
 0x8d2   :  { %5392 = vmatprep.mubr.bf16.mxu1 %v5224_v21 }
 0x8d3   :  { %5393 = vmatmul.mubr.bf16.vlgmr.msra.gmra.mrb[116].mxu1 %v5223_v5 }
 0x9a6   :  { %v5931_v22 = vpop.f32.mrb[116].mxu1 }
 0x9a7   :  { %v5932_v15 = vpop.f32.mrb[117].mxu1 }
 0x9a8   :  { %v5933_v0 = vadd.f32 %v5932_v15, %v5931_v22  ;;  %v5934_v17 = vpop.f32.mrb[118].mxu1 }
 0x9a9   :  { %v5935_v8 = vpop.f32.mrb[119].mxu1 }
 0x9aa   :  { %v5395_v33 = vadd.f32 %v5933_v0, %v5853_v45 }
 0x9ac   :  { %5400 = vst [vmem:[#allocation21] sm:$0xff] %v5395_v33 }
 0x9ad   :  { %6870 = shalt.err (!%p6867_p0)
}
 0x9ae   :  { %s6871_s16 = scalar_lea.hbm %s8090_s17, 128 }
 0x9af   :  { %p6872_p1 = scmp.ne.s32.totalorder %s8090_s17, %s6871_s16  ;;  %p6875_p2 = scmp.lt.u32.totalorder %s6871_s16, %s8090_s17 }
 0x9b1   :  { %p6877_p3 = pnand %p6875_p2, %p6872_p1 }
 0x9b3   :  { %6880 = shalt.err (!%p6877_p3)
}
 0x9b4   :  { %5410 = dma.vmem_to_hbm [thread:$0]  %s5408_s29, 128, %s8090_s17, [#allocation6]  }
 0x9b5   :  { %6893 = dma.done.wait [#allocation6], 128  }
 0x9b6   :  { %6894 = vsyncadd [#allocation6], 4294967168 }
 0x9b7   :  { %5414 = vsyncpa [#allocation5], 1 }
 0x9b8   :  { %5415 = vsyncpa [#allocation8], 1 }
 0x9b9   :  { %5416 = vsyncpa [#allocation11], 1 }
 0x9ba   :  { %5417 = vsyncpa [#allocation14], 1 }
 0x9bb   :  { %5418 = vsyncpa [#allocation17], 1 }
 0x9bc   :  { %5419 = vsyncpa [#allocation20], 1 }
 0x9bd   :  { %5420 = vsyncpa [#allocation6], 1 }

</bundles_post_ra>
